<compile_context>
chip_gen: v6e
topology: v6e:2x2x1
jax: 0.10.0
libtpu: 0.0.40
codegen_flags: <defaults>
</compile_context>

<pallas_src>
import math

import jax
import jax.numpy as jnp
import numpy as np
from jax.experimental import pallas as pl
from jax.experimental.pallas import tpu as pltpu


def _round_up(x, m):
    return ((x + m - 1) // m) * m


def _vmem_capacity_bytes():
    """Physical per-core VMEM (64 MiB on v7x, 128 MiB on v5e/v6e)."""
    try:
        return int(pltpu.get_tpu_info().vmem_capacity_bytes)
    except Exception:
        return 64 << 20  # conservative fallback (v7x per-TensorCore VMEM)


def cheb_conv_kernel(w_ref, lt_ref, x_ref, o_ref):
    """Chebyshev recurrence + weighted sum for one (TILE_M, Npx_p) row tile.

    w_ref : (K,)            SMEM  float32   Chebyshev coefficients (scalar prefetch)
    lt_ref: (Npx_p, Npx_p)  VMEM  f32/bf16  L^T (pre-transposed, padded)
    x_ref : (TILE_M, Npx_p) VMEM  float32   input tile
    o_ref : (TILE_M, Npx_p) VMEM  float32   output tile
    """
    K = w_ref.shape[0]
    lt = lt_ref[...]                        # possibly bf16 matmul operand
    x0 = x_ref[...].astype(jnp.float32)     # recurrence carries stay f32

    # Accumulate in a local f32 value; one store into o_ref at the end
    # (avoids K-1 full-tile VMEM read-modify-write round trips).
    acc = w_ref[0] * x0
    if K > 1:
        x1 = jnp.dot(x0.astype(lt.dtype), lt, preferred_element_type=jnp.float32)
        acc = acc + w_ref[1] * x1
        # K is a static Python int -> the recurrence unrolls at trace time.
        for k in range(2, K):
            x2 = 2.0 * jnp.dot(x1.astype(lt.dtype), lt,
                               preferred_element_type=jnp.float32) - x0
            acc = acc + w_ref[k] * x2
            x0, x1 = x1, x2
    o_ref[...] = acc


def prepare_laplacian(laplacian, matmul_dtype=jnp.bfloat16):
    """Transpose + zero-pad Npx to a multiple of 128 + cast, once per layer.

    The (sparse) Laplacian is densified: the TPU MXU has no sparse matmul.
    # TODO(synk): exploit Laplacian sparsity by gathering/DMA-ing nonzero
    # column blocks of L^T instead of using a dense matmul.
    # TODO(synk): on v7x an fp8 L^T (per-matrix scale, f32 accumulation) gives
    # another ~2x MXU throughput and a 4x smaller resident matrix; validate
    # against the 2*L*T_{k-1} - T_{k-2} error amplification before adopting.
    """
    lap = jnp.asarray(laplacian, jnp.float32)
    npx = lap.shape[0]
    npx_p = _round_up(npx, 128)
    lap_t = lap.T
    if npx_p != npx:
        lap_t = jnp.pad(lap_t, ((0, npx_p - npx), (0, npx_p - npx)))
    return lap_t.astype(matmul_dtype)


def cheb_conv_pallas(lap_t, inputs, weight, *, tile_m=None):
    """Pallas ChebConv forward.

    lap_t:   (Npx_p, Npx_p) pre-transposed / padded Laplacian (prepare_laplacian)
    inputs:  (Nsamps, Npx) or (Npx,)
    weight:  (K,)
    returns: float32, same leading shape as inputs
    """
    was_1d = inputs.ndim == 1
    if was_1d:
        inputs = inputs[None, :]
    n_samp, npx = inputs.shape
    npx_p = lap_t.shape[0]
    assert npx_p % 128 == 0 and npx_p >= npx

    x = jnp.asarray(inputs, jnp.float32)
    w = jnp.asarray(weight, jnp.float32)
    K = int(w.shape[0])

    lt_bytes = npx_p * npx_p * jnp.dtype(lap_t.dtype).itemsize
    vmem_cap = int(0.9 * _vmem_capacity_bytes())
    if lt_bytes + (4 << 20) > vmem_cap:
        # TODO(synk): for L^T larger than ~0.9*VMEM (Npx >~ 5000 bf16 on v7x,
        # ~7500 on v5e/v6e) stop holding it resident: run an inner
        # pltpu.emit_pipeline over contraction-axis column blocks of L^T per
        # Chebyshev step, accumulating each T_k into a (tm, npx_p) VMEM scratch.
        raise NotImplementedError(
            f"L^T ({lt_bytes / 2**20:.1f} MiB) does not fit VMEM "
            f"({vmem_cap / 2**20:.1f} MiB); contraction streaming not implemented.")

    # ---- choose the row-tile size -------------------------------------------
    m_p = _round_up(max(n_samp, 8), 8)
    if tile_m is None:
        # Larger tiles when the resident L^T leaves plenty of headroom
        # (v5e/v6e: 128 MiB VMEM); keep 256 on VMEM-starved v7x / large Npx.
        tile_m = 512 if (npx_p <= 2048 and vmem_cap - lt_bytes > (64 << 20)) else 256
    tm = max(8, min(_round_up(tile_m, 8), m_p))
    # v7x megacore: guarantee >= 2 grid steps when possible so both
    # TensorCores get work under dimension_semantics=("parallel",).
    if m_p // tm < 2 and m_p >= 16:
        tm = _round_up((m_p + 1) // 2, 8)

    def _budget(tm_, lt_buffers):
        io = 2 * 2 * tm_ * npx_p * 4       # X + O tiles, double-buffered, f32
        tmp = 5 * tm_ * npx_p * 4          # x0/x1/x2/acc carries + bf16 cast temps
        return lt_buffers * lt_bytes + io + tmp + (2 << 20)

    # Shrink the tile if the full budget would not fit VMEM (large Npx).
    while _budget(tm, 1) > vmem_cap and tm > 8:
        tm = max(8, _round_up(tm // 2, 8))
    m_p = _round_up(m_p, tm)
    grid = (m_p // tm,)

    # ---- pad only when the shapes actually require it ------------------------
    # TODO(synk): this wrapper-side pad materializes a padded copy of X in HBM
    # (extra X read+write per call); keep activations pre-padded across layers
    # or fuse via CompilerParams(allow_input_fusion=...) if it shows in profiles.
    pad_m, pad_n = m_p - n_samp, npx_p - npx
    if pad_m or pad_n:
        x = jnp.pad(x, ((0, pad_m), (0, pad_n)))

    cost = pl.CostEstimate(
        flops=2 * (K - 1) * m_p * npx_p * npx_p + 3 * K * m_p * npx_p,
        transcendentals=0,
        bytes_accessed=lt_bytes + 2 * m_p * npx_p * 4 + K * 4,
    )

    def _run(single_buffer_lt):
        if single_buffer_lt:
            # Constant index_map -> the L^T block never changes; one pipeline
            # buffer suffices (the default 2 would double its VMEM footprint).
            lt_spec = pl.BlockSpec((npx_p, npx_p), lambda i, w_s: (0, 0),
                                   pipeline_mode=pl.Buffered(1))
        else:
            lt_spec = pl.BlockSpec((npx_p, npx_p), lambda i, w_s: (0, 0))
        vmem_limit = min(_budget(tm, 1 if single_buffer_lt else 2), vmem_cap)
        return pl.pallas_call(
            cheb_conv_kernel,
            out_shape=jax.ShapeDtypeStruct((m_p, npx_p), jnp.float32),
            grid_spec=pltpu.PrefetchScalarGridSpec(
                num_scalar_prefetch=1,                                    # weight -> SMEM
                grid=grid,
                in_specs=[
                    lt_spec,                                              # L^T resident
                    pl.BlockSpec((tm, npx_p), lambda i, w_s: (i, 0)),     # X row tiles
                ],
                out_specs=pl.BlockSpec((tm, npx_p), lambda i, w_s: (i, 0)),
            ),
            compiler_params=pltpu.CompilerParams(
                dimension_semantics=("parallel",),    # v7x: shard row tiles across TCs
                vmem_limit_bytes=int(vmem_limit),
            ),
            cost_estimate=cost,
        )(w, lap_t, x)

    try:
        out = _run(single_buffer_lt=True)
    except Exception:
        # Fallback if pl.Buffered(1) is rejected by this Pallas/Mosaic version.
        out = _run(single_buffer_lt=False)

    out = out[:n_samp, :npx]
    if was_1d:
        out = out[0]
    return out


class ChebConvPallas:
    """Mirrors ChebConv.__init__ / forward (bias=False default, as in the module)."""

    def __init__(self, in_channels, out_channels, kernel_size, key, bias=False,
                 matmul_dtype=jnp.bfloat16, tile_m=None):
        self.in_channels = in_channels
        self.out_channels = out_channels
        self.kernel_size = kernel_size
        self.matmul_dtype = matmul_dtype
        self.tile_m = tile_m
        std = math.sqrt(2.0 / (in_channels * kernel_size))
        self.weight = std * jax.random.normal(key, (kernel_size,), jnp.float32)
        # TODO(synk): bias of shape (out_channels,) only broadcasts onto the
        # (Nsamps, Npx) output when out_channels == Npx; kept disabled (default).
        self.bias = jnp.full((out_channels,), 1e-05, jnp.float32) if bias else None
        # L is static across forward calls -> cache the prepared L^T.  The
        # cache keeps a strong reference to the Laplacian object so its id()
        # cannot be recycled and silently alias a different matrix.
        self._lap_cache = {}
        # TODO(synk): for fixed-weight inference, precompute
        # M = sum_k w[k] * T_k(L) once per (L, w) and reduce the forward to a
        # single X @ M^T matmul (~(K-1)x less MXU work, no serial recurrence).

    def _prepared(self, laplacian):
        key = id(laplacian)
        entry = self._lap_cache.get(key)
        if entry is not None and entry[0] is laplacian:
            return entry[1]
        lap_t = prepare_laplacian(laplacian, self.matmul_dtype)
        self._lap_cache[key] = (laplacian, lap_t)
        return lap_t

    def __call__(self, laplacian, inputs):
        lap_t = self._prepared(laplacian)
        out = cheb_conv_pallas(lap_t, inputs, self.weight, tile_m=self.tile_m)
        if self.bias is not None:
            out = out + self.bias
        return out


def cheb_conv_ref(laplacian, inputs, weight):
    """Pure-JAX f32 reference mirroring the torch code (for validation)."""
    was_1d = inputs.ndim == 1
    if was_1d:
        inputs = inputs[None, :]
    K = weight.shape[0]
    x0 = inputs.T                                    # (Npx, Ns)
    xs = [x0]
    if K > 1:
        x1 = laplacian @ x0
        xs.append(x1)
        for _ in range(1, K - 1):
            x2 = 2.0 * (laplacian @ x1) - x0
            xs.append(x2)
            x0, x1 = x1, x2
    stacked = jnp.stack([x.T for x in xs], axis=-1)  # (Ns, Npx, K)
    out = stacked @ weight                           # (Ns, Npx)
    if was_1d:
        out = out[0]
    return out


if __name__ == "__main__":
    key = jax.random.PRNGKey(0)
    k_lap, k_x, k_w = jax.random.split(key, 3)

    # Small but non-trivial: Npx not 128-aligned (exercises padding), Nsamps
    # spans >= 2 row tiles (exercises pipelining + the megacore grid split).
    n_samps, npx = 256, 200
    in_channels, out_channels, kernel_size = 4, 4, 5

    # Synthetic symmetric "Laplacian" (densified), scaled so the Chebyshev
    # recurrence stays well conditioned.
    a = jax.random.normal(k_lap, (npx, npx), jnp.float32) * (0.5 / math.sqrt(npx))
    laplacian = 0.5 * (a + a.T)

    inputs = jax.random.normal(k_x, (n_samps, npx), jnp.float32)

    # ---- exact-dtype path (f32 MXU operands): tight tolerance ---------------
    layer_f32 = ChebConvPallas(in_channels, out_channels, kernel_size, k_w,
                               bias=False, matmul_dtype=jnp.float32, tile_m=128)
    out_f32 = jax.block_until_ready(layer_f32(laplacian, inputs))
    ref = cheb_conv_ref(laplacian, inputs, layer_f32.weight)
    np.testing.assert_allclose(np.asarray(out_f32), np.asarray(ref),
                               rtol=2e-4, atol=2e-4)

    # 1D input path (degenerate M=1 -> single padded row tile, grid of 1).
    out1d = jax.block_until_ready(layer_f32(laplacian, inputs[0]))
    ref1d = cheb_conv_ref(laplacian, inputs[0], layer_f32.weight)
    np.testing.assert_allclose(np.asarray(out1d), np.asarray(ref1d),
                               rtol=2e-4, atol=2e-4)

    # ---- default perf path (bf16 MXU operands, f32 accumulation) ------------
    layer_bf16 = ChebConvPallas(in_channels, out_channels, kernel_size, k_w,
                                bias=False)          # bf16 matmul, adaptive tile
    out_bf16 = jax.block_until_ready(layer_bf16(laplacian, inputs))
    ref_b = cheb_conv_ref(laplacian, inputs, layer_bf16.weight)
    np.testing.assert_allclose(np.asarray(out_bf16), np.asarray(ref_b),
                               rtol=5e-2, atol=5e-2)

    print("KERNEL_OK")
</pallas_src>

<mosaic_0001>
module attributes {stable_mosaic.version = 11 : i64} {
  func.func @cheb_conv_kernel(%arg0: i32, %arg1: memref<5xf32, #tpu.memory_space<smem>>, %arg2: memref<256x256xf32, #tpu.memory_space<vmem>>, %arg3: memref<128x256xf32, #tpu.memory_space<vmem>>, %arg4: memref<128x256xf32, #tpu.memory_space<vmem>>) attributes {dimension_semantics = [#tpu.dimension_semantics<parallel>], iteration_bounds = array<i64: 2>, scalar_prefetch = 1 : i64, scratch_operands = 0 : i64, tpu.core_type = #tpu.core_type<tc>, window_params = [{pipeline_mode = #tpu.pipeline_mode<synchronous>, transform_indices = @transform_0, window_bounds = array<i64: 256, 256>}, {transform_indices = @transform_1, window_bounds = array<i64: 128, 256>}, {transform_indices = @transform_2, window_bounds = array<i64: 128, 256>}]} {
    %c0 = arith.constant 0 : index
    %c0_0 = arith.constant 0 : index
    %0 = vector.load %arg2[%c0, %c0_0] : memref<256x256xf32, #tpu.memory_space<vmem>>, vector<256x256xf32>
    %c0_1 = arith.constant 0 : index
    %c0_2 = arith.constant 0 : index
    %1 = vector.load %arg3[%c0_1, %c0_2] : memref<128x256xf32, #tpu.memory_space<vmem>>, vector<128x256xf32>
    %c0_3 = arith.constant 0 : index
    %2 = memref.load %arg1[%c0_3] : memref<5xf32, #tpu.memory_space<smem>>
    %3 = vector.broadcast %2 : f32 to vector<128x256xf32>
    %4 = arith.mulf %3, %1 : vector<128x256xf32>
    %cst = arith.constant dense<0.000000e+00> : vector<128x256xf32>
    %5 = tpu.matmul %1, %0, %cst {dimension_numbers = #tpu.dot_dimension_numbers<[1], [0], [0], [1], [0, 0, 1, 1], [], []>} : vector<128x256xf32>, vector<256x256xf32>, vector<128x256xf32> -> vector<128x256xf32>
    %c1 = arith.constant 1 : index
    %6 = memref.load %arg1[%c1] : memref<5xf32, #tpu.memory_space<smem>>
    %7 = vector.broadcast %6 : f32 to vector<128x256xf32>
    %8 = arith.mulf %7, %5 : vector<128x256xf32>
    %9 = arith.addf %4, %8 : vector<128x256xf32>
    %cst_4 = arith.constant dense<0.000000e+00> : vector<128x256xf32>
    %10 = tpu.matmul %5, %0, %cst_4 {dimension_numbers = #tpu.dot_dimension_numbers<[1], [0], [0], [1], [0, 0, 1, 1], [], []>} : vector<128x256xf32>, vector<256x256xf32>, vector<128x256xf32> -> vector<128x256xf32>
    %cst_5 = arith.constant 2.000000e+00 : f32
    %11 = vector.broadcast %cst_5 : f32 to vector<128x256xf32>
    %12 = arith.mulf %11, %10 : vector<128x256xf32>
    %13 = arith.subf %12, %1 : vector<128x256xf32>
    %c2 = arith.constant 2 : index
    %14 = memref.load %arg1[%c2] : memref<5xf32, #tpu.memory_space<smem>>
    %15 = vector.broadcast %14 : f32 to vector<128x256xf32>
    %16 = arith.mulf %15, %13 : vector<128x256xf32>
    %17 = arith.addf %9, %16 : vector<128x256xf32>
    %cst_6 = arith.constant dense<0.000000e+00> : vector<128x256xf32>
    %18 = tpu.matmul %13, %0, %cst_6 {dimension_numbers = #tpu.dot_dimension_numbers<[1], [0], [0], [1], [0, 0, 1, 1], [], []>} : vector<128x256xf32>, vector<256x256xf32>, vector<128x256xf32> -> vector<128x256xf32>
    %cst_7 = arith.constant 2.000000e+00 : f32
    %19 = vector.broadcast %cst_7 : f32 to vector<128x256xf32>
    %20 = arith.mulf %19, %18 : vector<128x256xf32>
    %21 = arith.subf %20, %5 : vector<128x256xf32>
    %c3 = arith.constant 3 : index
    %22 = memref.load %arg1[%c3] : memref<5xf32, #tpu.memory_space<smem>>
    %23 = vector.broadcast %22 : f32 to vector<128x256xf32>
    %24 = arith.mulf %23, %21 : vector<128x256xf32>
    %25 = arith.addf %17, %24 : vector<128x256xf32>
    %cst_8 = arith.constant dense<0.000000e+00> : vector<128x256xf32>
    %26 = tpu.matmul %21, %0, %cst_8 {dimension_numbers = #tpu.dot_dimension_numbers<[1], [0], [0], [1], [0, 0, 1, 1], [], []>} : vector<128x256xf32>, vector<256x256xf32>, vector<128x256xf32> -> vector<128x256xf32>
    %cst_9 = arith.constant 2.000000e+00 : f32
    %27 = vector.broadcast %cst_9 : f32 to vector<128x256xf32>
    %28 = arith.mulf %27, %26 : vector<128x256xf32>
    %29 = arith.subf %28, %13 : vector<128x256xf32>
    %c4 = arith.constant 4 : index
    %30 = memref.load %arg1[%c4] : memref<5xf32, #tpu.memory_space<smem>>
    %31 = vector.broadcast %30 : f32 to vector<128x256xf32>
    %32 = arith.mulf %31, %29 : vector<128x256xf32>
    %33 = arith.addf %25, %32 : vector<128x256xf32>
    %c0_10 = arith.constant 0 : index
    %c0_11 = arith.constant 0 : index
    %34 = vector.load %arg4[%c0_10, %c0_11] : memref<128x256xf32, #tpu.memory_space<vmem>>, vector<128x256xf32>
    tpu.vector_store %arg4[%c0_10, %c0_11], %33 {strides = array<i32>} : memref<128x256xf32, #tpu.memory_space<vmem>>, vector<128x256xf32>,
    return
  }
  func.func @transform_0(%arg0: i32, %arg1: memref<5xf32, #tpu.memory_space<smem>>) -> (i32, i32) {
    %c0_i32 = arith.constant 0 : i32
    %c0_i32_0 = arith.constant 0 : i32
    %c0_i32_1 = arith.constant 0 : i32
    return %c0_i32, %c0_i32_0 : i32, i32
  }
  func.func @transform_1(%arg0: i32, %arg1: memref<5xf32, #tpu.memory_space<smem>>) -> (i32, i32) {
    %c0_i32 = arith.constant 0 : i32
    %c0_i32_0 = arith.constant 0 : i32
    return %arg0, %c0_i32 : i32, i32
  }
  func.func @transform_2(%arg0: i32, %arg1: memref<5xf32, #tpu.memory_space<smem>>) -> (i32, i32) {
    %c0_i32 = arith.constant 0 : i32
    %c0_i32_0 = arith.constant 0 : i32
    return %arg0, %c0_i32 : i32, i32
  }
}

module attributes {stable_mosaic.version = 11 : i64} {
  func.func @cheb_conv_kernel(%arg0: i32, %arg1: memref<5xf32, #tpu.memory_space<smem>>, %arg2: memref<256x256xf32, #tpu.memory_space<vmem>>, %arg3: memref<128x256xf32, #tpu.memory_space<vmem>>, %arg4: memref<128x256xf32, #tpu.memory_space<vmem>>) attributes {dimension_semantics = [#tpu.dimension_semantics<parallel>], iteration_bounds = array<i64: 2>, scalar_prefetch = 1 : i64, scratch_operands = 0 : i64, tpu.core_type = #tpu.core_type<tc>, window_params = [{pipeline_mode = #tpu.pipeline_mode<synchronous>, transform_indices = @transform_0, window_bounds = array<i64: 256, 256>}, {transform_indices = @transform_1, window_bounds = array<i64: 128, 256>}, {transform_indices = @transform_2, window_bounds = array<i64: 128, 256>}]} {
    %c0 = arith.constant 0 : index
    %c0_0 = arith.constant 0 : index
    %0 = vector.load %arg2[%c0, %c0_0] : memref<256x256xf32, #tpu.memory_space<vmem>>, vector<256x256xf32>
    %c0_1 = arith.constant 0 : index
    %c0_2 = arith.constant 0 : index
    %1 = vector.load %arg3[%c0_1, %c0_2] : memref<128x256xf32, #tpu.memory_space<vmem>>, vector<128x256xf32>
    %c0_3 = arith.constant 0 : index
    %2 = memref.load %arg1[%c0_3] : memref<5xf32, #tpu.memory_space<smem>>
    %3 = vector.broadcast %2 : f32 to vector<128x256xf32>
    %4 = arith.mulf %3, %1 : vector<128x256xf32>
    %cst = arith.constant dense<0.000000e+00> : vector<128x256xf32>
    %5 = tpu.matmul %1, %0, %cst {dimension_numbers = #tpu.dot_dimension_numbers<[1], [0], [0], [1], [0, 0, 1, 1], [], []>} : vector<128x256xf32>, vector<256x256xf32>, vector<128x256xf32> -> vector<128x256xf32>
    %c1 = arith.constant 1 : index
    %6 = memref.load %arg1[%c1] : memref<5xf32, #tpu.memory_space<smem>>
    %7 = vector.broadcast %6 : f32 to vector<128x256xf32>
    %8 = arith.mulf %7, %5 : vector<128x256xf32>
    %9 = arith.addf %4, %8 : vector<128x256xf32>
    %cst_4 = arith.constant dense<0.000000e+00> : vector<128x256xf32>
    %10 = tpu.matmul %5, %0, %cst_4 {dimension_numbers = #tpu.dot_dimension_numbers<[1], [0], [0], [1], [0, 0, 1, 1], [], []>} : vector<128x256xf32>, vector<256x256xf32>, vector<128x256xf32> -> vector<128x256xf32>
    %cst_5 = arith.constant 2.000000e+00 : f32
    %11 = vector.broadcast %cst_5 : f32 to vector<128x256xf32>
    %12 = arith.mulf %11, %10 : vector<128x256xf32>
    %13 = arith.subf %12, %1 : vector<128x256xf32>
    %c2 = arith.constant 2 : index
    %14 = memref.load %arg1[%c2] : memref<5xf32, #tpu.memory_space<smem>>
    %15 = vector.broadcast %14 : f32 to vector<128x256xf32>
    %16 = arith.mulf %15, %13 : vector<128x256xf32>
    %17 = arith.addf %9, %16 : vector<128x256xf32>
    %cst_6 = arith.constant dense<0.000000e+00> : vector<128x256xf32>
    %18 = tpu.matmul %13, %0, %cst_6 {dimension_numbers = #tpu.dot_dimension_numbers<[1], [0], [0], [1], [0, 0, 1, 1], [], []>} : vector<128x256xf32>, vector<256x256xf32>, vector<128x256xf32> -> vector<128x256xf32>
    %cst_7 = arith.constant 2.000000e+00 : f32
    %19 = vector.broadcast %cst_7 : f32 to vector<128x256xf32>
    %20 = arith.mulf %19, %18 : vector<128x256xf32>
    %21 = arith.subf %20, %5 : vector<128x256xf32>
    %c3 = arith.constant 3 : index
    %22 = memref.load %arg1[%c3] : memref<5xf32, #tpu.memory_space<smem>>
    %23 = vector.broadcast %22 : f32 to vector<128x256xf32>
    %24 = arith.mulf %23, %21 : vector<128x256xf32>
    %25 = arith.addf %17, %24 : vector<128x256xf32>
    %cst_8 = arith.constant dense<0.000000e+00> : vector<128x256xf32>
    %26 = tpu.matmul %21, %0, %cst_8 {dimension_numbers = #tpu.dot_dimension_numbers<[1], [0], [0], [1], [0, 0, 1, 1], [], []>} : vector<128x256xf32>, vector<256x256xf32>, vector<128x256xf32> -> vector<128x256xf32>
    %cst_9 = arith.constant 2.000000e+00 : f32
    %27 = vector.broadcast %cst_9 : f32 to vector<128x256xf32>
    %28 = arith.mulf %27, %26 : vector<128x256xf32>
    %29 = arith.subf %28, %13 : vector<128x256xf32>
    %c4 = arith.constant 4 : index
    %30 = memref.load %arg1[%c4] : memref<5xf32, #tpu.memory_space<smem>>
    %31 = vector.broadcast %30 : f32 to vector<128x256xf32>
    %32 = arith.mulf %31, %29 : vector<128x256xf32>
    %33 = arith.addf %25, %32 : vector<128x256xf32>
    %c0_10 = arith.constant 0 : index
    %c0_11 = arith.constant 0 : index
    %34 = vector.load %arg4[%c0_10, %c0_11] : memref<128x256xf32, #tpu.memory_space<vmem>>, vector<128x256xf32>
    tpu.vector_store %arg4[%c0_10, %c0_11], %33 {strides = array<i32>} : memref<128x256xf32, #tpu.memory_space<vmem>>, vector<128x256xf32>,
    return
  }
  func.func @transform_0(%arg0: i32, %arg1: memref<5xf32, #tpu.memory_space<smem>>) -> (i32, i32) {
    %c0_i32 = arith.constant 0 : i32
    %c0_i32_0 = arith.constant 0 : i32
    %c0_i32_1 = arith.constant 0 : i32
    return %c0_i32, %c0_i32_0 : i32, i32
  }
  func.func @transform_1(%arg0: i32, %arg1: memref<5xf32, #tpu.memory_space<smem>>) -> (i32, i32) {
    %c0_i32 = arith.constant 0 : i32
    %c0_i32_0 = arith.constant 0 : i32
    return %arg0, %c0_i32 : i32, i32
  }
  func.func @transform_2(%arg0: i32, %arg1: memref<5xf32, #tpu.memory_space<smem>>) -> (i32, i32) {
    %c0_i32 = arith.constant 0 : i32
    %c0_i32_0 = arith.constant 0 : i32
    return %arg0, %c0_i32 : i32, i32
  }
}

</mosaic_0001>

<bundles_post_ra>
// kernel: tpu_custom_call.1
= control target key start
LH: loop header
LB: loop body
LE: loop exit
PB: predicated region body
PF: predicated region fallthrough
CT: control target
= control target key end

     0   :  { %s1773_s12 = smov [#allocation3]   ;;  %s3332_s0 = inlined_call_operand.hbm [shape: f32[5], index: 0, kind: input, shape index: {}]   ;;  %s3333_s1 = inlined_call_operand.hbm [shape: f32[256,256], index: 1, kind: input, shape index: {}]   ;;  %s3334_s2 = inlined_call_operand.hbm [shape: f32[256,256], index: 2, kind: input, shape index: {}]   ;;  %s3335_s3 = inlined_call_operand.hbm [shape: f32[256,256], index: 3, kind: output, shape index: {}]  }
   0x1   :  { %9 = dma.hbm_to_smem %s3332_s0, 16, %s1773_s12, [#allocation2] }
   0x2   :  { %1743 = dma.done.wait [#allocation2], 16 }
   0x3   :  { %1744 = vsyncadd [#allocation2], 4294967280 }
   0x4   :  { %11 = sfence }
   0x5   :  { %12 = vsyncpa [#allocation5], 0 }
   0x6   :  { %13 = vsyncpa [#allocation8], 0 }
   0x7   :  { %15 = vsyncpa [#allocation8 + $0x1], 0 }
   0x8   :  { %16 = vsyncpa [#allocation6], 0 }
   0x9   :  { %18 = vsyncpa [#allocation6 + $0x1], 0  ;;  %s1804_s15 = smov 0   ;;  %s1806_s16 = smov 0  }
   0xa   :  { %s1808_s17 = smov 0   ;;  %s1810_s18 = smov 0  }
   0xb LB: > { %s1825_s0 = sadd.s32 4294967295, %s1771_s18   ;;  %s1547_s19 = sadd.s32 4294967294, %s1771_s18   ;;  %s1771_s18 = sphi %s1810_s18, %s3768_s18   ;;  %s1767_s17 = sphi %s1808_s17, %s3767_s17   ;;  %s1763_s16 = sphi %s1806_s16, %s3766_s16   ;;  %s1759_s15 = sphi %s1804_s15, %s3765_s15  }
   0xc   : > { %p65_p0 = scmp.ne.s32.totalorder %s1763_s16, %s1759_s15  ;;  %p3336_p1 = scmp.eq.s32.totalorder %s1825_s0, 0 }
   0xd   : > { %p95_p3 = scmp.eq.s32.totalorder %s1547_s19, 1  ;;  %p1548_p5 = scmp.ge.s32.totalorder %s1771_s18, 1 }
   0xe   : > { %p1834_p4 = por %p3336_p1, %p65_p0  ;;  %p102_p7 = scmp.lt.s32.totalorder %s1771_s18, 3 }
   0xf   : > { %p1839_p6 = por %p95_p3, %p65_p0  ;;  %s1774_s23 = smov [#allocation4]  }
  0x10   : > { %s3513_s20 = scalar_select %p1834_p4, 1, 0 }
  0x11   : > { %s3514_s21 = scalar_select %p1839_p6, 1, 0 }
  0x12   : > { %p1844_p8 = pnand %p1548_p5, %p102_p7  ;;  %s114_s24 = sshll.u32 %s1774_s23, 4  ;;  %s115_s24 = int_to_ptr.vmem [resolvable:$true] %s114_s24 }
  0x13   : > { %s1858_s26 = sadd.s32 1, %s1771_s18   ;;  %s52_s27 = sadd.s32 1, %s1767_s17 }
  0x14   : > { %s3515_s22 = scalar_select %p1844_p8, 1, 0 }
  0x15   : > { %p1581_p9 = pneg %p1844_p8  ;;  %s49_s28 = ssub.s32 %s1771_s18, %s1858_s26 }
  0x16   : > { %s1658_s29 = scalar_lea.vmem %s115_s24, 8192  ;;  %p1666_p5 = scmp.lt.s32.totalorder %s115_s24, %s115_s24 }
  0x17   : > { %p1853_p11 = pnand %p1581_p9, %p3336_p1  ;;  %p1659_p13 = scmp.ne.s32.totalorder %s115_s24, %s1658_s29 }
  0x18   : > { %p1667_p7 = scmp.lt.s32.totalorder %s1658_s29, %s1658_s29 }
  0x19   : > { %p1649_p12 = pneg %p1853_p11 }
  0x1a   : > { %p1668_p10 = por %p1667_p7, %p1666_p5 }
  0x1b   : > { %p1661_p0 = pnand %p1659_p13, %p1649_p12 }
  0x1d   : > { %p1662_p3 = pneg %p1661_p0 }
  0x1f   : > { %p1669_p2 = pnand %p1668_p10, %p1662_p3 }
  0x21   : > { %1672 = shalt.err (!%p1669_p2)
}
  0x22   : > { %s1775_s30 = smov 256   ;;  %s1776_s4 = smov 16  }
  0x23   : > { %1584 = dma.hbm_to_vmem [thread:$0]  (!%p1853_p11), %s3333_s1, 8192, %s115_s24, [#allocation5], %s1775_s30, %s1775_s30, %s1776_s4  }
  0x24   : > { %p50_p2 = scmp.eq.s32.totalorder %s49_s28, 0  ;;  %p59_p9 = scmp.ne.s32.totalorder %s1767_s17, %s1763_s16 }
  0x25   : > { %p60_p10 = scmp.eq.s32.totalorder %s1771_s18, 0  ;;  %p1594_p12 = scmp.lt.s32.totalorder %s1771_s18, 2 }
  0x26   : > { %s1878_s7 = scalar_select %p50_p2, %s1767_s17, %s52_s27  }
  0x27   : > { %p61_p13 = por %p60_p10, %p59_p9  ;;  %p3517_p0 = scmp.eq.s32.totalorder %s1825_s0, 1 }
  0x28   : > { %s128_s9 = sand.u32 1, %s1767_s17   ;;  %s1570_s10 = sshll.u32 %s1771_s18, 12 }
  0x29   : > { %p1882_p3 = por %p3517_p0, %p59_p9  ;;  %s1551_s11 = sshll.u32 %s128_s9, 8 }
  0x2a   : > { %s1891_s14 = scalar_lea.hbm %s3334_s2, %s1570_s10  ;;  %s132_s19 = scalar_lea.vmem [#allocation7], %s1551_s11 }
  0x2b   : > { %s3518_s8 = scalar_select %p1882_p3, 1, 0 }
  0x2c   : > { %s140_s23 = sshll.u32 %s132_s19, 4  ;;  %p1893_p11 = pnand %p1594_p12, %p61_p13  ;;  %s1897_s23 = int_to_ptr.vmem [resolvable:$true] %s140_s23 }
  0x2d   : > { %s1899_s25 = scalar_lea.sflag [#allocation8], %s128_s9  ;;  %s1673_s27 = scalar_lea.hbm %s1891_s14, 4096 }
  0x2e   : > { %p1674_p5 = scmp.ne.s32.totalorder %s1891_s14, %s1673_s27  ;;  %p1675_p7 = pneg %p1893_p11 }
  0x2f   : > { %s1678_s5 = scalar_lea.hbm %s3334_s2, 8192  ;;  %p1679_p10 = scmp.lt.s32.totalorder %s1891_s14, %s3334_s2 }
  0x30   : > { %p1676_p2 = pnand %p1675_p7, %p1674_p5  ;;  %p1680_p12 = scmp.lt.s32.totalorder %s1678_s5, %s1673_s27 }
  0x32   : > { %p1677_p9 = pneg %p1676_p2  ;;  %p1681_p13 = por %p1680_p12, %p1679_p10 }
  0x34   : > { %p1682_p0 = pnand %p1681_p13, %p1677_p9 }
  0x36   : > { %1685 = shalt.err (!%p1682_p0)
}
  0x37   : > { %s1686_s9 = scalar_lea.vmem %s1897_s23, 4096  ;;  %s1777_s11 = smov [#allocation7]  }
  0x38   : > { %p1687_p1 = scmp.ne.s32.totalorder %s1897_s23, %s1686_s9  ;;  %s1691_s12 = sshll.u32 %s1777_s11, 4  ;;  %s1692_s12 = int_to_ptr.vmem [resolvable:$false] %s1691_s12 }
  0x39   : > { %s1693_s13 = scalar_lea.vmem %s1692_s12, 8192  ;;  %p1694_p2 = scmp.lt.s32.totalorder %s1897_s23, %s1692_s12 }
  0x3a   : > { %p1689_p6 = pnand %p1687_p1, %p1675_p7  ;;  %p1695_p3 = scmp.lt.s32.totalorder %s1693_s13, %s1686_s9 }
  0x3c   : > { %p1690_p5 = pneg %p1689_p6  ;;  %p1696_p4 = por %p1695_p3, %p1694_p2 }
  0x3e   : > { %p1697_p8 = pnand %p1696_p4, %p1690_p5 }
  0x40   : > { %1700 = shalt.err (!%p1697_p8)
}
  0x41   : > { %1588 = dma.hbm_to_vmem [thread:$0]  (!%p1893_p11), %s1891_s14, 4096, %s1897_s23, %s1899_s25, %s1775_s30, %s1775_s30, %s1776_s4  }
  0x42   : > { %p3520_p1 = scmp.ne.s32.totalorder %s3515_s22, 0 }
  0x44   : > { %152 = sbr.rel (%p3520_p1) target bundleno = 1018 (0x3fa), region = 28 }
  0x49   : > { %p3521_p6 = scmp.eq.s32.totalorder %s1825_s0, 0 }
  0x4b   : > { %1746 = dma.done.wait (%p3521_p6), [#allocation5], 8192   ;;  %p3522_p7 = pmov %p3521_p6 }
  0x4c   : > { %s1930_s19 = sand.u32 1, %s1763_s16   ;;  %p3523_p4 = scmp.ne.s32.totalorder %s3513_s20, 0 }
  0x4d   : > { %1748 = vsyncadd (%p3522_p7), [#allocation5], 4294959104  ;;  %s1557_s24 = sshll.u32 %s1930_s19, 8  ;;  %s159_s27 = scalar_lea.sflag [#allocation8], %s1930_s19 }
  0x4e   : > { %s1936_s30 = scalar_lea.vmem [#allocation7], %s1557_s24 }
  0x4f   : > { %1750 = dma.done.wait (%p3523_p4), %s159_s27, 4096  }
  0x50   : > { %1752 = vsyncadd (%p3523_p4), %s159_s27, 4294963200  ;;  %v1942_v0 = vld [vmem:[#allocation4 + $0xf8] sm:$0xff]  ;;  %v1944_v1 = vld [vmem:[#allocation4 + $0xf0] sm:$0xff]  ;;  %s281_s20 = sld [smem:[#allocation3]]  ;;  %s3054_s25 = scalar_lea.vmem [#allocation9], %s1557_s24 }
  0x51   : > { %v1946_v2 = vld [vmem:[#allocation4 + $0xe8] sm:$0xff]  ;;  %315 = vmatprep.subr.mxu0 %v1942_v0  ;;  %v1949_v3 = vld [vmem:[#allocation4 + $0xe0] sm:$0xff]  ;;  %542 = vmatprep.subr.mxu1 %v1942_v0  ;;  %v1953_v4 = vld [vmem:[#allocation4 + $0xd8] sm:$0xff]  ;;  %s1559_s22 = sld [smem:[#allocation3 + $0x1]]  ;;  %s1572_s28 = sshll.u32 %s1825_s0, 12 }
  0x52   : > { %316 = vmatpush1.msra.mxu0 %v1944_v1  ;;  %543 = vmatpush1.msra.mxu1 %v1944_v1  ;;  %v1957_v5 = vld [vmem:[#allocation4 + $0xd0] sm:$0xff]  ;;  %v1961_v6 = vld [vmem:[#allocation4 + $0xc8] sm:$0xff]  ;;  %v1965_v7 = vld [vmem:[#allocation4 + $0xc0] sm:$0xff]  ;;  %s2894_s4 = sld [smem:[#allocation3 + $0x2]]  ;;  %s1462_s29 = sshll.u32 %s3054_s25, 4  ;;  %s3287_s29 = int_to_ptr.vmem [resolvable:$true] %s1462_s29 }
  0x53   : > { %317 = vmatprep.subr.mxu0 %v1946_v2  ;;  %544 = vmatprep.subr.mxu1 %v1946_v2  ;;  %v1969_v8 = vld [vmem:[#allocation4 + $0xb8] sm:$0xff]  ;;  %v1973_v9 = vld [vmem:[#allocation4 + $0xb0] sm:$0xff]  ;;  %v1977_v10 = vld [vmem:[#allocation4 + $0xa8] sm:$0xff]  ;;  %s2912_s14 = sld [smem:[#allocation3 + $0x3]]  ;;  %s3285_s10 = scalar_lea.hbm %s3335_s3, %s1572_s28 }
  0x54   : > { %318 = vmatpush1.msra.mxu0 %v1949_v3  ;;  %545 = vmatpush1.msra.mxu1 %v1949_v3  ;;  %v1981_v11 = vld [vmem:[#allocation4 + $0xa0] sm:$0xff]  ;;  %v1985_v12 = vld [vmem:[#allocation4 + $0x98] sm:$0xff]  ;;  %v1989_v13 = vld [vmem:[#allocation4 + $0x90] sm:$0xff]  ;;  %s2946_s23 = sld [smem:[#allocation3 + $0x4]]  ;;  %s1448_s0 = scalar_lea.sflag [#allocation6], %s1930_s19 }
  0x55   : > { %319 = vmatprep.subr.mxu0 %v1953_v4  ;;  %546 = vmatprep.subr.mxu1 %v1953_v4  ;;  %v1993_v14 = vld [vmem:[#allocation4 + $0x88] sm:$0xff]  ;;  %v1997_v15 = vld [vmem:[#allocation4 + $0x80] sm:$0xff]  ;;  %v2001_v16 = vld [vmem:[#allocation4 + $0x78] sm:$0xff]  ;;  %s1701_s9 = scalar_lea.vmem %s3287_s29, 4096  ;;  %p3762_p3 = scmp.ne.s32.totalorder %s3518_s8, 0 }
  0x56   : > { %320 = vmatpush1.msra.mxu0 %v1957_v5  ;;  %547 = vmatpush1.msra.mxu1 %v1957_v5  ;;  %v2005_v17 = vld [vmem:[#allocation4 + $0x70] sm:$0xff]  ;;  %v2009_v18 = vld [vmem:[#allocation4 + $0x68] sm:$0xff]  ;;  %v2013_v19 = vld [vmem:[#allocation4 + $0x60] sm:$0xff]  ;;  %p1702_p8 = scmp.ne.s32.totalorder %s3287_s29, %s1701_s9  ;;  %s1778_s11 = smov [#allocation9]  }
  0x57   : > { %321 = vmatprep.subr.mxu0 %v1961_v6  ;;  %548 = vmatprep.subr.mxu1 %v1961_v6  ;;  %v2017_v20 = vld [vmem:[#allocation4 + $0x58] sm:$0xff]  ;;  %v2021_v21 = vld [vmem:[#allocation4 + $0x50] sm:$0xff]  ;;  %v2025_v22 = vld [vmem:[#allocation4 + $0x48] sm:$0xff]  ;;  %s1705_s12 = sshll.u32 %s1778_s11, 4  ;;  %s1706_s12 = int_to_ptr.vmem [resolvable:$false] %s1705_s12 }
  0x58   : > { %322 = vmatpush1.msra.mxu0 %v1965_v7  ;;  %549 = vmatpush1.msra.mxu1 %v1965_v7  ;;  %v2029_v23 = vld [vmem:[#allocation4 + $0x40] sm:$0xff]  ;;  %v2032_v24 = vld [vmem:[%s1936_s30 + $0x8] sm:$0xff]  ;;  %v2036_v25 = vld [vmem:[#allocation4 + $0x38] sm:$0xff]  ;;  %p1703_p11 = pnand %p1702_p8, %p3762_p3  ;;  %s1707_s13 = scalar_lea.vmem %s1706_s12, 8192 }
  0x59   : > { %323 = vmatprep.subr.mxu0 %v1969_v8  ;;  %550 = vmatprep.subr.mxu1 %v1969_v8  ;;  %3524 = vst [vmem:[#allocation14_spill] sm:$0xff] %v2032_v24  ;;  %v2040_v26 = vld [vmem:[#allocation4 + $0x30] sm:$0xff]  ;;  %v2044_v27 = vld [vmem:[#allocation4 + $0x28] sm:$0xff]  ;;  %v2048_v28 = vld [vmem:[#allocation4 + $0x20] sm:$0xff]  ;;  %p1708_p10 = scmp.lt.s32.totalorder %s3287_s29, %s1706_s12  ;;  %p1709_p12 = scmp.lt.s32.totalorder %s1707_s13, %s1701_s9 }
  0x5a   : > { %324 = vmatpush1.msra.mxu0 %v1973_v9  ;;  %551 = vmatpush1.msra.mxu1 %v1973_v9  ;;  %v2052_v29 = vld [vmem:[#allocation4 + $0x18] sm:$0xff]  ;;  %v2056_v30 = vld [vmem:[#allocation4 + $0x10] sm:$0xff]  ;;  %v2060_v31 = vld [vmem:[#allocation4 + $0x8] sm:$0xff]  ;;  %p1704_p9 = pneg %p1703_p11 }
  0x5b   : > { %325 = vmatprep.subr.mxu0 %v1977_v10  ;;  %552 = vmatprep.subr.mxu1 %v1977_v10  ;;  %v2064_v32 = vld [vmem:[#allocation4] sm:$0xff]  ;;  %v2068_v33 = vld [vmem:[#allocation4 + $0x1f8] sm:$0xff]  ;;  %v2072_v34 = vld [vmem:[#allocation4 + $0x1f0] sm:$0xff]  ;;  %p1710_p13 = por %p1709_p12, %p1708_p10 }
  0x5c   : > { %326 = vmatpush1.msra.mxu0 %v1981_v11  ;;  %553 = vmatpush1.msra.mxu1 %v1981_v11  ;;  %v2076_v35 = vld [vmem:[#allocation4 + $0x1e8] sm:$0xff]  ;;  %v2080_v36 = vld [vmem:[#allocation4 + $0x1e0] sm:$0xff]  ;;  %v2084_v37 = vld [vmem:[#allocation4 + $0x1d8] sm:$0xff] }
  0x5d   : > { %327 = vmatprep.subr.mxu0 %v1985_v12  ;;  %554 = vmatprep.subr.mxu1 %v1985_v12  ;;  %v2088_v38 = vld [vmem:[#allocation4 + $0x1d0] sm:$0xff]  ;;  %v2092_v39 = vld [vmem:[#allocation4 + $0x1c8] sm:$0xff]  ;;  %v2096_v40 = vld [vmem:[#allocation4 + $0x1c0] sm:$0xff]  ;;  %p1711_p0 = pnand %p1710_p13, %p1704_p9 }
  0x5e   : > { %328 = vmatpush1.msra.mxu0 %v1989_v13  ;;  %555 = vmatpush1.msra.mxu1 %v1989_v13  ;;  %v2100_v41 = vld [vmem:[#allocation4 + $0x1b8] sm:$0xff]  ;;  %v2104_v42 = vld [vmem:[#allocation4 + $0x1b0] sm:$0xff]  ;;  %v2108_v43 = vld [vmem:[#allocation4 + $0x1a8] sm:$0xff] }
  0x5f   : > { %329 = vmatprep.subr.mxu0 %v1993_v14  ;;  %556 = vmatprep.subr.mxu1 %v1993_v14  ;;  %v2112_v44 = vld [vmem:[#allocation4 + $0x1a0] sm:$0xff]  ;;  %v2116_v45 = vld [vmem:[#allocation4 + $0x198] sm:$0xff]  ;;  %v2120_v46 = vld [vmem:[#allocation4 + $0x190] sm:$0xff] }
  0x60   : > { %330 = vmatpush1.msra.mxu0 %v1997_v15  ;;  %557 = vmatpush1.msra.mxu1 %v1997_v15  ;;  %v2124_v47 = vld [vmem:[#allocation4 + $0x188] sm:$0xff]  ;;  %v2128_v48 = vld [vmem:[#allocation4 + $0x180] sm:$0xff]  ;;  %v2132_v49 = vld [vmem:[#allocation4 + $0x178] sm:$0xff] }
  0x61   : > { %331 = vmatprep.subr.mxu0 %v2001_v16  ;;  %558 = vmatprep.subr.mxu1 %v2001_v16  ;;  %v2136_v50 = vld [vmem:[#allocation4 + $0x170] sm:$0xff]  ;;  %v2140_v51 = vld [vmem:[#allocation4 + $0x168] sm:$0xff]  ;;  %v2144_v52 = vld [vmem:[#allocation4 + $0x160] sm:$0xff] }
  0x62   : > { %332 = vmatpush1.msra.mxu0 %v2005_v17  ;;  %559 = vmatpush1.msra.mxu1 %v2005_v17  ;;  %v2148_v53 = vld [vmem:[#allocation4 + $0x158] sm:$0xff]  ;;  %v2152_v54 = vld [vmem:[#allocation4 + $0x150] sm:$0xff]  ;;  %v2156_v55 = vld [vmem:[#allocation4 + $0x148] sm:$0xff] }
  0x63   : > { %333 = vmatprep.subr.mxu0 %v2009_v18  ;;  %560 = vmatprep.subr.mxu1 %v2009_v18  ;;  %3525 = vst [vmem:[#allocation15_spill] sm:$0xff] %v2148_v53  ;;  %3526 = vst [vmem:[#allocation16_spill] sm:$0xff] %v2152_v54  ;;  %v2160_v56 = vld [vmem:[#allocation4 + $0x140] sm:$0xff]  ;;  %v2164_v57 = vld [vmem:[#allocation4 + $0x138] sm:$0xff] }
  0x64   : > { %334 = vmatpush1.msra.mxu0 %v2013_v19  ;;  %561 = vmatpush1.msra.mxu1 %v2013_v19  ;;  %3527 = vst [vmem:[#allocation17_spill] sm:$0xff] %v2164_v57  ;;  %v2168_v58 = vld [vmem:[#allocation4 + $0x130] sm:$0xff]  ;;  %v2172_v59 = vld [vmem:[#allocation4 + $0x128] sm:$0xff]  ;;  %v2176_v60 = vld [vmem:[#allocation4 + $0x120] sm:$0xff] }
  0x65   : > { %335 = vmatprep.subr.mxu0 %v2017_v20  ;;  %562 = vmatprep.subr.mxu1 %v2017_v20  ;;  %3528 = vst [vmem:[#allocation18_spill] sm:$0xff] %v2168_v58  ;;  %3529 = vst [vmem:[#allocation19_spill] sm:$0xff] %v2176_v60  ;;  %v2180_v61 = vld [vmem:[#allocation4 + $0x118] sm:$0xff]  ;;  %v2184_v62 = vld [vmem:[#allocation4 + $0x110] sm:$0xff] }
  0x66   : > { %336 = vmatpush1.msra.mxu0 %v2021_v21  ;;  %379 = vmatprep.mubr.f32.mxu0 %v2032_v24  ;;  %3530 = vst [vmem:[#allocation20_spill] sm:$0xff] %v2180_v61  ;;  %v2188_v63 = vld [vmem:[#allocation4 + $0x108] sm:$0xff]  ;;  %v2192_v24 = vld [vmem:[#allocation4 + $0x100] sm:$0xff] }
  0x67   : > { %337 = vmatprep.subr.mxu0 %v2025_v22  ;;  %563 = vmatpush1.msra.mxu1 %v2021_v21  ;;  %3531 = vst [vmem:[#allocation21_spill] sm:$0xff] %v2192_v24 }
  0x68   : > { %338 = vmatpush1.msra.mxu0 %v2029_v23  ;;  %564 = vmatprep.subr.mxu1 %v2025_v22 }
  0x69   : > { %339 = vmatprep.subr.mxu0 %v2036_v25  ;;  %565 = vmatpush1.msra.mxu1 %v2029_v23 }
  0x6a   : > { %340 = vmatpush1.msra.mxu0 %v2040_v26  ;;  %566 = vmatprep.subr.mxu1 %v2036_v25 }
  0x6b   : > { %341 = vmatprep.subr.mxu0 %v2044_v27  ;;  %567 = vmatpush1.msra.mxu1 %v2040_v26 }
  0x6c   : > { %342 = vmatpush1.msra.mxu0 %v2048_v28  ;;  %568 = vmatprep.subr.mxu1 %v2044_v27 }
  0x6d   : > { %343 = vmatprep.subr.mxu0 %v2052_v29  ;;  %569 = vmatpush1.msra.mxu1 %v2048_v28 }
  0x6e   : > { %344 = vmatpush1.msra.mxu0 %v2056_v30  ;;  %570 = vmatprep.subr.mxu1 %v2052_v29 }
  0x6f   : > { %345 = vmatprep.subr.mxu0 %v2060_v31  ;;  %571 = vmatpush1.msra.mxu1 %v2056_v30 }
  0x70   : > { %346 = vmatpush1.msra.mxu0 %v2064_v32  ;;  %572 = vmatprep.subr.mxu1 %v2060_v31 }
  0x71   : > { %347 = vmatprep.subr.mxu0 %v2068_v33  ;;  %573 = vmatpush1.msra.mxu1 %v2064_v32 }
  0x72   : > { %348 = vmatpush2.msra.mxu0 %v2072_v34  ;;  %574 = vmatprep.subr.mxu1 %v2068_v33 }
  0x73   : > { %349 = vmatprep.subr.mxu0 %v2076_v35  ;;  %575 = vmatpush2.msra.mxu1 %v2072_v34 }
  0x74   : > { %350 = vmatpush2.msra.mxu0 %v2080_v36  ;;  %576 = vmatprep.subr.mxu1 %v2076_v35 }
  0x75   : > { %351 = vmatprep.subr.mxu0 %v2084_v37  ;;  %577 = vmatpush2.msra.mxu1 %v2080_v36 }
  0x76   : > { %352 = vmatpush2.msra.mxu0 %v2088_v38  ;;  %578 = vmatprep.subr.mxu1 %v2084_v37 }
  0x77   : > { %353 = vmatprep.subr.mxu0 %v2092_v39  ;;  %579 = vmatpush2.msra.mxu1 %v2088_v38 }
  0x78   : > { %354 = vmatpush2.msra.mxu0 %v2096_v40  ;;  %580 = vmatprep.subr.mxu1 %v2092_v39 }
  0x79   : > { %355 = vmatprep.subr.mxu0 %v2100_v41  ;;  %581 = vmatpush2.msra.mxu1 %v2096_v40 }
  0x7a   : > { %356 = vmatpush2.msra.mxu0 %v2104_v42  ;;  %582 = vmatprep.subr.mxu1 %v2100_v41 }
  0x7b   : > { %357 = vmatprep.subr.mxu0 %v2108_v43  ;;  %583 = vmatpush2.msra.mxu1 %v2104_v42 }
  0x7c   : > { %358 = vmatpush2.msra.mxu0 %v2112_v44  ;;  %584 = vmatprep.subr.mxu1 %v2108_v43 }
  0x7d   : > { %359 = vmatprep.subr.mxu0 %v2116_v45  ;;  %585 = vmatpush2.msra.mxu1 %v2112_v44 }
  0x7e   : > { %360 = vmatpush2.msra.mxu0 %v2120_v46  ;;  %586 = vmatprep.subr.mxu1 %v2116_v45 }
  0x7f   : > { %361 = vmatprep.subr.mxu0 %v2124_v47  ;;  %587 = vmatpush2.msra.mxu1 %v2120_v46 }
  0x80   : > { %362 = vmatpush2.msra.mxu0 %v2128_v48  ;;  %588 = vmatprep.subr.mxu1 %v2124_v47 }
  0x81   : > { %363 = vmatprep.subr.mxu0 %v2132_v49  ;;  %589 = vmatpush2.msra.mxu1 %v2128_v48 }
  0x82   : > { %364 = vmatpush2.msra.mxu0 %v2136_v50  ;;  %590 = vmatprep.subr.mxu1 %v2132_v49 }
  0x83   : > { %365 = vmatprep.subr.mxu0 %v2140_v51  ;;  %591 = vmatpush2.msra.mxu1 %v2136_v50 }
  0x84   : > { %366 = vmatpush2.msra.mxu0 %v2144_v52  ;;  %592 = vmatprep.subr.mxu1 %v2140_v51 }
  0x85   : > { %367 = vmatprep.subr.mxu0 %v2148_v53  ;;  %593 = vmatpush2.msra.mxu1 %v2144_v52 }
  0x86   : > { %368 = vmatpush2.msra.mxu0 %v2152_v54  ;;  %594 = vmatprep.subr.mxu1 %v2148_v53 }
  0x87   : > { %369 = vmatprep.subr.mxu0 %v2156_v55  ;;  %595 = vmatpush2.msra.mxu1 %v2152_v54 }
  0x88   : > { %370 = vmatpush2.msra.mxu0 %v2160_v56  ;;  %596 = vmatprep.subr.mxu1 %v2156_v55 }
  0x89   : > { %371 = vmatprep.subr.mxu0 %v2164_v57  ;;  %597 = vmatpush2.msra.mxu1 %v2160_v56 }
  0x8a   : > { %372 = vmatpush2.msra.mxu0 %v2168_v58  ;;  %598 = vmatprep.subr.mxu1 %v2164_v57  ;;  %v2197_v57 = vld [vmem:[%s1936_s30] sm:$0xff] }
  0x8b   : > { %373 = vmatprep.subr.mxu0 %v2172_v59  ;;  %599 = vmatpush2.msra.mxu1 %v2168_v58  ;;  %3532 = vst [vmem:[#allocation22_spill] sm:$0xff] %v2197_v57  ;;  %v2202_v58 = vld [vmem:[%s1936_s30 + $0x18] sm:$0xff] }
  0x8c   : > { %374 = vmatpush2.msra.mxu0 %v2176_v60  ;;  %600 = vmatprep.subr.mxu1 %v2172_v59  ;;  %3533 = vst [vmem:[#allocation23_spill] sm:$0xff] %v2202_v58 }
  0x8d   : > { %375 = vmatprep.subr.mxu0 %v2180_v61  ;;  %601 = vmatpush2.msra.mxu1 %v2176_v60  ;;  %v2211_v60 = vld [vmem:[%s1936_s30 + $0x10] sm:$0xff] }
  0x8e   : > { %376 = vmatpush2.msra.mxu0 %v2184_v62  ;;  %602 = vmatprep.subr.mxu1 %v2180_v61  ;;  %3534 = vst [vmem:[#allocation24_spill] sm:$0xff] %v2211_v60  ;;  %v2215_v61 = vld [vmem:[%s1936_s30 + $0x28] sm:$0xff] }
  0x8f   : > { %377 = vmatprep.subr.mxu0 %v2188_v63  ;;  %603 = vmatpush2.msra.mxu1 %v2184_v62  ;;  %3535 = vst [vmem:[#allocation25_spill] sm:$0xff] %v2215_v61 }
  0x90   : > { %378 = vmatpush2.msra.mxu0 %v2192_v24  ;;  %604 = vmatprep.subr.mxu1 %v2188_v63 }
  0x91   : > { %380 = vmatmul.mubr.f32.vlgmr.msra.gmra.mxu0 %v2197_v57  ;;  %605 = vmatpush2.msra.mxu1 %v2192_v24  ;;  %v2223_v57 = vld [vmem:[%s1936_s30 + $0x20] sm:$0xff] }
  0x92   : > { %385 = vmatprep.mubr.f32.mxu0 %v2202_v58  ;;  %833 = vmatprep.subr.mxu0 %v1942_v0  ;;  %3536 = vst [vmem:[#allocation26_spill] sm:$0xff] %v2223_v57  ;;  %v2227_v58 = vld [vmem:[%s1936_s30 + $0x38] sm:$0xff] }
  0x93   : > { %834 = vmatpush1.msra.mxu0 %v1944_v1  ;;  %1124 = vmatprep.subr.mxu1 %v1942_v0  ;;  %3537 = vst [vmem:[#allocation27_spill] sm:$0xff] %v2227_v58  ;;  %v2235_v0 = vld [vmem:[%s1936_s30 + $0x30] sm:$0xff] }
  0x94   : > { %835 = vmatprep.subr.mxu0 %v1946_v2  ;;  %3538 = vst [vmem:[#allocation28_spill] sm:$0xff] %v2235_v0 }
  0x95   : > { %386 = vmatmul.mubr.f32.gmra.mxu0 %v2211_v60  ;;  %v3564_v60 = vld [vmem:[#allocation18_spill] sm:$0xff] }
  0x96   : > { %391 = vmatprep.mubr.f32.mxu0 %v2215_v61  ;;  %836 = vmatpush1.msra.mxu0 %v1949_v3  ;;  %v2239_v61 = vld [vmem:[%s1936_s30 + $0x48] sm:$0xff] }
  0x97   : > { %837 = vmatprep.subr.mxu0 %v1953_v4  ;;  %3539 = vst [vmem:[#allocation29_spill] sm:$0xff] %v2239_v61 }
  0x98   : > { %838 = vmatpush1.msra.mxu0 %v1957_v5 }
  0x99   : > { %392 = vmatmul.mubr.f32.gmra.mxu0 %v2223_v57  ;;  %839 = vmatprep.subr.mxu0 %v1961_v6  ;;  %v2247_v57 = vld [vmem:[%s1936_s30 + $0x40] sm:$0xff] }
  0x9a   : > { %397 = vmatprep.mubr.f32.mxu0 %v2227_v58  ;;  %840 = vmatpush1.msra.mxu0 %v1965_v7  ;;  %3540 = vst [vmem:[#allocation30_spill] sm:$0xff] %v2247_v57  ;;  %v2251_v58 = vld [vmem:[%s1936_s30 + $0x58] sm:$0xff] }
  0x9b   : > { %841 = vmatprep.subr.mxu0 %v1969_v8  ;;  %3541 = vst [vmem:[#allocation31_spill] sm:$0xff] %v2251_v58 }
  0x9c   : > { %842 = vmatpush1.msra.mxu0 %v1973_v9 }
  0x9d   : > { %398 = vmatmul.mubr.f32.gmra.mxu0 %v2235_v0  ;;  %843 = vmatprep.subr.mxu0 %v1977_v10  ;;  %v2259_v0 = vld [vmem:[%s1936_s30 + $0x50] sm:$0xff] }
  0x9e   : > { %403 = vmatprep.mubr.f32.mxu0 %v2239_v61  ;;  %844 = vmatpush1.msra.mxu0 %v1981_v11  ;;  %3542 = vst [vmem:[#allocation32_spill] sm:$0xff] %v2259_v0  ;;  %v2263_v61 = vld [vmem:[%s1936_s30 + $0x68] sm:$0xff] }
  0x9f   : > { %845 = vmatprep.subr.mxu0 %v1985_v12  ;;  %3543 = vst [vmem:[#allocation33_spill] sm:$0xff] %v2263_v61 }
  0xa0   : > { %846 = vmatpush1.msra.mxu0 %v1989_v13 }
  0xa1   : > { %404 = vmatmul.mubr.f32.gmra.mxu0 %v2247_v57  ;;  %847 = vmatprep.subr.mxu0 %v1993_v14  ;;  %v2271_v57 = vld [vmem:[%s1936_s30 + $0x60] sm:$0xff] }
  0xa2   : > { %409 = vmatprep.mubr.f32.mxu0 %v2251_v58  ;;  %848 = vmatpush1.msra.mxu0 %v1997_v15  ;;  %3544 = vst [vmem:[#allocation34_spill] sm:$0xff] %v2271_v57  ;;  %v2275_v58 = vld [vmem:[%s1936_s30 + $0x78] sm:$0xff] }
  0xa3   : > { %849 = vmatprep.subr.mxu0 %v2001_v16  ;;  %3545 = vst [vmem:[#allocation35_spill] sm:$0xff] %v2275_v58 }
  0xa4   : > { %850 = vmatpush1.msra.mxu0 %v2005_v17 }
  0xa5   : > { %410 = vmatmul.mubr.f32.gmra.mxu0 %v2259_v0  ;;  %851 = vmatprep.subr.mxu0 %v2009_v18  ;;  %v2283_v0 = vld [vmem:[%s1936_s30 + $0x70] sm:$0xff] }
  0xa6   : > { %415 = vmatprep.mubr.f32.mxu0 %v2263_v61  ;;  %852 = vmatpush1.msra.mxu0 %v2013_v19  ;;  %3546 = vst [vmem:[#allocation36_spill] sm:$0xff] %v2283_v0  ;;  %v2287_v61 = vld [vmem:[%s1936_s30 + $0x88] sm:$0xff] }
  0xa7   : > { %853 = vmatprep.subr.mxu0 %v2017_v20  ;;  %3547 = vst [vmem:[#allocation37_spill] sm:$0xff] %v2287_v61 }
  0xa8   : > { %854 = vmatpush1.msra.mxu0 %v2021_v21 }
  0xa9   : > { %416 = vmatmul.mubr.f32.gmra.mxu0 %v2271_v57  ;;  %855 = vmatprep.subr.mxu0 %v2025_v22  ;;  %v2295_v57 = vld [vmem:[%s1936_s30 + $0x80] sm:$0xff] }
  0xaa   : > { %421 = vmatprep.mubr.f32.mxu0 %v2275_v58  ;;  %856 = vmatpush1.msra.mxu0 %v2029_v23  ;;  %3548 = vst [vmem:[#allocation38_spill] sm:$0xff] %v2295_v57  ;;  %v2299_v58 = vld [vmem:[%s1936_s30 + $0x98] sm:$0xff] }
  0xab   : > { %857 = vmatprep.subr.mxu0 %v2036_v25  ;;  %3549 = vst [vmem:[#allocation39_spill] sm:$0xff] %v2299_v58 }
  0xac   : > { %858 = vmatpush1.msra.mxu0 %v2040_v26 }
  0xad   : > { %422 = vmatmul.mubr.f32.gmra.mxu0 %v2283_v0  ;;  %859 = vmatprep.subr.mxu0 %v2044_v27  ;;  %v2307_v0 = vld [vmem:[%s1936_s30 + $0x90] sm:$0xff] }
  0xae   : > { %427 = vmatprep.mubr.f32.mxu0 %v2287_v61  ;;  %860 = vmatpush1.msra.mxu0 %v2048_v28  ;;  %3550 = vst [vmem:[#allocation40_spill] sm:$0xff] %v2307_v0  ;;  %v2311_v61 = vld [vmem:[%s1936_s30 + $0xa8] sm:$0xff] }
  0xaf   : > { %861 = vmatprep.subr.mxu0 %v2052_v29  ;;  %3551 = vst [vmem:[#allocation41_spill] sm:$0xff] %v2311_v61 }
  0xb0   : > { %862 = vmatpush1.msra.mxu0 %v2056_v30 }
  0xb1   : > { %428 = vmatmul.mubr.f32.gmra.mxu0 %v2295_v57  ;;  %863 = vmatprep.subr.mxu0 %v2060_v31  ;;  %v2319_v57 = vld [vmem:[%s1936_s30 + $0xa0] sm:$0xff] }
  0xb2   : > { %433 = vmatprep.mubr.f32.mxu0 %v2299_v58  ;;  %864 = vmatpush1.msra.mxu0 %v2064_v32  ;;  %3552 = vst [vmem:[#allocation42_spill] sm:$0xff] %v2319_v57  ;;  %v2323_v58 = vld [vmem:[%s1936_s30 + $0xb8] sm:$0xff] }
  0xb3   : > { %865 = vmatprep.subr.mxu0 %v2068_v33  ;;  %3553 = vst [vmem:[#allocation43_spill] sm:$0xff] %v2323_v58 }
  0xb4   : > { %866 = vmatpush2.msra.mxu0 %v2072_v34 }
  0xb5   : > { %434 = vmatmul.mubr.f32.gmra.mxu0 %v2307_v0  ;;  %867 = vmatprep.subr.mxu0 %v2076_v35  ;;  %v2331_v0 = vld [vmem:[%s1936_s30 + $0xb0] sm:$0xff] }
  0xb6   : > { %439 = vmatprep.mubr.f32.mxu0 %v2311_v61  ;;  %868 = vmatpush2.msra.mxu0 %v2080_v36  ;;  %3554 = vst [vmem:[#allocation44_spill] sm:$0xff] %v2331_v0  ;;  %v2335_v61 = vld [vmem:[%s1936_s30 + $0xc8] sm:$0xff] }
  0xb7   : > { %869 = vmatprep.subr.mxu0 %v2084_v37  ;;  %3555 = vst [vmem:[#allocation45_spill] sm:$0xff] %v2335_v61 }
  0xb8   : > { %870 = vmatpush2.msra.mxu0 %v2088_v38 }
  0xb9   : > { %440 = vmatmul.mubr.f32.gmra.mxu0 %v2319_v57  ;;  %871 = vmatprep.subr.mxu0 %v2092_v39  ;;  %v2343_v57 = vld [vmem:[%s1936_s30 + $0xc0] sm:$0xff] }
  0xba   : > { %445 = vmatprep.mubr.f32.mxu0 %v2323_v58  ;;  %872 = vmatpush2.msra.mxu0 %v2096_v40  ;;  %3556 = vst [vmem:[#allocation46_spill] sm:$0xff] %v2343_v57  ;;  %v2347_v58 = vld [vmem:[%s1936_s30 + $0xd8] sm:$0xff] }
  0xbb   : > { %873 = vmatprep.subr.mxu0 %v2100_v41  ;;  %3557 = vst [vmem:[#allocation47_spill] sm:$0xff] %v2347_v58 }
  0xbc   : > { %874 = vmatpush2.msra.mxu0 %v2104_v42 }
  0xbd   : > { %446 = vmatmul.mubr.f32.gmra.mxu0 %v2331_v0  ;;  %875 = vmatprep.subr.mxu0 %v2108_v43  ;;  %v2355_v0 = vld [vmem:[%s1936_s30 + $0xd0] sm:$0xff] }
  0xbe   : > { %451 = vmatprep.mubr.f32.mxu0 %v2335_v61  ;;  %876 = vmatpush2.msra.mxu0 %v2112_v44  ;;  %3558 = vst [vmem:[#allocation48_spill] sm:$0xff] %v2355_v0  ;;  %v2359_v61 = vld [vmem:[%s1936_s30 + $0xe8] sm:$0xff] }
  0xbf   : > { %877 = vmatprep.subr.mxu0 %v2116_v45  ;;  %3559 = vst [vmem:[#allocation49_spill] sm:$0xff] %v2359_v61 }
  0xc0   : > { %878 = vmatpush2.msra.mxu0 %v2120_v46 }
  0xc1   : > { %452 = vmatmul.mubr.f32.gmra.mxu0 %v2343_v57  ;;  %879 = vmatprep.subr.mxu0 %v2124_v47  ;;  %v2367_v57 = vld [vmem:[%s1936_s30 + $0xe0] sm:$0xff] }
  0xc2   : > { %457 = vmatprep.mubr.f32.mxu0 %v2347_v58  ;;  %880 = vmatpush2.msra.mxu0 %v2128_v48  ;;  %3560 = vst [vmem:[#allocation50_spill] sm:$0xff] %v2367_v57  ;;  %v2371_v58 = vld [vmem:[%s1936_s30 + $0xf8] sm:$0xff] }
  0xc3   : > { %881 = vmatprep.subr.mxu0 %v2132_v49  ;;  %3561 = vst [vmem:[#allocation51_spill] sm:$0xff] %v2371_v58 }
  0xc4   : > { %882 = vmatpush2.msra.mxu0 %v2136_v50 }
  0xc5   : > { %458 = vmatmul.mubr.f32.gmra.mxu0 %v2355_v0  ;;  %883 = vmatprep.subr.mxu0 %v2140_v51  ;;  %v2379_v0 = vld [vmem:[%s1936_s30 + $0xf0] sm:$0xff] }
  0xc6   : > { %463 = vmatprep.mubr.f32.mxu0 %v2359_v61  ;;  %884 = vmatpush2.msra.mxu0 %v2144_v52  ;;  %3562 = vst [vmem:[#allocation52_spill] sm:$0xff] %v2379_v0  ;;  %v3563_v61 = vld [vmem:[#allocation17_spill] sm:$0xff] }
  0xc7   : > { %885 = vmatprep.subr.mxu0 %v2148_v53  ;;  %v3565_v53 = vld [vmem:[#allocation19_spill] sm:$0xff] }
  0xc8   : > { %886 = vmatpush2.msra.mxu0 %v2152_v54  ;;  %v3566_v54 = vld [vmem:[#allocation20_spill] sm:$0xff] }
  0xc9   : > { %464 = vmatmul.mubr.f32.gmra.mxu0 %v2367_v57  ;;  %887 = vmatprep.subr.mxu0 %v2156_v55 }
  0xca   : > { %469 = vmatprep.mubr.f32.mxu0 %v2371_v58  ;;  %888 = vmatpush2.msra.mxu0 %v2160_v56 }
  0xcb   : > { %889 = vmatprep.subr.mxu0 %v3563_v61 }
  0xcc   : > { %890 = vmatpush2.msra.mxu0 %v3564_v60 }
  0xcd   : > { %470 = vmatmul.mubr.f32.gmra.mxu0 %v2379_v0  ;;  %891 = vmatprep.subr.mxu0 %v2172_v59 }
  0xce   : > { %892 = vmatpush2.msra.mxu0 %v3565_v53 }
  0xcf   : > { %893 = vmatprep.subr.mxu0 %v3566_v54 }
  0xd0   : > { %894 = vmatpush2.msra.mxu0 %v2184_v62 }
  0xd1   : > { %895 = vmatprep.subr.mxu0 %v2188_v63 }
  0xd2   : > { %896 = vmatpush2.msra.mxu0 %v2192_v24 }
 0x151   : > { %v2391_v58 = vpop.f32.mrf.mxu0 }
 0x153   : > { %v2393_v57 = vpop.f32.mrf.mxu0 }
 0x154   : > { %3567 = vst [vmem:[#allocation17_spill] sm:$0xff] %v2393_v57  ;;  %606 = vmatprep.mubr.f32.mxu1 %v2393_v57 }
 0x155   : > { %v2396_v60 = vpop.f32.mrf.mxu0  ;;  %607 = vmatmul.mubr.f32.vlgmr.msra.gmra.mxu1 %v2391_v58 }
 0x156   : > { %1125 = vmatpush1.msra.mxu1 %v1944_v1 }
 0x157   : > { %v2400_v0 = vpop.f32.mrf.mxu0  ;;  %1126 = vmatprep.subr.mxu1 %v1946_v2 }
 0x158   : > { %612 = vmatprep.mubr.f32.mxu1 %v2400_v0  ;;  %1127 = vmatpush1.msra.mxu1 %v1949_v3 }
 0x159   : > { %v2405_v24 = vpop.f32.mrf.mxu0  ;;  %613 = vmatmul.mubr.f32.gmra.mxu1 %v2396_v60  ;;  %1128 = vmatprep.subr.mxu1 %v1953_v4 }
 0x15a   : > { %1129 = vmatpush1.msra.mxu1 %v1957_v5 }
 0x15b   : > { %v2410_v57 = vpop.f32.mrf.mxu0  ;;  %1130 = vmatprep.subr.mxu1 %v1961_v6 }
 0x15c   : > { %618 = vmatprep.mubr.f32.mxu1 %v2410_v57  ;;  %1131 = vmatpush1.msra.mxu1 %v1965_v7 }
 0x15d   : > { %v2415_v1 = vpop.f32.mrf.mxu0  ;;  %619 = vmatmul.mubr.f32.gmra.mxu1 %v2405_v24  ;;  %1132 = vmatprep.subr.mxu1 %v1969_v8 }
 0x15e   : > { %1133 = vmatpush1.msra.mxu1 %v1973_v9 }
 0x15f   : > { %v2420_v2 = vpop.f32.mrf.mxu0  ;;  %1134 = vmatprep.subr.mxu1 %v1977_v10 }
 0x160   : > { %624 = vmatprep.mubr.f32.mxu1 %v2420_v2  ;;  %1135 = vmatpush1.msra.mxu1 %v1981_v11 }
 0x161   : > { %v2425_v3 = vpop.f32.mrf.mxu0  ;;  %625 = vmatmul.mubr.f32.gmra.mxu1 %v2415_v1  ;;  %1136 = vmatprep.subr.mxu1 %v1985_v12 }
 0x162   : > { %1137 = vmatpush1.msra.mxu1 %v1989_v13 }
 0x163   : > { %v2430_v4 = vpop.f32.mrf.mxu0  ;;  %1138 = vmatprep.subr.mxu1 %v1993_v14 }
 0x164   : > { %630 = vmatprep.mubr.f32.mxu1 %v2430_v4  ;;  %1139 = vmatpush1.msra.mxu1 %v1997_v15 }
 0x165   : > { %v2435_v5 = vpop.f32.mrf.mxu0  ;;  %631 = vmatmul.mubr.f32.gmra.mxu1 %v2425_v3  ;;  %1140 = vmatprep.subr.mxu1 %v2001_v16 }
 0x166   : > { %1141 = vmatpush1.msra.mxu1 %v2005_v17 }
 0x167   : > { %v2440_v6 = vpop.f32.mrf.mxu0  ;;  %1142 = vmatprep.subr.mxu1 %v2009_v18 }
 0x168   : > { %636 = vmatprep.mubr.f32.mxu1 %v2440_v6  ;;  %1143 = vmatpush1.msra.mxu1 %v2013_v19 }
 0x169   : > { %v2445_v7 = vpop.f32.mrf.mxu0  ;;  %637 = vmatmul.mubr.f32.gmra.mxu1 %v2435_v5  ;;  %1144 = vmatprep.subr.mxu1 %v2017_v20 }
 0x16a   : > { %1145 = vmatpush1.msra.mxu1 %v2021_v21 }
 0x16b   : > { %v2450_v8 = vpop.f32.mrf.mxu0  ;;  %1146 = vmatprep.subr.mxu1 %v2025_v22 }
 0x16c   : > { %642 = vmatprep.mubr.f32.mxu1 %v2450_v8  ;;  %1147 = vmatpush1.msra.mxu1 %v2029_v23 }
 0x16d   : > { %v2455_v9 = vpop.f32.mrf.mxu0  ;;  %643 = vmatmul.mubr.f32.gmra.mxu1 %v2445_v7  ;;  %1148 = vmatprep.subr.mxu1 %v2036_v25  ;;  %v3569_v25 = vld [vmem:[#allocation15_spill] sm:$0xff] }
 0x16e   : > { %1149 = vmatpush1.msra.mxu1 %v2040_v26  ;;  %v3570_v26 = vld [vmem:[#allocation16_spill] sm:$0xff] }
 0x16f   : > { %v2460_v10 = vpop.f32.mrf.mxu0  ;;  %1150 = vmatprep.subr.mxu1 %v2044_v27 }
 0x170   : > { %648 = vmatprep.mubr.f32.mxu1 %v2460_v10  ;;  %1151 = vmatpush1.msra.mxu1 %v2048_v28 }
 0x171   : > { %v2465_v11 = vpop.f32.mrf.mxu0  ;;  %649 = vmatmul.mubr.f32.gmra.mxu1 %v2455_v9  ;;  %1152 = vmatprep.subr.mxu1 %v2052_v29  ;;  %v3573_v29 = vld [vmem:[#allocation18_spill] sm:$0xff] }
 0x172   : > { %1153 = vmatpush1.msra.mxu1 %v2056_v30 }
 0x173   : > { %v2470_v12 = vpop.f32.mrf.mxu0  ;;  %1154 = vmatprep.subr.mxu1 %v2060_v31  ;;  %v3575_v31 = vld [vmem:[#allocation21_spill] sm:$0xff] }
 0x174   : > { %654 = vmatprep.mubr.f32.mxu1 %v2470_v12  ;;  %1155 = vmatpush1.msra.mxu1 %v2064_v32 }
 0x175   : > { %v2475_v13 = vpop.f32.mrf.mxu0  ;;  %655 = vmatmul.mubr.f32.gmra.mxu1 %v2465_v11  ;;  %1156 = vmatprep.subr.mxu1 %v2068_v33 }
 0x176   : > { %1157 = vmatpush2.msra.mxu1 %v2072_v34 }
 0x177   : > { %v2480_v14 = vpop.f32.mrf.mxu0  ;;  %1158 = vmatprep.subr.mxu1 %v2076_v35 }
 0x178   : > { %660 = vmatprep.mubr.f32.mxu1 %v2480_v14  ;;  %1159 = vmatpush2.msra.mxu1 %v2080_v36 }
 0x179   : > { %v2485_v15 = vpop.f32.mrf.mxu0  ;;  %661 = vmatmul.mubr.f32.gmra.mxu1 %v2475_v13  ;;  %1160 = vmatprep.subr.mxu1 %v2084_v37  ;;  %v3576_v37 = vld [vmem:[#allocation14_spill] sm:$0xff] }
 0x17a   : > { %1161 = vmatpush2.msra.mxu1 %v2088_v38 }
 0x17b   : > { %v2490_v16 = vpop.f32.mrf.mxu0  ;;  %1162 = vmatprep.subr.mxu1 %v2092_v39  ;;  %v3578_v39 = vld [vmem:[#allocation22_spill] sm:$0xff] }
 0x17c   : > { %666 = vmatprep.mubr.f32.mxu1 %v2490_v16  ;;  %1163 = vmatpush2.msra.mxu1 %v2096_v40 }
 0x17d   : > { %v2495_v17 = vpop.f32.mrf.mxu0  ;;  %667 = vmatmul.mubr.f32.gmra.mxu1 %v2485_v15  ;;  %1164 = vmatprep.subr.mxu1 %v2100_v41 }
 0x17e   : > { %1165 = vmatpush2.msra.mxu1 %v2104_v42 }
 0x17f   : > { %v2500_v18 = vpop.f32.mrf.mxu0  ;;  %1166 = vmatprep.subr.mxu1 %v2108_v43 }
 0x180   : > { %672 = vmatprep.mubr.f32.mxu1 %v2500_v18  ;;  %1167 = vmatpush2.msra.mxu1 %v2112_v44 }
 0x181   : > { %v2505_v19 = vpop.f32.mrf.mxu0  ;;  %673 = vmatmul.mubr.f32.gmra.mxu1 %v2495_v17  ;;  %1168 = vmatprep.subr.mxu1 %v2116_v45  ;;  %v3580_v45 = vld [vmem:[#allocation23_spill] sm:$0xff] }
 0x182   : > { %1169 = vmatpush2.msra.mxu1 %v2120_v46 }
 0x183   : > { %v2510_v20 = vpop.f32.mrf.mxu0  ;;  %1170 = vmatprep.subr.mxu1 %v2124_v47  ;;  %v3582_v47 = vld [vmem:[#allocation24_spill] sm:$0xff] }
 0x184   : > { %678 = vmatprep.mubr.f32.mxu1 %v2510_v20  ;;  %1171 = vmatpush2.msra.mxu1 %v2128_v48 }
 0x185   : > { %v2515_v21 = vpop.f32.mrf.mxu0  ;;  %679 = vmatmul.mubr.f32.gmra.mxu1 %v2505_v19  ;;  %1172 = vmatprep.subr.mxu1 %v2132_v49 }
 0x186   : > { %1173 = vmatpush2.msra.mxu1 %v2136_v50 }
 0x187   : > { %v2520_v22 = vpop.f32.mrf.mxu0  ;;  %1174 = vmatprep.subr.mxu1 %v2140_v51 }
 0x188   : > { %684 = vmatprep.mubr.f32.mxu1 %v2520_v22  ;;  %1175 = vmatpush2.msra.mxu1 %v2144_v52 }
 0x189   : > { %v2525_v23 = vpop.f32.mrf.mxu0  ;;  %685 = vmatmul.mubr.f32.gmra.mxu1 %v2515_v21  ;;  %1176 = vmatprep.subr.mxu1 %v3569_v25  ;;  %v3588_v25 = vld [vmem:[#allocation27_spill] sm:$0xff] }
 0x18a   : > { %3568 = vst [vmem:[#allocation19_spill] sm:$0xff] %v2525_v23  ;;  %1177 = vmatpush2.msra.mxu1 %v3570_v26 }
 0x18b   : > { %v2530_v27 = vpop.f32.mrf.mxu0  ;;  %1178 = vmatprep.subr.mxu1 %v2156_v55  ;;  %v3586_v55 = vld [vmem:[#allocation26_spill] sm:$0xff] }
 0x18c   : > { %3571 = vst [vmem:[#allocation20_spill] sm:$0xff] %v2530_v27  ;;  %690 = vmatprep.mubr.f32.mxu1 %v2530_v27  ;;  %1179 = vmatpush2.msra.mxu1 %v2160_v56 }
 0x18d   : > { %v2535_v28 = vpop.f32.mrf.mxu0  ;;  %691 = vmatmul.mubr.f32.gmra.mxu1 %v2525_v23  ;;  %1180 = vmatprep.subr.mxu1 %v3563_v61 }
 0x18e   : > { %3572 = vst [vmem:[#allocation15_spill] sm:$0xff] %v2535_v28  ;;  %1181 = vmatpush2.msra.mxu1 %v3573_v29  ;;  %v3590_v29 = vld [vmem:[#allocation28_spill] sm:$0xff] }
 0x18f   : > { %v2540_v30 = vpop.f32.mrf.mxu0  ;;  %1182 = vmatprep.subr.mxu1 %v2172_v59 }
 0x190   : > { %3574 = vst [vmem:[#allocation16_spill] sm:$0xff] %v2540_v30  ;;  %696 = vmatprep.mubr.f32.mxu1 %v2540_v30  ;;  %1183 = vmatpush2.msra.mxu1 %v3565_v53  ;;  %v3584_v53 = vld [vmem:[#allocation25_spill] sm:$0xff] }
 0x191   : > { %697 = vmatmul.mubr.f32.gmra.mxu1 %v2535_v28  ;;  %1184 = vmatprep.subr.mxu1 %v3566_v54 }
 0x192   : > { %1185 = vmatpush2.msra.mxu1 %v2184_v62 }
 0x193   : > { %1186 = vmatprep.subr.mxu1 %v2188_v63 }
 0x194   : > { %1187 = vmatpush2.msra.mxu1 %v3575_v31 }
 0x215   : > { %v608_v32 = vpop.f32.mrf.mxu1 }
 0x216   : > { %v703_v33 = vmul.f32 2.0, %v608_v32 }
 0x217   : > { %v610_v34 = vpop.f32.mrf.mxu1 }
 0x218   : > { %v704_v35 = vmul.f32 2.0, %v610_v34  ;;  %v2554_v40 = vsub.f32 %v703_v33, %v3578_v39  ;;  %v3594_v39 = vld [vmem:[#allocation30_spill] sm:$0xff] }
 0x219   : > { %v614_v36 = vpop.f32.mrf.mxu1 }
 0x21a   : > { %v2551_v38 = vsub.f32 %v704_v35, %v3576_v37  ;;  %3579 = vst [vmem:[#allocation21_spill] sm:$0xff] %v2554_v40  ;;  %v705_v41 = vmul.f32 2.0, %v614_v36  ;;  %v3592_v36 = vld [vmem:[#allocation29_spill] sm:$0xff] }
 0x21b   : > { %v616_v42 = vpop.f32.mrf.mxu1 }
 0x21c   : > { %3577 = vst [vmem:[#allocation18_spill] sm:$0xff] %v2551_v38  ;;  %v706_v43 = vmul.f32 2.0, %v616_v42  ;;  %897 = vmatprep.mubr.f32.mxu0 %v2551_v38  ;;  %v2562_v48 = vsub.f32 %v705_v41, %v3582_v47  ;;  %v3596_v47 = vld [vmem:[#allocation31_spill] sm:$0xff] }
 0x21d   : > { %v620_v44 = vpop.f32.mrf.mxu1  ;;  %898 = vmatmul.mubr.f32.vlgmr.msra.gmra.mxu0 %v2554_v40 }
 0x21e   : > { %v2559_v46 = vsub.f32 %v706_v43, %v3580_v45  ;;  %3583 = vst [vmem:[#allocation22_spill] sm:$0xff] %v2562_v48  ;;  %v707_v49 = vmul.f32 2.0, %v620_v44 }
 0x21f   : > { %v622_v50 = vpop.f32.mrf.mxu1 }
 0x220   : > { %3581 = vst [vmem:[#allocation14_spill] sm:$0xff] %v2559_v46  ;;  %v708_v51 = vmul.f32 2.0, %v622_v50  ;;  %903 = vmatprep.mubr.f32.mxu0 %v2559_v46  ;;  %v2570_v56 = vsub.f32 %v707_v49, %v3586_v55  ;;  %v3598_v50 = vld [vmem:[#allocation32_spill] sm:$0xff] }
 0x221   : > { %v626_v52 = vpop.f32.mrf.mxu1  ;;  %904 = vmatmul.mubr.f32.gmra.mxu0 %v2562_v48 }
 0x222   : > { %v2567_v54 = vsub.f32 %v708_v51, %v3584_v53  ;;  %3587 = vst [vmem:[#allocation24_spill] sm:$0xff] %v2570_v56  ;;  %v709_v59 = vmul.f32 2.0, %v626_v52 }
 0x223   : > { %v628_v61 = vpop.f32.mrf.mxu1 }
 0x224   : > { %3585 = vst [vmem:[#allocation23_spill] sm:$0xff] %v2567_v54  ;;  %v710_v62 = vmul.f32 2.0, %v628_v61  ;;  %909 = vmatprep.mubr.f32.mxu0 %v2567_v54  ;;  %v2578_v31 = vsub.f32 %v709_v59, %v3590_v29 }
 0x225   : > { %v632_v63 = vpop.f32.mrf.mxu1  ;;  %910 = vmatmul.mubr.f32.gmra.mxu0 %v2570_v56 }
 0x226   : > { %v2575_v26 = vsub.f32 %v710_v62, %v3588_v25  ;;  %3591 = vst [vmem:[#allocation26_spill] sm:$0xff] %v2578_v31  ;;  %v711_v32 = vmul.f32 2.0, %v632_v63  ;;  %v3600_v63 = vld [vmem:[#allocation33_spill] sm:$0xff] }
 0x227   : > { %v634_v33 = vpop.f32.mrf.mxu1 }
 0x228   : > { %3589 = vst [vmem:[#allocation25_spill] sm:$0xff] %v2575_v26  ;;  %v712_v34 = vmul.f32 2.0, %v634_v33  ;;  %915 = vmatprep.mubr.f32.mxu0 %v2575_v26  ;;  %v2586_v41 = vsub.f32 %v711_v32, %v3594_v39  ;;  %v3602_v33 = vld [vmem:[#allocation34_spill] sm:$0xff] }
 0x229   : > { %v638_v35 = vpop.f32.mrf.mxu1  ;;  %916 = vmatmul.mubr.f32.gmra.mxu0 %v2578_v31 }
 0x22a   : > { %v2583_v37 = vsub.f32 %v712_v34, %v3592_v36  ;;  %3595 = vst [vmem:[#allocation28_spill] sm:$0xff] %v2586_v41  ;;  %v713_v42 = vmul.f32 2.0, %v638_v35 }
 0x22b   : > { %v640_v43 = vpop.f32.mrf.mxu1 }
 0x22c   : > { %3593 = vst [vmem:[#allocation27_spill] sm:$0xff] %v2583_v37  ;;  %v714_v44 = vmul.f32 2.0, %v640_v43  ;;  %921 = vmatprep.mubr.f32.mxu0 %v2583_v37  ;;  %v2594_v51 = vsub.f32 %v713_v42, %v3598_v50 }
 0x22d   : > { %v644_v45 = vpop.f32.mrf.mxu1  ;;  %922 = vmatmul.mubr.f32.gmra.mxu0 %v2586_v41 }
 0x22e   : > { %v2591_v49 = vsub.f32 %v714_v44, %v3596_v47  ;;  %3599 = vst [vmem:[#allocation30_spill] sm:$0xff] %v2594_v51  ;;  %v715_v52 = vmul.f32 2.0, %v644_v45  ;;  %v3604_v45 = vld [vmem:[#allocation35_spill] sm:$0xff] }
 0x22f   : > { %v646_v59 = vpop.f32.mrf.mxu1 }
 0x230   : > { %3597 = vst [vmem:[#allocation29_spill] sm:$0xff] %v2591_v49  ;;  %v716_v61 = vmul.f32 2.0, %v646_v59  ;;  %927 = vmatprep.mubr.f32.mxu0 %v2591_v49  ;;  %v2602_v34 = vsub.f32 %v715_v52, %v3602_v33  ;;  %v3606_v49 = vld [vmem:[#allocation36_spill] sm:$0xff] }
 0x231   : > { %v650_v62 = vpop.f32.mrf.mxu1  ;;  %928 = vmatmul.mubr.f32.gmra.mxu0 %v2594_v51 }
 0x232   : > { %v2599_v32 = vsub.f32 %v716_v61, %v3600_v63  ;;  %3603 = vst [vmem:[#allocation32_spill] sm:$0xff] %v2602_v34  ;;  %v717_v35 = vmul.f32 2.0, %v650_v62  ;;  %v3608_v62 = vld [vmem:[#allocation37_spill] sm:$0xff] }
 0x233   : > { %v652_v43 = vpop.f32.mrf.mxu1 }
 0x234   : > { %3601 = vst [vmem:[#allocation31_spill] sm:$0xff] %v2599_v32  ;;  %v718_v44 = vmul.f32 2.0, %v652_v43  ;;  %933 = vmatprep.mubr.f32.mxu0 %v2599_v32  ;;  %v2610_v37 = vsub.f32 %v717_v35, %v3606_v49  ;;  %v3610_v32 = vld [vmem:[#allocation38_spill] sm:$0xff] }
 0x235   : > { %v656_v42 = vpop.f32.mrf.mxu1  ;;  %934 = vmatmul.mubr.f32.gmra.mxu0 %v2602_v34 }
 0x236   : > { %v2607_v59 = vsub.f32 %v718_v44, %v3604_v45  ;;  %3607 = vst [vmem:[#allocation34_spill] sm:$0xff] %v2610_v37  ;;  %v719_v51 = vmul.f32 2.0, %v656_v42  ;;  %v3612_v42 = vld [vmem:[#allocation39_spill] sm:$0xff] }
 0x237   : > { %v658_v61 = vpop.f32.mrf.mxu1 }
 0x238   : > { %3605 = vst [vmem:[#allocation33_spill] sm:$0xff] %v2607_v59  ;;  %v720_v41 = vmul.f32 2.0, %v658_v61  ;;  %939 = vmatprep.mubr.f32.mxu0 %v2607_v59  ;;  %v2618_v26 = vsub.f32 %v719_v51, %v3610_v32  ;;  %v3614_v59 = vld [vmem:[#allocation40_spill] sm:$0xff] }
 0x239   : > { %v662_v52 = vpop.f32.mrf.mxu1  ;;  %940 = vmatmul.mubr.f32.gmra.mxu0 %v2610_v37 }
 0x23a   : > { %v2615_v43 = vsub.f32 %v720_v41, %v3608_v62  ;;  %3611 = vst [vmem:[#allocation36_spill] sm:$0xff] %v2618_v26  ;;  %v721_v34 = vmul.f32 2.0, %v662_v52  ;;  %v3616_v52 = vld [vmem:[#allocation41_spill] sm:$0xff] }
 0x23b   : > { %v664_v44 = vpop.f32.mrf.mxu1 }
 0x23c   : > { %3609 = vst [vmem:[#allocation35_spill] sm:$0xff] %v2615_v43  ;;  %v722_v31 = vmul.f32 2.0, %v664_v44  ;;  %945 = vmatprep.mubr.f32.mxu0 %v2615_v43  ;;  %v2626_v54 = vsub.f32 %v721_v34, %v3614_v59  ;;  %v3618_v43 = vld [vmem:[#allocation42_spill] sm:$0xff] }
 0x23d   : > { %v668_v35 = vpop.f32.mrf.mxu1  ;;  %946 = vmatmul.mubr.f32.gmra.mxu0 %v2618_v26 }
 0x23e   : > { %v2623_v61 = vsub.f32 %v722_v31, %v3612_v42  ;;  %3615 = vst [vmem:[#allocation38_spill] sm:$0xff] %v2626_v54  ;;  %v723_v37 = vmul.f32 2.0, %v668_v35  ;;  %v3620_v35 = vld [vmem:[#allocation43_spill] sm:$0xff] }
 0x23f   : > { %v670_v41 = vpop.f32.mrf.mxu1 }
 0x240   : > { %3613 = vst [vmem:[#allocation37_spill] sm:$0xff] %v2623_v61  ;;  %v724_v56 = vmul.f32 2.0, %v670_v41  ;;  %951 = vmatprep.mubr.f32.mxu0 %v2623_v61  ;;  %v2634_v46 = vsub.f32 %v723_v37, %v3618_v43  ;;  %v3622_v61 = vld [vmem:[#allocation44_spill] sm:$0xff] }
 0x241   : > { %v674_v51 = vpop.f32.mrf.mxu1  ;;  %952 = vmatmul.mubr.f32.gmra.mxu0 %v2626_v54 }
 0x242   : > { %v2631_v44 = vsub.f32 %v724_v56, %v3616_v52  ;;  %3619 = vst [vmem:[#allocation40_spill] sm:$0xff] %v2634_v46  ;;  %v725_v26 = vmul.f32 2.0, %v674_v51  ;;  %v3624_v51 = vld [vmem:[#allocation45_spill] sm:$0xff] }
 0x243   : > { %v676_v31 = vpop.f32.mrf.mxu1 }
 0x244   : > { %3617 = vst [vmem:[#allocation39_spill] sm:$0xff] %v2631_v44  ;;  %v726_v48 = vmul.f32 2.0, %v676_v31  ;;  %957 = vmatprep.mubr.f32.mxu0 %v2631_v44  ;;  %v2642_v38 = vsub.f32 %v725_v26, %v3622_v61  ;;  %v3626_v44 = vld [vmem:[#allocation46_spill] sm:$0xff] }
 0x245   : > { %v680_v34 = vpop.f32.mrf.mxu1  ;;  %958 = vmatmul.mubr.f32.gmra.mxu0 %v2634_v46 }
 0x246   : > { %v2639_v41 = vsub.f32 %v726_v48, %v3620_v35  ;;  %3623 = vst [vmem:[#allocation53_spill] sm:$0xff] %v2642_v38  ;;  %v727_v54 = vmul.f32 2.0, %v680_v34  ;;  %v3628_v34 = vld [vmem:[#allocation47_spill] sm:$0xff] }
 0x247   : > { %v682_v56 = vpop.f32.mrf.mxu1 }
 0x248   : > { %3621 = vst [vmem:[#allocation41_spill] sm:$0xff] %v2639_v41  ;;  %v728_v40 = vmul.f32 2.0, %v682_v56  ;;  %963 = vmatprep.mubr.f32.mxu0 %v2639_v41  ;;  %v2650_v43 = vsub.f32 %v727_v54, %v3626_v44  ;;  %v3630_v41 = vld [vmem:[#allocation48_spill] sm:$0xff] }
 0x249   : > { %v686_v37 = vpop.f32.mrf.mxu1  ;;  %964 = vmatmul.mubr.f32.gmra.mxu0 %v2642_v38 }
 0x24a   : > { %v2647_v31 = vsub.f32 %v728_v40, %v3624_v51  ;;  %3627 = vst [vmem:[#allocation55_spill] sm:$0xff] %v2650_v43  ;;  %v729_v46 = vmul.f32 2.0, %v686_v37  ;;  %v3632_v37 = vld [vmem:[#allocation49_spill] sm:$0xff] }
 0x24b   : > { %v688_v48 = vpop.f32.mrf.mxu1 }
 0x24c   : > { %3625 = vst [vmem:[#allocation54_spill] sm:$0xff] %v2647_v31  ;;  %v730_v35 = vmul.f32 2.0, %v688_v48  ;;  %969 = vmatprep.mubr.f32.mxu0 %v2647_v31  ;;  %v2658_v61 = vsub.f32 %v729_v46, %v3630_v41  ;;  %v3634_v31 = vld [vmem:[#allocation50_spill] sm:$0xff]  ;;  %v3636_v46 = vld [vmem:[#allocation51_spill] sm:$0xff] }
 0x24d   : > { %v692_v26 = vpop.f32.mrf.mxu1  ;;  %970 = vmatmul.mubr.f32.gmra.mxu0 %v2650_v43 }
 0x24e   : > { %v2655_v56 = vsub.f32 %v730_v35, %v3628_v34  ;;  %3631 = vst [vmem:[#allocation48_spill] sm:$0xff] %v2658_v61  ;;  %v731_v38 = vmul.f32 2.0, %v692_v26 }
 0x24f   : > { %v694_v40 = vpop.f32.mrf.mxu1 }
 0x250   : > { %3629 = vst [vmem:[#allocation56_spill] sm:$0xff] %v2655_v56  ;;  %v732_v51 = vmul.f32 2.0, %v694_v40  ;;  %975 = vmatprep.mubr.f32.mxu0 %v2655_v56  ;;  %v2666_v44 = vsub.f32 %v731_v38, %v3634_v31  ;;  %v3638_v40 = vld [vmem:[#allocation52_spill] sm:$0xff] }
 0x251   : > { %v698_v54 = vpop.f32.mrf.mxu1  ;;  %976 = vmatmul.mubr.f32.gmra.mxu0 %v2658_v61 }
 0x252   : > { %v2663_v48 = vsub.f32 %v732_v51, %v3632_v37  ;;  %3635 = vst [vmem:[#allocation58_spill] sm:$0xff] %v2666_v44  ;;  %v733_v43 = vmul.f32 2.0, %v698_v54 }
 0x253   : > { %v700_v35 = vpop.f32.mrf.mxu1 }
 0x254   : > { %3633 = vst [vmem:[#allocation57_spill] sm:$0xff] %v2663_v48  ;;  %v734_v34 = vmul.f32 2.0, %v700_v35  ;;  %981 = vmatprep.mubr.f32.mxu0 %v2663_v48  ;;  %v2674_v56 = vsub.f32 %v733_v43, %v3638_v40  ;;  %v3640_v35 = vld [vmem:[#allocation17_spill] sm:$0xff] }
 0x255   : > { %982 = vmatmul.mubr.f32.gmra.mxu0 %v2666_v44 }
 0x256   : > { %v2671_v26 = vsub.f32 %v734_v34, %v3636_v46  ;;  %3639 = vst [vmem:[#allocation52_spill] sm:$0xff] %v2674_v56 }
 0x258   : > { %3637 = vst [vmem:[#allocation59_spill] sm:$0xff] %v2671_v26  ;;  %987 = vmatprep.mubr.f32.mxu0 %v2671_v26 }
 0x259   : > { %988 = vmatmul.mubr.f32.gmra.mxu0 %v2674_v56 }
 0x2dd   : > { %v899_v51 = vpop.f32.mrf.mxu0 }
 0x2de   : > { %v994_v38 = vmul.f32 2.0, %v899_v51 }
 0x2df   : > { %v901_v61 = vpop.f32.mrf.mxu0 }
 0x2e0   : > { %v995_v54 = vmul.f32 2.0, %v901_v61  ;;  %v2682_v48 = vsub.f32 %v994_v38, %v2391_v58 }
 0x2e1   : > { %v905_v31 = vpop.f32.mrf.mxu0 }
 0x2e2   : > { %v2679_v37 = vsub.f32 %v995_v54, %v3640_v35  ;;  %3642 = vst [vmem:[#allocation60_spill] sm:$0xff] %v2682_v48  ;;  %v996_v34 = vmul.f32 2.0, %v905_v31 }
 0x2e3   : > { %v907_v44 = vpop.f32.mrf.mxu0 }
 0x2e4   : > { %3641 = vst [vmem:[#allocation17_spill] sm:$0xff] %v2679_v37  ;;  %v997_v46 = vmul.f32 2.0, %v907_v44  ;;  %1188 = vmatprep.mubr.f32.mxu1 %v2679_v37  ;;  %v2690_v61 = vsub.f32 %v996_v34, %v2396_v60 }
 0x2e5   : > { %v911_v43 = vpop.f32.mrf.mxu0  ;;  %1189 = vmatmul.mubr.f32.vlgmr.msra.gmra.mxu1 %v2682_v48 }
 0x2e6   : > { %v2687_v26 = vsub.f32 %v997_v46, %v2400_v0  ;;  %3644 = vst [vmem:[#allocation62_spill] sm:$0xff] %v2690_v61  ;;  %v998_v51 = vmul.f32 2.0, %v911_v43 }
 0x2e7   : > { %v913_v54 = vpop.f32.mrf.mxu0 }
 0x2e8   : > { %3643 = vst [vmem:[#allocation61_spill] sm:$0xff] %v2687_v26  ;;  %v999_v56 = vmul.f32 2.0, %v913_v54  ;;  %1194 = vmatprep.mubr.f32.mxu1 %v2687_v26  ;;  %v2698_v31 = vsub.f32 %v998_v51, %v2405_v24 }
 0x2e9   : > { %v917_v38 = vpop.f32.mrf.mxu0  ;;  %1195 = vmatmul.mubr.f32.gmra.mxu1 %v2690_v61 }
 0x2ea   : > { %v2695_v44 = vsub.f32 %v999_v56, %v2410_v57  ;;  %3646 = vst [vmem:[#allocation64_spill] sm:$0xff] %v2698_v31  ;;  %v1000_v37 = vmul.f32 2.0, %v917_v38 }
 0x2eb   : > { %v919_v46 = vpop.f32.mrf.mxu0 }
 0x2ec   : > { %3645 = vst [vmem:[#allocation63_spill] sm:$0xff] %v2695_v44  ;;  %v1001_v48 = vmul.f32 2.0, %v919_v46  ;;  %1200 = vmatprep.mubr.f32.mxu1 %v2695_v44  ;;  %v2706_v54 = vsub.f32 %v1000_v37, %v2415_v1 }
 0x2ed   : > { %v923_v34 = vpop.f32.mrf.mxu0  ;;  %1201 = vmatmul.mubr.f32.gmra.mxu1 %v2698_v31 }
 0x2ee   : > { %v2703_v43 = vsub.f32 %v1001_v48, %v2420_v2  ;;  %3648 = vst [vmem:[#allocation66_spill] sm:$0xff] %v2706_v54  ;;  %v1002_v26 = vmul.f32 2.0, %v923_v34 }
 0x2ef   : > { %v925_v56 = vpop.f32.mrf.mxu0 }
 0x2f0   : > { %3647 = vst [vmem:[#allocation65_spill] sm:$0xff] %v2703_v43  ;;  %v1003_v61 = vmul.f32 2.0, %v925_v56  ;;  %1206 = vmatprep.mubr.f32.mxu1 %v2703_v43  ;;  %v2714_v46 = vsub.f32 %v1002_v26, %v2425_v3 }
 0x2f1   : > { %v929_v51 = vpop.f32.mrf.mxu0  ;;  %1207 = vmatmul.mubr.f32.gmra.mxu1 %v2706_v54 }
 0x2f2   : > { %v2711_v38 = vsub.f32 %v1003_v61, %v2430_v4  ;;  %3650 = vst [vmem:[#allocation68_spill] sm:$0xff] %v2714_v46  ;;  %v1004_v44 = vmul.f32 2.0, %v929_v51 }
 0x2f3   : > { %v931_v48 = vpop.f32.mrf.mxu0 }
 0x2f4   : > { %3649 = vst [vmem:[#allocation67_spill] sm:$0xff] %v2711_v38  ;;  %v1005_v31 = vmul.f32 2.0, %v931_v48  ;;  %1212 = vmatprep.mubr.f32.mxu1 %v2711_v38  ;;  %v2722_v56 = vsub.f32 %v1004_v44, %v2435_v5 }
 0x2f5   : > { %v935_v37 = vpop.f32.mrf.mxu0  ;;  %1213 = vmatmul.mubr.f32.gmra.mxu1 %v2714_v46 }
 0x2f6   : > { %v2719_v34 = vsub.f32 %v1005_v31, %v2440_v6  ;;  %3652 = vst [vmem:[#allocation70_spill] sm:$0xff] %v2722_v56  ;;  %v1006_v43 = vmul.f32 2.0, %v935_v37 }
 0x2f7   : > { %v937_v61 = vpop.f32.mrf.mxu0 }
 0x2f8   : > { %3651 = vst [vmem:[#allocation69_spill] sm:$0xff] %v2719_v34  ;;  %v1007_v54 = vmul.f32 2.0, %v937_v61  ;;  %1218 = vmatprep.mubr.f32.mxu1 %v2719_v34  ;;  %v2730_v48 = vsub.f32 %v1006_v43, %v2445_v7 }
 0x2f9   : > { %v941_v26 = vpop.f32.mrf.mxu0  ;;  %1219 = vmatmul.mubr.f32.gmra.mxu1 %v2722_v56 }
 0x2fa   : > { %v2727_v51 = vsub.f32 %v1007_v54, %v2450_v8  ;;  %3654 = vst [vmem:[#allocation72_spill] sm:$0xff] %v2730_v48  ;;  %v1008_v38 = vmul.f32 2.0, %v941_v26 }
 0x2fb   : > { %v943_v31 = vpop.f32.mrf.mxu0 }
 0x2fc   : > { %3653 = vst [vmem:[#allocation71_spill] sm:$0xff] %v2727_v51  ;;  %v1009_v46 = vmul.f32 2.0, %v943_v31  ;;  %1224 = vmatprep.mubr.f32.mxu1 %v2727_v51  ;;  %v2738_v61 = vsub.f32 %v1008_v38, %v2455_v9 }
 0x2fd   : > { %v947_v44 = vpop.f32.mrf.mxu0  ;;  %1225 = vmatmul.mubr.f32.gmra.mxu1 %v2730_v48 }
 0x2fe   : > { %v2735_v37 = vsub.f32 %v1009_v46, %v2460_v10  ;;  %3656 = vst [vmem:[#allocation74_spill] sm:$0xff] %v2738_v61  ;;  %v1010_v34 = vmul.f32 2.0, %v947_v44 }
 0x2ff   : > { %v949_v54 = vpop.f32.mrf.mxu0 }
 0x300   : > { %3655 = vst [vmem:[#allocation73_spill] sm:$0xff] %v2735_v37  ;;  %v1011_v56 = vmul.f32 2.0, %v949_v54  ;;  %1230 = vmatprep.mubr.f32.mxu1 %v2735_v37  ;;  %v2746_v31 = vsub.f32 %v1010_v34, %v2465_v11 }
 0x301   : > { %v953_v43 = vpop.f32.mrf.mxu0  ;;  %1231 = vmatmul.mubr.f32.gmra.mxu1 %v2738_v61 }
 0x302   : > { %v2743_v26 = vsub.f32 %v1011_v56, %v2470_v12  ;;  %3658 = vst [vmem:[#allocation76_spill] sm:$0xff] %v2746_v31  ;;  %v1012_v51 = vmul.f32 2.0, %v953_v43 }
 0x303   : > { %v955_v46 = vpop.f32.mrf.mxu0 }
 0x304   : > { %3657 = vst [vmem:[#allocation75_spill] sm:$0xff] %v2743_v26  ;;  %v1013_v48 = vmul.f32 2.0, %v955_v46  ;;  %1236 = vmatprep.mubr.f32.mxu1 %v2743_v26  ;;  %v2754_v54 = vsub.f32 %v1012_v51, %v2475_v13 }
 0x305   : > { %v959_v38 = vpop.f32.mrf.mxu0  ;;  %1237 = vmatmul.mubr.f32.gmra.mxu1 %v2746_v31 }
 0x306   : > { %v2751_v44 = vsub.f32 %v1013_v48, %v2480_v14  ;;  %3660 = vst [vmem:[#allocation78_spill] sm:$0xff] %v2754_v54  ;;  %v1014_v37 = vmul.f32 2.0, %v959_v38 }
 0x307   : > { %v961_v56 = vpop.f32.mrf.mxu0 }
 0x308   : > { %3659 = vst [vmem:[#allocation77_spill] sm:$0xff] %v2751_v44  ;;  %v1015_v61 = vmul.f32 2.0, %v961_v56  ;;  %1242 = vmatprep.mubr.f32.mxu1 %v2751_v44  ;;  %v2762_v46 = vsub.f32 %v1014_v37, %v2485_v15 }
 0x309   : > { %v965_v34 = vpop.f32.mrf.mxu0  ;;  %1243 = vmatmul.mubr.f32.gmra.mxu1 %v2754_v54 }
 0x30a   : > { %v2759_v43 = vsub.f32 %v1015_v61, %v2490_v16  ;;  %3662 = vst [vmem:[#allocation80_spill] sm:$0xff] %v2762_v46  ;;  %v1016_v26 = vmul.f32 2.0, %v965_v34 }
 0x30b   : > { %v967_v48 = vpop.f32.mrf.mxu0 }
 0x30c   : > { %3661 = vst [vmem:[#allocation79_spill] sm:$0xff] %v2759_v43  ;;  %v1017_v31 = vmul.f32 2.0, %v967_v48  ;;  %1248 = vmatprep.mubr.f32.mxu1 %v2759_v43  ;;  %v2770_v56 = vsub.f32 %v1016_v26, %v2495_v17 }
 0x30d   : > { %v971_v51 = vpop.f32.mrf.mxu0  ;;  %1249 = vmatmul.mubr.f32.gmra.mxu1 %v2762_v46 }
 0x30e   : > { %v2767_v38 = vsub.f32 %v1017_v31, %v2500_v18  ;;  %3664 = vst [vmem:[#allocation82_spill] sm:$0xff] %v2770_v56  ;;  %v1018_v44 = vmul.f32 2.0, %v971_v51 }
 0x30f   : > { %v973_v61 = vpop.f32.mrf.mxu0 }
 0x310   : > { %3663 = vst [vmem:[#allocation81_spill] sm:$0xff] %v2767_v38  ;;  %v1019_v54 = vmul.f32 2.0, %v973_v61  ;;  %1254 = vmatprep.mubr.f32.mxu1 %v2767_v38  ;;  %v2778_v48 = vsub.f32 %v1018_v44, %v2505_v19 }
 0x311   : > { %v977_v37 = vpop.f32.mrf.mxu0  ;;  %1255 = vmatmul.mubr.f32.gmra.mxu1 %v2770_v56 }
 0x312   : > { %v2775_v34 = vsub.f32 %v1019_v54, %v2510_v20  ;;  %3666 = vst [vmem:[#allocation84_spill] sm:$0xff] %v2778_v48  ;;  %v1020_v43 = vmul.f32 2.0, %v977_v37 }
 0x313   : > { %v979_v31 = vpop.f32.mrf.mxu0 }
 0x314   : > { %3665 = vst [vmem:[#allocation83_spill] sm:$0xff] %v2775_v34  ;;  %v1021_v46 = vmul.f32 2.0, %v979_v31  ;;  %1260 = vmatprep.mubr.f32.mxu1 %v2775_v34  ;;  %v2786_v61 = vsub.f32 %v1020_v43, %v2515_v21 }
 0x315   : > { %v983_v26 = vpop.f32.mrf.mxu0  ;;  %1261 = vmatmul.mubr.f32.gmra.mxu1 %v2778_v48 }
 0x316   : > { %v2783_v51 = vsub.f32 %v1021_v46, %v2520_v22  ;;  %3668 = vst [vmem:[#allocation86_spill] sm:$0xff] %v2786_v61  ;;  %v1022_v38 = vmul.f32 2.0, %v983_v26 }
 0x317   : > { %v985_v54 = vpop.f32.mrf.mxu0 }
 0x318   : > { %3667 = vst [vmem:[#allocation85_spill] sm:$0xff] %v2783_v51  ;;  %v1023_v56 = vmul.f32 2.0, %v985_v54  ;;  %1266 = vmatprep.mubr.f32.mxu1 %v2783_v51  ;;  %v2794_v31 = vsub.f32 %v1022_v38, %v2525_v23  ;;  %v282_v38 = vstv %s281_s20 }
 0x319   : > { %v989_v44 = vpop.f32.mrf.mxu0  ;;  %1267 = vmatmul.mubr.f32.gmra.mxu1 %v2786_v61 }
 0x31a   : > { %v2791_v37 = vsub.f32 %v1023_v56, %v2530_v27  ;;  %3670 = vst [vmem:[#allocation88_spill] sm:$0xff] %v2794_v31  ;;  %v1024_v46 = vmul.f32 2.0, %v989_v44  ;;  %v1635_v56 = vld [vmem:[%s1936_s30 + $0x8] sm:$0xff]  ;;  %v2820_v27 = vstv %s1559_s22 }
 0x31b   : > { %v991_v43 = vpop.f32.mrf.mxu0  ;;  %v284_v44 = vmul.f32 %v1635_v56, %v282_v38  ;;  %v294_v56 = vmul.f32 %v282_v38, %v3596_v47  ;;  %v2831_v47 = vmul.f32 %v282_v38, %v3616_v52  ;;  %v3682_v52 = vld [vmem:[#allocation46_spill] sm:$0xff] }
 0x31c   : > { %3669 = vst [vmem:[#allocation87_spill] sm:$0xff] %v2791_v37  ;;  %v1025_v34 = vmul.f32 2.0, %v991_v43  ;;  %1272 = vmatprep.mubr.f32.mxu1 %v2791_v37  ;;  %v2802_v54 = vsub.f32 %v1024_v46, %v2535_v28  ;;  %v1636_v43 = vld [vmem:[%s1936_s30] sm:$0xff]  ;;  %v1637_v37 = vld [vmem:[%s1936_s30 + $0x18] sm:$0xff]  ;;  %v287_v46 = vmul.f32 %v282_v38, %v3586_v55  ;;  %v291_v28 = vmul.f32 %v282_v38, %v3594_v39 }
 0x31d   : > { %1273 = vmatmul.mubr.f32.gmra.mxu1 %v2794_v31  ;;  %v283_v51 = vmul.f32 %v1636_v43, %v282_v38  ;;  %v286_v61 = vmul.f32 %v1637_v37, %v282_v38  ;;  %v1638_v31 = vld [vmem:[%s1936_s30 + $0x10] sm:$0xff]  ;;  %v293_v43 = vmul.f32 %v282_v38, %v3598_v50  ;;  %v296_v37 = vmul.f32 %v282_v38, %v3600_v63  ;;  %v3674_v50 = vld [vmem:[#allocation42_spill] sm:$0xff] }
 0x31e   : > { %v2799_v26 = vsub.f32 %v1025_v34, %v2540_v30  ;;  %3672 = vst [vmem:[#allocation90_spill] sm:$0xff] %v2802_v54  ;;  %v285_v48 = vmul.f32 %v1638_v31, %v282_v38  ;;  %v288_v34 = vmul.f32 %v282_v38, %v3584_v53  ;;  %v290_v30 = vmul.f32 %v282_v38, %v3588_v25 }
 0x31f   : > { %v295_v31 = vmul.f32 %v282_v38, %v3602_v33  ;;  %v298_v53 = vmul.f32 %v282_v38, %v3604_v45  ;;  %v297_v55 = vmul.f32 %v282_v38, %v3606_v49  ;;  %v300_v25 = vmul.f32 %v282_v38, %v3608_v62  ;;  %3673 = vst [vmem:[#allocation91_spill] sm:$0xff] %v2831_v47  ;;  %v3676_v33 = vld [vmem:[#allocation43_spill] sm:$0xff]  ;;  %v3678_v45 = vld [vmem:[#allocation44_spill] sm:$0xff] }
 0x320   : > { %3671 = vst [vmem:[#allocation89_spill] sm:$0xff] %v2799_v26  ;;  %1278 = vmatprep.mubr.f32.mxu1 %v2799_v26  ;;  %v289_v26 = vmul.f32 %v282_v38, %v3590_v29  ;;  %v299_v29 = vmul.f32 %v282_v38, %v3610_v32  ;;  %v301_v39 = vmul.f32 %v282_v38, %v3614_v59 }
 0x321   : > { %1279 = vmatmul.mubr.f32.gmra.mxu1 %v2802_v54  ;;  %v292_v54 = vmul.f32 %v282_v38, %v3592_v36  ;;  %v2827_v36 = vmul.f32 %v282_v38, %v3612_v42  ;;  %v2834_v63 = vmul.f32 %v282_v38, %v3674_v50  ;;  %v2837_v23 = vmul.f32 %v282_v38, %v3676_v33  ;;  %v3680_v42 = vld [vmem:[#allocation45_spill] sm:$0xff]  ;;  %v3683_v50 = vld [vmem:[#allocation47_spill] sm:$0xff] }
 0x322   : > { %v2840_v49 = vmul.f32 %v282_v38, %v3678_v45  ;;  %v478_v32 = vmul.f32 %v2820_v27, %v2391_v58  ;;  %v479_v62 = vmul.f32 %v2820_v27, %v3640_v35  ;;  %v2847_v59 = vmul.f32 %v282_v38, %v3680_v42  ;;  %v3684_v45 = vld [vmem:[#allocation49_spill] sm:$0xff] }
 0x323   : > { %3675 = vst [vmem:[#allocation42_spill] sm:$0xff] %v2834_v63  ;;  %3677 = vst [vmem:[#allocation43_spill] sm:$0xff] %v2837_v23  ;;  %v2850_v47 = vmul.f32 %v282_v38, %v3682_v52  ;;  %v2853_v63 = vmul.f32 %v282_v38, %v3683_v50  ;;  %v2856_v33 = vmul.f32 %v282_v38, %v3630_v41  ;;  %v3687_v52 = vld [vmem:[#allocation51_spill] sm:$0xff] }
 0x324   : > { %3679 = vst [vmem:[#allocation44_spill] sm:$0xff] %v2840_v49  ;;  %3681 = vst [vmem:[#allocation45_spill] sm:$0xff] %v2847_v59  ;;  %v2859_v23 = vmul.f32 %v282_v38, %v3684_v45  ;;  %v3686_v49 = vld [vmem:[#allocation50_spill] sm:$0xff]  ;;  %v480_v35 = vmul.f32 %v2820_v27, %v2396_v60  ;;  %v481_v42 = vmul.f32 %v2820_v27, %v2400_v0 }
 0x325   : > { %v2862_v58 = vmul.f32 %v282_v38, %v3686_v49  ;;  %v2869_v59 = vmul.f32 %v282_v38, %v3687_v52  ;;  %v2872_v50 = vmul.f32 %v282_v38, %v3638_v40  ;;  %v482_v41 = vmul.f32 %v2820_v27, %v2405_v24 }
 0x326   : > { %3685 = vst [vmem:[#allocation46_spill] sm:$0xff] %v2859_v23  ;;  %v483_v45 = vmul.f32 %v2820_v27, %v2410_v57  ;;  %v2878_v49 = vadd.f32 %v478_v32, %v283_v51  ;;  %v2880_v23 = vadd.f32 %v479_v62, %v284_v44  ;;  %v484_v60 = vmul.f32 %v2820_v27, %v2415_v1 }
 0x327   : > { %v485_v0 = vmul.f32 %v2820_v27, %v2420_v2  ;;  %v486_v40 = vmul.f32 %v2820_v27, %v2425_v3  ;;  %v487_v38 = vmul.f32 %v2820_v27, %v2430_v4  ;;  %v488_v24 = vmul.f32 %v2820_v27, %v2435_v5 }
 0x328   : > { %v489_v57 = vmul.f32 %v2820_v27, %v2440_v6  ;;  %v2896_v51 = vadd.f32 %v480_v35, %v285_v48  ;;  %v2898_v1 = vadd.f32 %v481_v42, %v286_v61  ;;  %v490_v2 = vmul.f32 %v2820_v27, %v2445_v7 }
 0x329   : > { %v491_v3 = vmul.f32 %v2820_v27, %v2450_v8  ;;  %v2904_v44 = vadd.f32 %v482_v41, %v287_v46  ;;  %v2906_v4 = vadd.f32 %v483_v45, %v288_v34  ;;  %v492_v5 = vmul.f32 %v2820_v27, %v2455_v9  ;;  %v3694_v45 = vld [vmem:[#allocation15_spill] sm:$0xff] }
 0x32a   : > { %v493_v6 = vmul.f32 %v2820_v27, %v2460_v10  ;;  %v2914_v48 = vadd.f32 %v484_v60, %v289_v26  ;;  %v2916_v61 = vadd.f32 %v485_v0, %v290_v30  ;;  %v494_v7 = vmul.f32 %v2820_v27, %v2465_v11  ;;  %v3693_v41 = vld [vmem:[#allocation43_spill] sm:$0xff]  ;;  %v3695_v0 = vld [vmem:[#allocation21_spill] sm:$0xff] }
 0x32b   : > { %v495_v8 = vmul.f32 %v2820_v27, %v2470_v12  ;;  %v2922_v34 = vadd.f32 %v486_v40, %v291_v28  ;;  %v2924_v46 = vadd.f32 %v487_v38, %v292_v54  ;;  %v2926_v9 = vadd.f32 %v488_v24, %v293_v43  ;;  %v3692_v52 = vld [vmem:[#allocation44_spill] sm:$0xff]  ;;  %v3696_v24 = vld [vmem:[#allocation45_spill] sm:$0xff] }
 0x32c   : > { %v2928_v32 = vadd.f32 %v489_v57, %v294_v56  ;;  %v2930_v10 = vadd.f32 %v490_v2, %v295_v31  ;;  %v2932_v26 = vadd.f32 %v491_v3, %v296_v37  ;;  %v496_v30 = vmul.f32 %v2820_v27, %v2475_v13  ;;  %v3697_v3 = vld [vmem:[#allocation18_spill] sm:$0xff] }
 0x32d   : > { %v497_v11 = vmul.f32 %v2820_v27, %v2480_v14  ;;  %v2938_v12 = vadd.f32 %v492_v5, %v297_v55  ;;  %v2940_v28 = vadd.f32 %v493_v6, %v298_v53  ;;  %v498_v54 = vmul.f32 %v2820_v27, %v2485_v15 }
 0x32e   : > { %v499_v56 = vmul.f32 %v2820_v27, %v2490_v16  ;;  %v2948_v43 = vadd.f32 %v494_v7, %v299_v29  ;;  %v2950_v37 = vadd.f32 %v495_v8, %v300_v25  ;;  %v500_v13 = vmul.f32 %v2820_v27, %v2495_v17 }
 0x32f   : > { %v501_v14 = vmul.f32 %v2820_v27, %v2500_v18  ;;  %v502_v31 = vmul.f32 %v2820_v27, %v2505_v19  ;;  %v503_v15 = vmul.f32 %v2820_v27, %v2510_v20  ;;  %v504_v16 = vmul.f32 %v2820_v27, %v2515_v21  ;;  %v3688_v18 = vld [vmem:[#allocation19_spill] sm:$0xff]  ;;  %v3689_v19 = vld [vmem:[#allocation42_spill] sm:$0xff]  ;;  %v3691_v21 = vld [vmem:[#allocation20_spill] sm:$0xff] }
 0x330   : > { %v2963_v53 = vstv %s2894_s4  ;;  %v2965_v55 = vadd.f32 %v496_v30, %v301_v39  ;;  %v2968_v25 = vadd.f32 %v497_v11, %v2827_v36  ;;  %v505_v17 = vmul.f32 %v2820_v27, %v2520_v22  ;;  %v3690_v20 = vld [vmem:[#allocation91_spill] sm:$0xff]  ;;  %v3698_v30 = vld [vmem:[#allocation60_spill] sm:$0xff] }
 0x331   : > { %v506_v29 = vmul.f32 %v2820_v27, %v3688_v18  ;;  %v2975_v62 = vadd.f32 %v498_v54, %v3689_v19  ;;  %v2978_v35 = vadd.f32 %v499_v56, %v3690_v20  ;;  %v507_v42 = vmul.f32 %v2820_v27, %v3691_v21  ;;  %v3699_v54 = vld [vmem:[#allocation46_spill] sm:$0xff] }
 0x332   : > { %v2983_v39 = vstv %s2912_s14  ;;  %v2986_v36 = vadd.f32 %v500_v13, %v3692_v52  ;;  %v2989_v22 = vadd.f32 %v501_v14, %v3693_v41  ;;  %v508_v60 = vmul.f32 %v2820_v27, %v3694_v45  ;;  %v3700_v13 = vld [vmem:[#allocation22_spill] sm:$0xff]  ;;  %v3701_v14 = vld [vmem:[#allocation17_spill] sm:$0xff] }
 0x333   : > { %v769_v40 = vmul.f32 %v2963_v53, %v3695_v0  ;;  %v2996_v38 = vadd.f32 %v502_v31, %v2850_v47  ;;  %v2999_v57 = vadd.f32 %v503_v15, %v3696_v24  ;;  %v3002_v2 = vadd.f32 %v504_v16, %v2856_v33  ;;  %v3703_v20 = vld [vmem:[#allocation14_spill] sm:$0xff] }
 0x334   : > { %v770_v5 = vmul.f32 %v2963_v53, %v3697_v3  ;;  %v3007_v7 = vadd.f32 %v505_v17, %v2853_v63  ;;  %v3010_v8 = vadd.f32 %v506_v29, %v2862_v58  ;;  %v1060_v47 = vmul.f32 %v2983_v39, %v3698_v30  ;;  %v3702_v29 = vld [vmem:[#allocation16_spill] sm:$0xff]  ;;  %v3704_v52 = vld [vmem:[#allocation62_spill] sm:$0xff]  ;;  %v3706_v30 = vld [vmem:[#allocation61_spill] sm:$0xff] }
 0x335   : > { %v3015_v56 = vadd.f32 %v507_v42, %v3699_v54  ;;  %v771_v33 = vmul.f32 %v2963_v53, %v3700_v13  ;;  %v1061_v31 = vmul.f32 %v2983_v39, %v3701_v14  ;;  %v3022_v15 = vstv %s2946_s23 }
 0x336   : > { %v3025_v16 = vadd.f32 %v508_v60, %v2872_v50  ;;  %v801_v58 = vadd.f32 %v769_v40, %v2878_v49  ;;  %v3031_v19 = vmul.f32 %v2820_v27, %v3702_v29  ;;  %v772_v21 = vmul.f32 %v2963_v53, %v3703_v20  ;;  %v3705_v40 = vld [vmem:[#allocation24_spill] sm:$0xff] }
 0x337   : > { %v802_v42 = vadd.f32 %v770_v5, %v2880_v23  ;;  %v1062_v41 = vmul.f32 %v2983_v39, %v3704_v52  ;;  %v773_v27 = vmul.f32 %v2963_v53, %v3705_v40  ;;  %v1063_v23 = vmul.f32 %v2983_v39, %v3706_v30  ;;  %v3709_v52 = vld [vmem:[#allocation26_spill] sm:$0xff] }
 0x338   : > { %v1092_v50 = vadd.f32 %v1060_v47, %v801_v58 }
 0x339   : > { %v1093_v24 = vadd.f32 %v1061_v31, %v802_v42 }
 0x3a5   : > { %v1190_v6 = vpop.f32.mrf.mxu1 }
 0x3a6   : > { %v1285_v11 = vmul.f32 2.0, %v1190_v6  ;;  %v803_v6 = vadd.f32 %v771_v33, %v2896_v51 }
 0x3a7   : > { %v1192_v63 = vpop.f32.mrf.mxu1 }
 0x3a8   : > { %v1317_v17 = vsub.f32 %v1285_v11, %v3695_v0  ;;  %v1286_v18 = vmul.f32 2.0, %v1192_v63  ;;  %v3707_v63 = vld [vmem:[#allocation23_spill] sm:$0xff]  ;;  %v1094_v58 = vadd.f32 %v1062_v41, %v803_v6  ;;  %v805_v41 = vadd.f32 %v773_v27, %v2904_v44 }
 0x3a9   : > { %v1196_v45 = vpop.f32.mrf.mxu1 }
 0x3aa   : > { %v1351_v60 = vmul.f32 %v3022_v15, %v1317_v17  ;;  %v1318_v49 = vsub.f32 %v1286_v18, %v3697_v3  ;;  %v1287_v0 = vmul.f32 2.0, %v1196_v45  ;;  %v774_v3 = vmul.f32 %v2963_v53, %v3707_v63  ;;  %v3708_v18 = vld [vmem:[#allocation64_spill] sm:$0xff]  ;;  %v3710_v45 = vld [vmem:[#allocation63_spill] sm:$0xff] }
 0x3ab   : > { %v1198_v5 = vpop.f32.mrf.mxu1  ;;  %v804_v17 = vadd.f32 %v772_v21, %v2898_v1  ;;  %v1064_v31 = vmul.f32 %v2983_v39, %v3708_v18  ;;  %v775_v1 = vmul.f32 %v2963_v53, %v3709_v52 }
 0x3ac   : > { %v1383_v11 = vadd.f32 %v1351_v60, %v1092_v50  ;;  %v1352_v54 = vmul.f32 %v3022_v15, %v1318_v49  ;;  %v1319_v47 = vsub.f32 %v1287_v0, %v3700_v13  ;;  %v1288_v14 = vmul.f32 2.0, %v1198_v5 }
 0x3ad   : > { %v1202_v51 = vpop.f32.mrf.mxu1  ;;  %v1095_v21 = vadd.f32 %v1063_v23, %v804_v17  ;;  %v1065_v50 = vmul.f32 %v2983_v39, %v3710_v45  ;;  %v1096_v5 = vadd.f32 %v1064_v31, %v805_v41  ;;  %v806_v23 = vadd.f32 %v774_v3, %v2906_v4 }
 0x3ae   : > { %1415 = vst [vmem:[%s3054_s25] sm:$0xff] %v1383_v11  ;;  %v1384_v33 = vadd.f32 %v1352_v54, %v1093_v24  ;;  %v1353_v13 = vmul.f32 %v3022_v15, %v1319_v47  ;;  %v1320_v29 = vsub.f32 %v1288_v14, %v3703_v20  ;;  %v1289_v42 = vmul.f32 2.0, %v1202_v51  ;;  %v3711_v20 = vld [vmem:[#allocation25_spill] sm:$0xff]  ;;  %v3712_v11 = vld [vmem:[#allocation66_spill] sm:$0xff] }
 0x3af   : > { %v1204_v60 = vpop.f32.mrf.mxu1  ;;  %v776_v30 = vmul.f32 %v2963_v53, %v3711_v20  ;;  %v1066_v44 = vmul.f32 %v2983_v39, %v3712_v11  ;;  %v1097_v18 = vadd.f32 %v1065_v50, %v806_v23  ;;  %v807_v31 = vadd.f32 %v775_v1, %v2914_v48  ;;  %v3714_v51 = vld [vmem:[#allocation65_spill] sm:$0xff]  ;;  %v3716_v50 = vld [vmem:[#allocation68_spill] sm:$0xff]  ;;  %v3718_v11 = vld [vmem:[#allocation67_spill] sm:$0xff] }
 0x3b0   : > { %1416 = vst [vmem:[%s3054_s25 + $0x8] sm:$0xff] %v1384_v33  ;;  %v1385_v49 = vadd.f32 %v1353_v13, %v1094_v58  ;;  %v1354_v0 = vmul.f32 %v3022_v15, %v1320_v29  ;;  %v1321_v24 = vsub.f32 %v1289_v42, %v3705_v40  ;;  %v1290_v6 = vmul.f32 2.0, %v1204_v60  ;;  %v3713_v40 = vld [vmem:[#allocation28_spill] sm:$0xff] }
 0x3b1   : > { %v1208_v27 = vpop.f32.mrf.mxu1  ;;  %v777_v17 = vmul.f32 %v2963_v53, %v3713_v40  ;;  %v1067_v4 = vmul.f32 %v2983_v39, %v3714_v51  ;;  %v1098_v41 = vadd.f32 %v1066_v44, %v807_v31  ;;  %v808_v45 = vadd.f32 %v776_v30, %v2916_v61  ;;  %v3720_v31 = vld [vmem:[#allocation70_spill] sm:$0xff] }
 0x3b2   : > { %1417 = vst [vmem:[%s3054_s25 + $0x10] sm:$0xff] %v1385_v49  ;;  %v1386_v54 = vadd.f32 %v1354_v0, %v1095_v21  ;;  %v1355_v47 = vmul.f32 %v3022_v15, %v1321_v24  ;;  %v1322_v14 = vsub.f32 %v1290_v6, %v3707_v63  ;;  %v1291_v58 = vmul.f32 2.0, %v1208_v27  ;;  %v3715_v63 = vld [vmem:[#allocation27_spill] sm:$0xff] }
 0x3b3   : > { %v1210_v3 = vpop.f32.mrf.mxu1  ;;  %v778_v21 = vmul.f32 %v2963_v53, %v3715_v63  ;;  %v1068_v48 = vmul.f32 %v2983_v39, %v3716_v50  ;;  %v809_v23 = vadd.f32 %v777_v17, %v2922_v34  ;;  %v1069_v61 = vmul.f32 %v2983_v39, %v3718_v11 }
 0x3b4   : > { %1418 = vst [vmem:[%s3054_s25 + $0x18] sm:$0xff] %v1386_v54  ;;  %v1387_v33 = vadd.f32 %v1355_v47, %v1096_v5  ;;  %v1356_v13 = vmul.f32 %v3022_v15, %v1322_v14  ;;  %v1323_v29 = vsub.f32 %v1291_v58, %v3709_v52  ;;  %v1292_v42 = vmul.f32 2.0, %v1210_v3  ;;  %v3717_v52 = vld [vmem:[#allocation30_spill] sm:$0xff] }
 0x3b5   : > { %v1214_v1 = vpop.f32.mrf.mxu1  ;;  %v779_v6 = vmul.f32 %v2963_v53, %v3717_v52  ;;  %v1099_v5 = vadd.f32 %v1067_v4, %v808_v45  ;;  %v1100_v58 = vadd.f32 %v1068_v48, %v809_v23  ;;  %v1070_v34 = vmul.f32 %v2983_v39, %v3720_v31 }
 0x3b6   : > { %1419 = vst [vmem:[%s3054_s25 + $0x20] sm:$0xff] %v1387_v33  ;;  %v1388_v60 = vadd.f32 %v1356_v13, %v1097_v18  ;;  %v1357_v49 = vmul.f32 %v3022_v15, %v1323_v29  ;;  %v1324_v0 = vsub.f32 %v1292_v42, %v3711_v20  ;;  %v1293_v24 = vmul.f32 2.0, %v1214_v1  ;;  %v3719_v20 = vld [vmem:[#allocation29_spill] sm:$0xff] }
 0x3b7   : > { %v1216_v30 = vpop.f32.mrf.mxu1  ;;  %v780_v14 = vmul.f32 %v2963_v53, %v3719_v20  ;;  %v810_v18 = vadd.f32 %v778_v21, %v2924_v46  ;;  %v811_v42 = vadd.f32 %v779_v6, %v2926_v9 }
 0x3b8   : > { %1420 = vst [vmem:[%s3054_s25 + $0x28] sm:$0xff] %v1388_v60  ;;  %v1389_v44 = vadd.f32 %v1357_v49, %v1098_v41  ;;  %v1358_v27 = vmul.f32 %v3022_v15, %v1324_v0  ;;  %v1325_v54 = vsub.f32 %v1293_v24, %v3713_v40  ;;  %v1294_v47 = vmul.f32 2.0, %v1216_v30  ;;  %v3721_v40 = vld [vmem:[#allocation32_spill] sm:$0xff]  ;;  %v3722_v41 = vld [vmem:[#allocation69_spill] sm:$0xff] }
 0x3b9   : > { %v1220_v17 = vpop.f32.mrf.mxu1  ;;  %v781_v13 = vmul.f32 %v2963_v53, %v3721_v40  ;;  %v1101_v29 = vadd.f32 %v1069_v61, %v810_v18  ;;  %v1071_v46 = vmul.f32 %v2983_v39, %v3722_v41  ;;  %v1102_v49 = vadd.f32 %v1070_v34, %v811_v42  ;;  %v3724_v24 = vld [vmem:[#allocation72_spill] sm:$0xff] }
 0x3ba   : > { %1421 = vst [vmem:[%s3054_s25 + $0x30] sm:$0xff] %v1389_v44  ;;  %v1390_v51 = vadd.f32 %v1358_v27, %v1099_v5  ;;  %v1359_v4 = vmul.f32 %v3022_v15, %v1325_v54  ;;  %v1326_v3 = vsub.f32 %v1294_v47, %v3715_v63  ;;  %v1295_v33 = vmul.f32 2.0, %v1220_v17  ;;  %v3723_v63 = vld [vmem:[#allocation31_spill] sm:$0xff] }
 0x3bb   : > { %v1222_v21 = vpop.f32.mrf.mxu1  ;;  %v782_v60 = vmul.f32 %v2963_v53, %v3723_v63  ;;  %v812_v0 = vadd.f32 %v780_v14, %v2928_v32  ;;  %v1072_v9 = vmul.f32 %v2983_v39, %v3724_v24  ;;  %v813_v27 = vadd.f32 %v781_v13, %v2930_v10  ;;  %v3726_v54 = vld [vmem:[#allocation71_spill] sm:$0xff] }
 0x3bc   : > { %1422 = vst [vmem:[%s3054_s25 + $0x38] sm:$0xff] %v1390_v51  ;;  %v1391_v45 = vadd.f32 %v1359_v4, %v1100_v58  ;;  %v1360_v50 = vmul.f32 %v3022_v15, %v1326_v3  ;;  %v1327_v48 = vsub.f32 %v1295_v33, %v3717_v52  ;;  %v1296_v1 = vmul.f32 2.0, %v1222_v21  ;;  %v3725_v52 = vld [vmem:[#allocation34_spill] sm:$0xff] }
 0x3bd   : > { %v1226_v6 = vpop.f32.mrf.mxu1  ;;  %v783_v30 = vmul.f32 %v2963_v53, %v3725_v52  ;;  %v1103_v44 = vadd.f32 %v1071_v46, %v812_v0  ;;  %v1073_v32 = vmul.f32 %v2983_v39, %v3726_v54  ;;  %v1104_v17 = vadd.f32 %v1072_v9, %v813_v27  ;;  %v3728_v4 = vld [vmem:[#allocation74_spill] sm:$0xff] }
 0x3be   : > { %1423 = vst [vmem:[%s3054_s25 + $0x40] sm:$0xff] %v1391_v45  ;;  %v1392_v5 = vadd.f32 %v1360_v50, %v1101_v29  ;;  %v1361_v23 = vmul.f32 %v3022_v15, %v1327_v48  ;;  %v1328_v11 = vsub.f32 %v1296_v1, %v3719_v20  ;;  %v1297_v61 = vmul.f32 2.0, %v1226_v6  ;;  %v3727_v20 = vld [vmem:[#allocation33_spill] sm:$0xff]  ;;  %v3732_v6 = vld [vmem:[#allocation76_spill] sm:$0xff] }
 0x3bf   : > { %v1228_v47 = vpop.f32.mrf.mxu1  ;;  %v784_v34 = vmul.f32 %v2963_v53, %v3727_v20  ;;  %v814_v51 = vadd.f32 %v782_v60, %v2932_v26  ;;  %v1074_v10 = vmul.f32 %v2983_v39, %v3728_v4  ;;  %v815_v21 = vadd.f32 %v783_v30, %v2938_v12  ;;  %v3730_v45 = vld [vmem:[#allocation73_spill] sm:$0xff]  ;;  %v3736_v4 = vld [vmem:[#allocation78_spill] sm:$0xff] }
 0x3c0   : > { %1424 = vst [vmem:[%s3054_s25 + $0x48] sm:$0xff] %v1392_v5  ;;  %v1393_v14 = vadd.f32 %v1361_v23, %v1102_v49  ;;  %v1362_v58 = vmul.f32 %v3022_v15, %v1328_v11  ;;  %v1329_v18 = vsub.f32 %v1297_v61, %v3721_v40  ;;  %v1298_v31 = vmul.f32 2.0, %v1228_v47  ;;  %v3729_v40 = vld [vmem:[#allocation36_spill] sm:$0xff] }
 0x3c1   : > { %v1232_v3 = vpop.f32.mrf.mxu1  ;;  %v785_v41 = vmul.f32 %v2963_v53, %v3729_v40  ;;  %v1105_v46 = vadd.f32 %v1073_v32, %v814_v51  ;;  %v1075_v26 = vmul.f32 %v2983_v39, %v3730_v45  ;;  %v1106_v24 = vadd.f32 %v1074_v10, %v815_v21  ;;  %v3734_v32 = vld [vmem:[#allocation75_spill] sm:$0xff]  ;;  %v3738_v21 = vld [vmem:[#allocation77_spill] sm:$0xff] }
 0x3c2   : > { %1425 = vst [vmem:[%s3054_s25 + $0x50] sm:$0xff] %v1393_v14  ;;  %v1394_v33 = vadd.f32 %v1362_v58, %v1103_v44  ;;  %v1363_v13 = vmul.f32 %v3022_v15, %v1329_v18  ;;  %v1330_v29 = vsub.f32 %v1298_v31, %v3723_v63  ;;  %v1299_v42 = vmul.f32 2.0, %v1232_v3  ;;  %v3731_v63 = vld [vmem:[#allocation35_spill] sm:$0xff] }
 0x3c3   : > { %v1234_v50 = vpop.f32.mrf.mxu1  ;;  %v786_v0 = vmul.f32 %v2963_v53, %v3731_v63  ;;  %v816_v9 = vadd.f32 %v784_v34, %v2940_v28  ;;  %v1076_v12 = vmul.f32 %v2983_v39, %v3732_v6  ;;  %v817_v54 = vadd.f32 %v785_v41, %v2948_v43 }
 0x3c4   : > { %1426 = vst [vmem:[%s3054_s25 + $0x58] sm:$0xff] %v1394_v33  ;;  %v1395_v48 = vadd.f32 %v1363_v13, %v1104_v17  ;;  %v1364_v1 = vmul.f32 %v3022_v15, %v1330_v29  ;;  %v1331_v60 = vsub.f32 %v1299_v42, %v3725_v52  ;;  %v1300_v49 = vmul.f32 2.0, %v1234_v50  ;;  %v3733_v52 = vld [vmem:[#allocation38_spill] sm:$0xff]  ;;  %v3737_v42 = vld [vmem:[#allocation40_spill] sm:$0xff] }
 0x3c5   : > { %v1238_v5 = vpop.f32.mrf.mxu1  ;;  %v787_v44 = vmul.f32 %v2963_v53, %v3733_v52  ;;  %v1107_v27 = vadd.f32 %v1075_v26, %v816_v9  ;;  %v1077_v28 = vmul.f32 %v2983_v39, %v3734_v32  ;;  %v1108_v17 = vadd.f32 %v1076_v12, %v817_v54 }
 0x3c6   : > { %1427 = vst [vmem:[%s3054_s25 + $0x60] sm:$0xff] %v1395_v48  ;;  %v1396_v23 = vadd.f32 %v1364_v1, %v1105_v46  ;;  %v1365_v11 = vmul.f32 %v3022_v15, %v1331_v60  ;;  %v1332_v61 = vsub.f32 %v1300_v49, %v3727_v20  ;;  %v1301_v30 = vmul.f32 2.0, %v1238_v5  ;;  %v3735_v20 = vld [vmem:[#allocation37_spill] sm:$0xff]  ;;  %v3739_v60 = vld [vmem:[#allocation39_spill] sm:$0xff] }
 0x3c7   : > { %v1240_v47 = vpop.f32.mrf.mxu1  ;;  %v788_v34 = vmul.f32 %v2963_v53, %v3735_v20  ;;  %v818_v51 = vadd.f32 %v786_v0, %v2950_v37  ;;  %v1078_v43 = vmul.f32 %v2983_v39, %v3736_v4  ;;  %v819_v46 = vadd.f32 %v787_v44, %v2965_v55  ;;  %v3742_v44 = vld [vmem:[#allocation79_spill] sm:$0xff] }
 0x3c8   : > { %1428 = vst [vmem:[%s3054_s25 + $0x68] sm:$0xff] %v1396_v23  ;;  %v1397_v14 = vadd.f32 %v1365_v11, %v1106_v24  ;;  %v1366_v58 = vmul.f32 %v3022_v15, %v1332_v61  ;;  %v1333_v18 = vsub.f32 %v1301_v30, %v3729_v40  ;;  %v1302_v31 = vmul.f32 2.0, %v1240_v47  ;;  %v3740_v24 = vld [vmem:[#allocation80_spill] sm:$0xff]  ;;  %v3741_v11 = vld [vmem:[#allocation53_spill] sm:$0xff] }
 0x3c9   : > { %v1244_v10 = vpop.f32.mrf.mxu1  ;;  %v789_v40 = vmul.f32 %v2963_v53, %v3737_v42  ;;  %v1109_v41 = vadd.f32 %v1077_v28, %v818_v51  ;;  %v1079_v37 = vmul.f32 %v2983_v39, %v3738_v21  ;;  %v790_v49 = vmul.f32 %v2963_v53, %v3739_v60 }
 0x3ca   : > { %1429 = vst [vmem:[%s3054_s25 + $0x70] sm:$0xff] %v1397_v14  ;;  %v1398_v3 = vadd.f32 %v1366_v58, %v1107_v27  ;;  %v1367_v33 = vmul.f32 %v3022_v15, %v1333_v18  ;;  %v1334_v13 = vsub.f32 %v1302_v31, %v3731_v63  ;;  %v1303_v29 = vmul.f32 2.0, %v1244_v10  ;;  %v3743_v14 = vld [vmem:[#allocation41_spill] sm:$0xff]  ;;  %v3745_v10 = vld [vmem:[#allocation55_spill] sm:$0xff] }
 0x3cb   : > { %v1246_v45 = vpop.f32.mrf.mxu1  ;;  %v1110_v63 = vadd.f32 %v1078_v43, %v819_v46  ;;  %v820_v0 = vadd.f32 %v788_v34, %v2968_v25  ;;  %v1080_v55 = vmul.f32 %v2983_v39, %v3740_v24  ;;  %v791_v61 = vmul.f32 %v2963_v53, %v3741_v11  ;;  %v3749_v24 = vld [vmem:[#allocation48_spill] sm:$0xff] }
 0x3cc   : > { %1430 = vst [vmem:[%s3054_s25 + $0x78] sm:$0xff] %v1398_v3  ;;  %v1399_v26 = vadd.f32 %v1367_v33, %v1108_v17  ;;  %v1368_v50 = vmul.f32 %v3022_v15, %v1334_v13  ;;  %v1335_v48 = vsub.f32 %v1303_v29, %v3733_v52  ;;  %v1304_v1 = vmul.f32 2.0, %v1246_v45  ;;  %v3746_v29 = vld [vmem:[#allocation81_spill] sm:$0xff] }
 0x3cd   : > { %v1250_v9 = vpop.f32.mrf.mxu1  ;;  %v1111_v30 = vadd.f32 %v1079_v37, %v820_v0  ;;  %v821_v52 = vadd.f32 %v789_v40, %v2975_v62  ;;  %v1081_v25 = vmul.f32 %v2983_v39, %v3742_v44  ;;  %v792_v58 = vmul.f32 %v2963_v53, %v3743_v14  ;;  %v3747_v37 = vld [vmem:[#allocation54_spill] sm:$0xff] }
 0x3ce   : > { %1431 = vst [vmem:[%s3054_s25 + $0x80] sm:$0xff] %v1399_v26  ;;  %v1400_v6 = vadd.f32 %v1368_v50, %v1109_v41  ;;  %v1369_v12 = vmul.f32 %v3022_v15, %v1335_v48  ;;  %v1336_v5 = vsub.f32 %v1304_v1, %v3735_v20  ;;  %v1305_v23 = vmul.f32 2.0, %v1250_v9  ;;  %v3744_v20 = vld [vmem:[#allocation82_spill] sm:$0xff]  ;;  %v3748_v48 = vld [vmem:[#allocation84_spill] sm:$0xff] }
 0x3cf   : > { %v1252_v27 = vpop.f32.mrf.mxu1  ;;  %v1112_v18 = vadd.f32 %v1080_v55, %v821_v52  ;;  %v822_v31 = vadd.f32 %v790_v49, %v2978_v35  ;;  %v1082_v62 = vmul.f32 %v2983_v39, %v3744_v20  ;;  %v793_v3 = vmul.f32 %v2963_v53, %v3745_v10  ;;  %v3751_v52 = vld [vmem:[#allocation56_spill] sm:$0xff] }
 0x3d0   : > { %1432 = vst [vmem:[%s3054_s25 + $0x88] sm:$0xff] %v1400_v6  ;;  %v1401_v54 = vadd.f32 %v1369_v12, %v1110_v63  ;;  %v1370_v32 = vmul.f32 %v3022_v15, %v1336_v5  ;;  %v1337_v28 = vsub.f32 %v1305_v23, %v3737_v42  ;;  %v1306_v47 = vmul.f32 2.0, %v1252_v27  ;;  %v3750_v12 = vld [vmem:[#allocation83_spill] sm:$0xff] }
 0x3d1   : > { %v1256_v34 = vpop.f32.mrf.mxu1  ;;  %v1113_v33 = vadd.f32 %v1081_v25, %v822_v31  ;;  %v823_v13 = vadd.f32 %v791_v61, %v2986_v36  ;;  %v1083_v35 = vmul.f32 %v2983_v39, %v3746_v29  ;;  %v794_v45 = vmul.f32 %v2963_v53, %v3747_v37 }
 0x3d2   : > { %1433 = vst [vmem:[%s3054_s25 + $0x90] sm:$0xff] %v1401_v54  ;;  %v1402_v17 = vadd.f32 %v1370_v32, %v1111_v30  ;;  %v1371_v51 = vmul.f32 %v3022_v15, %v1337_v28  ;;  %v1338_v4 = vsub.f32 %v1306_v47, %v3739_v60  ;;  %v1307_v43 = vmul.f32 2.0, %v1256_v34  ;;  %v3752_v54 = vld [vmem:[#allocation86_spill] sm:$0xff]  ;;  %v3754_v34 = vld [vmem:[#allocation85_spill] sm:$0xff] }
 0x3d3   : > { %v1258_v42 = vpop.f32.mrf.mxu1  ;;  %v1114_v26 = vadd.f32 %v1082_v62, %v823_v13  ;;  %v824_v50 = vadd.f32 %v792_v58, %v2989_v22  ;;  %v1084_v36 = vmul.f32 %v2983_v39, %v3748_v48  ;;  %v795_v55 = vmul.f32 %v2963_v53, %v3749_v24  ;;  %v3758_v48 = vld [vmem:[#allocation87_spill] sm:$0xff] }
 0x3d4   : > { %1434 = vst [vmem:[%s3054_s25 + $0x98] sm:$0xff] %v1402_v17  ;;  %v1403_v40 = vadd.f32 %v1371_v51, %v1112_v18  ;;  %v1372_v41 = vmul.f32 %v3022_v15, %v1338_v4  ;;  %v1339_v46 = vsub.f32 %v1307_v43, %v3741_v11  ;;  %v1308_v21 = vmul.f32 2.0, %v1258_v42  ;;  %v3753_v18 = vld [vmem:[#allocation58_spill] sm:$0xff] }
 0x3d5   : > { %v1262_v1 = vpop.f32.mrf.mxu1  ;;  %v1115_v9 = vadd.f32 %v1083_v35, %v824_v50  ;;  %v825_v6 = vadd.f32 %v793_v3, %v2996_v38  ;;  %v1085_v22 = vmul.f32 %v2983_v39, %v3750_v12  ;;  %v796_v44 = vmul.f32 %v2963_v53, %v3751_v52  ;;  %v3755_v3 = vld [vmem:[#allocation57_spill] sm:$0xff]  ;;  %v3756_v35 = vld [vmem:[#allocation88_spill] sm:$0xff] }
 0x3d6   : > { %1435 = vst [vmem:[%s3054_s25 + $0xa0] sm:$0xff] %v1403_v40  ;;  %v1404_v60 = vadd.f32 %v1372_v41, %v1113_v33  ;;  %v1373_v49 = vmul.f32 %v3022_v15, %v1339_v46  ;;  %v1340_v63 = vsub.f32 %v1308_v21, %v3743_v14  ;;  %v1309_v0 = vmul.f32 2.0, %v1262_v1 }
 0x3d7   : > { %v1264_v5 = vpop.f32.mrf.mxu1  ;;  %v1116_v25 = vadd.f32 %v1084_v36, %v825_v6  ;;  %v826_v27 = vadd.f32 %v794_v45, %v2999_v57  ;;  %v1086_v38 = vmul.f32 %v2983_v39, %v3752_v54  ;;  %v797_v31 = vmul.f32 %v2963_v53, %v3753_v18  ;;  %v3760_v6 = vld [vmem:[#allocation90_spill] sm:$0xff] }
 0x3d8   : > { %1436 = vst [vmem:[%s3054_s25 + $0xa8] sm:$0xff] %v1404_v60  ;;  %v1405_v23 = vadd.f32 %v1373_v49, %v1114_v26  ;;  %v1374_v11 = vmul.f32 %v3022_v15, %v1340_v63  ;;  %v1341_v61 = vsub.f32 %v1309_v0, %v3745_v10  ;;  %v1310_v30 = vmul.f32 2.0, %v1264_v5  ;;  %v3759_v0 = vld [vmem:[#allocation59_spill] sm:$0xff] }
 0x3d9   : > { %v1268_v32 = vpop.f32.mrf.mxu1  ;;  %v1117_v20 = vadd.f32 %v1085_v22, %v826_v27  ;;  %v827_v62 = vadd.f32 %v795_v55, %v3002_v2  ;;  %v1087_v57 = vmul.f32 %v2983_v39, %v3754_v34  ;;  %v798_v33 = vmul.f32 %v2963_v53, %v3755_v3 }
 0x3da   : > { %1437 = vst [vmem:[%s3054_s25 + $0xb0] sm:$0xff] %v1405_v23  ;;  %v1406_v28 = vadd.f32 %v1374_v11, %v1115_v9  ;;  %v1375_v47 = vmul.f32 %v3022_v15, %v1341_v61  ;;  %v1342_v14 = vsub.f32 %v1310_v30, %v3747_v37  ;;  %v1311_v58 = vmul.f32 2.0, %v1268_v32  ;;  %v3757_v37 = vld [vmem:[#allocation52_spill] sm:$0xff]  ;;  %v3761_v30 = vld [vmem:[#allocation89_spill] sm:$0xff] }
 0x3db   : > { %v1270_v17 = vpop.f32.mrf.mxu1  ;;  %v1118_v13 = vadd.f32 %v1086_v38, %v827_v62  ;;  %v828_v29 = vadd.f32 %v796_v44, %v3007_v7  ;;  %v1088_v2 = vmul.f32 %v2983_v39, %v3756_v35  ;;  %v799_v45 = vmul.f32 %v2963_v53, %v3757_v37 }
 0x3dc   : > { %1438 = vst [vmem:[%s3054_s25 + $0xb8] sm:$0xff] %v1406_v28  ;;  %v1407_v51 = vadd.f32 %v1375_v47, %v1116_v25  ;;  %v1376_v4 = vmul.f32 %v3022_v15, %v1342_v14  ;;  %v1343_v43 = vsub.f32 %v1311_v58, %v3749_v24  ;;  %v1312_v10 = vmul.f32 2.0, %v1270_v17 }
 0x3dd   : > { %v1274_v42 = vpop.f32.mrf.mxu1  ;;  %v1119_v26 = vadd.f32 %v1087_v57, %v828_v29  ;;  %v829_v50 = vadd.f32 %v797_v31, %v3010_v8  ;;  %v1089_v7 = vmul.f32 %v2983_v39, %v3758_v48  ;;  %v800_v24 = vmul.f32 %v2963_v53, %v3759_v0 }
 0x3de   : > { %1439 = vst [vmem:[%s3054_s25 + $0xc0] sm:$0xff] %v1407_v51  ;;  %v1408_v40 = vadd.f32 %v1376_v4, %v1117_v20  ;;  %v1377_v41 = vmul.f32 %v3022_v15, %v1343_v43  ;;  %v1344_v46 = vsub.f32 %v1312_v10, %v3751_v52  ;;  %v1313_v21 = vmul.f32 2.0, %v1274_v42 }
 0x3df   : > { %v1276_v36 = vpop.f32.mrf.mxu1  ;;  %v1120_v55 = vadd.f32 %v1088_v2, %v829_v50  ;;  %v830_v9 = vadd.f32 %v798_v33, %v3015_v56  ;;  %v1090_v8 = vmul.f32 %v2983_v39, %v3760_v6  ;;  %v541_v61 = vadd.f32 %v3031_v19, %v2869_v59 }
 0x3e0   : > { %1440 = vst [vmem:[%s3054_s25 + $0xc8] sm:$0xff] %v1408_v40  ;;  %v1409_v1 = vadd.f32 %v1377_v41, %v1118_v13  ;;  %v1378_v60 = vmul.f32 %v3022_v15, %v1344_v46  ;;  %v1345_v49 = vsub.f32 %v1313_v21, %v3753_v18  ;;  %v1314_v63 = vmul.f32 2.0, %v1276_v36 }
 0x3e1   : > { %v1280_v12 = vpop.f32.mrf.mxu1  ;;  %v1121_v53 = vadd.f32 %v1089_v7, %v830_v9  ;;  %v831_v56 = vadd.f32 %v799_v45, %v3025_v16  ;;  %v1091_v52 = vmul.f32 %v2983_v39, %v3761_v30  ;;  %v832_v32 = vadd.f32 %v800_v24, %v541_v61 }
 0x3e2   : > { %1441 = vst [vmem:[%s3054_s25 + $0xd0] sm:$0xff] %v1409_v1  ;;  %v1410_v22 = vadd.f32 %v1378_v60, %v1119_v26  ;;  %v1379_v5 = vmul.f32 %v3022_v15, %v1345_v49  ;;  %v1346_v23 = vsub.f32 %v1314_v63, %v3755_v3  ;;  %v1315_v11 = vmul.f32 2.0, %v1280_v12 }
 0x3e3   : > { %v1282_v44 = vpop.f32.mrf.mxu1  ;;  %v1122_v59 = vadd.f32 %v1090_v8, %v831_v56  ;;  %v1123_v28 = vadd.f32 %v1091_v52, %v832_v32 }
 0x3e4   : > { %1442 = vst [vmem:[%s3054_s25 + $0xd8] sm:$0xff] %v1410_v22  ;;  %v1411_v25 = vadd.f32 %v1379_v5, %v1120_v55  ;;  %v1380_v27 = vmul.f32 %v3022_v15, %v1346_v23  ;;  %v1347_v54 = vsub.f32 %v1315_v11, %v3757_v37  ;;  %v1316_v38 = vmul.f32 2.0, %v1282_v44 }
 0x3e6   : > { %1443 = vst [vmem:[%s3054_s25 + $0xe0] sm:$0xff] %v1411_v25  ;;  %v1412_v19 = vadd.f32 %v1380_v27, %v1121_v53  ;;  %v1381_v16 = vmul.f32 %v3022_v15, %v1347_v54  ;;  %v1348_v39 = vsub.f32 %v1316_v38, %v3759_v0 }
 0x3e8   : > { %1444 = vst [vmem:[%s3054_s25 + $0xe8] sm:$0xff] %v1412_v19  ;;  %v1413_v47 = vadd.f32 %v1381_v16, %v1122_v59  ;;  %v1382_v14 = vmul.f32 %v3022_v15, %v1348_v39 }
 0x3ea   : > { %1445 = vst [vmem:[%s3054_s25 + $0xf0] sm:$0xff] %v1413_v47  ;;  %v1414_v58 = vadd.f32 %v1382_v14, %v1123_v28 }
 0x3ec   : > { %1446 = vst [vmem:[%s3054_s25 + $0xf8] sm:$0xff] %v1414_v58 }
 0x3ed   : > { %1714 = shalt.err (!%p1711_p0)
}
 0x3ee   : > { %s1715_s24 = scalar_lea.hbm %s3285_s10, 4096  ;;  %s1719_s20 = scalar_lea.hbm %s3335_s3, 8192 }
 0x3ef   : > { %p1716_p5 = scmp.ne.s32.totalorder %s3285_s10, %s1715_s24  ;;  %p1720_p6 = scmp.lt.s32.totalorder %s3285_s10, %s3335_s3 }
 0x3f0   : > { %p1721_p7 = scmp.lt.s32.totalorder %s1719_s20, %s1715_s24 }
 0x3f1   : > { %p1717_p2 = pnand %p1716_p5, %p3762_p3 }
 0x3f2   : > { %p1722_p4 = por %p1721_p7, %p1720_p6 }
 0x3f3   : > { %p1718_p1 = pneg %p1717_p2 }
 0x3f5   : > { %p1723_p8 = pnand %p1722_p4, %p1718_p1 }
 0x3f7   : > { %1726 = shalt.err (!%p1723_p8)
}
 0x3f8   : > { %s1779_s14 = smov 256   ;;  %s1780_s23 = smov 16  }
 0x3f9   : > { %1579 = dma.vmem_to_hbm [thread:$0]  (%p3762_p3), %s3287_s29, 4096, %s3285_s10, %s1448_s0, %s1779_s14, %s1779_s14, %s1780_s23  }
 0x3fa PF: > { %s1477_s25 = sand.u32 1, %s1759_s15   ;;  %p3763_p11 = scmp.ne.s32.totalorder %s3514_s21, 0 }
 0x3fb   : > { %p3764_p9 = scmp.ge.s32.totalorder %s1771_s18, 2  ;;  %s1478_s28 = scalar_lea.sflag [#allocation6], %s1477_s25 }
 0x3fd   : > { %p1590_p10 = pnand %p3764_p9, %p3763_p11 }
 0x3ff   : > { %p1591_p12 = pneg %p1590_p10 }
 0x401   : > { %1754 = dma.done.wait (%p1591_p12), %s1478_s28, 4096  }
 0x402   : > { %1756 = vsyncadd (%p1591_p12), %s1478_s28, 4294963200  ;;  %p21_p13 = scmp.ge.s32.totalorder %s1858_s26, 4   ;;  %s3765_s15 = smov %s1763_s16 }
 0x403   : > { %s3766_s16 = smov %s1767_s17  ;;  %s3767_s17 = smov %s1878_s7 }
 0x404   : > { %s3768_s18 = smov %s1858_s26  ;;  %23 = sbr.rel (!%p21_p13) target bundleno = 11 (0xb), region = 78 }
 0x409   :  { %1483 = vsyncpa [#allocation5], 1 }
 0x40a   :  { %1485 = vsyncpa [#allocation5 + $0x1], 1 }
 0x40b   :  { %1486 = vsyncpa [#allocation8], 1 }
 0x40c   :  { %1488 = vsyncpa [#allocation8 + $0x1], 1 }
 0x40d   :  { %1489 = vsyncpa [#allocation6], 1 }
 0x40e   :  { %1491 = vsyncpa [#allocation6 + $0x1], 1 }

// kernel: tpu_custom_call.1
= control target key start
LH: loop header
LB: loop body
LE: loop exit
PB: predicated region body
PF: predicated region fallthrough
CT: control target
= control target key end

     0   :  { %s1773_s12 = smov [#allocation3]   ;;  %s3332_s0 = inlined_call_operand.hbm [shape: f32[5], index: 0, kind: input, shape index: {}]   ;;  %s3333_s1 = inlined_call_operand.hbm [shape: f32[256,256], index: 1, kind: input, shape index: {}]   ;;  %s3334_s2 = inlined_call_operand.hbm [shape: f32[256,256], index: 2, kind: input, shape index: {}]   ;;  %s3335_s3 = inlined_call_operand.hbm [shape: f32[256,256], index: 3, kind: output, shape index: {}]  }
   0x1   :  { %9 = dma.hbm_to_smem %s3332_s0, 16, %s1773_s12, [#allocation2] }
   0x2   :  { %1743 = dma.done.wait [#allocation2], 16 }
   0x3   :  { %1744 = vsyncadd [#allocation2], 4294967280 }
   0x4   :  { %11 = sfence }
   0x5   :  { %12 = vsyncpa [#allocation5], 0 }
   0x6   :  { %13 = vsyncpa [#allocation8], 0 }
   0x7   :  { %15 = vsyncpa [#allocation8 + $0x1], 0 }
   0x8   :  { %16 = vsyncpa [#allocation6], 0 }
   0x9   :  { %18 = vsyncpa [#allocation6 + $0x1], 0  ;;  %s1804_s15 = smov 0   ;;  %s1806_s16 = smov 0  }
   0xa   :  { %s1808_s17 = smov 0   ;;  %s1810_s18 = smov 0  }
   0xb LB: > { %s1825_s0 = sadd.s32 4294967295, %s1771_s18   ;;  %s1547_s19 = sadd.s32 4294967294, %s1771_s18   ;;  %s1771_s18 = sphi %s1810_s18, %s3768_s18   ;;  %s1767_s17 = sphi %s1808_s17, %s3767_s17   ;;  %s1763_s16 = sphi %s1806_s16, %s3766_s16   ;;  %s1759_s15 = sphi %s1804_s15, %s3765_s15  }
   0xc   : > { %p65_p0 = scmp.ne.s32.totalorder %s1763_s16, %s1759_s15  ;;  %p3336_p1 = scmp.eq.s32.totalorder %s1825_s0, 0 }
   0xd   : > { %p95_p3 = scmp.eq.s32.totalorder %s1547_s19, 1  ;;  %p1548_p5 = scmp.ge.s32.totalorder %s1771_s18, 1 }
   0xe   : > { %p1834_p4 = por %p3336_p1, %p65_p0  ;;  %p102_p7 = scmp.lt.s32.totalorder %s1771_s18, 3 }
   0xf   : > { %p1839_p6 = por %p95_p3, %p65_p0  ;;  %s1774_s23 = smov [#allocation4]  }
  0x10   : > { %s3513_s20 = scalar_select %p1834_p4, 1, 0 }
  0x11   : > { %s3514_s21 = scalar_select %p1839_p6, 1, 0 }
  0x12   : > { %p1844_p8 = pnand %p1548_p5, %p102_p7  ;;  %s114_s24 = sshll.u32 %s1774_s23, 4  ;;  %s115_s24 = int_to_ptr.vmem [resolvable:$true] %s114_s24 }
  0x13   : > { %s1858_s26 = sadd.s32 1, %s1771_s18   ;;  %s52_s27 = sadd.s32 1, %s1767_s17 }
  0x14   : > { %s3515_s22 = scalar_select %p1844_p8, 1, 0 }
  0x15   : > { %p1581_p9 = pneg %p1844_p8  ;;  %s49_s28 = ssub.s32 %s1771_s18, %s1858_s26 }
  0x16   : > { %s1658_s29 = scalar_lea.vmem %s115_s24, 8192  ;;  %p1666_p5 = scmp.lt.s32.totalorder %s115_s24, %s115_s24 }
  0x17   : > { %p1853_p11 = pnand %p1581_p9, %p3336_p1  ;;  %p1659_p13 = scmp.ne.s32.totalorder %s115_s24, %s1658_s29 }
  0x18   : > { %p1667_p7 = scmp.lt.s32.totalorder %s1658_s29, %s1658_s29 }
  0x19   : > { %p1649_p12 = pneg %p1853_p11 }
  0x1a   : > { %p1668_p10 = por %p1667_p7, %p1666_p5 }
  0x1b   : > { %p1661_p0 = pnand %p1659_p13, %p1649_p12 }
  0x1d   : > { %p1662_p3 = pneg %p1661_p0 }
  0x1f   : > { %p1669_p2 = pnand %p1668_p10, %p1662_p3 }
  0x21   : > { %1672 = shalt.err (!%p1669_p2)
}
  0x22   : > { %s1775_s30 = smov 256   ;;  %s1776_s4 = smov 16  }
  0x23   : > { %1584 = dma.hbm_to_vmem [thread:$0]  (!%p1853_p11), %s3333_s1, 8192, %s115_s24, [#allocation5], %s1775_s30, %s1775_s30, %s1776_s4  }
  0x24   : > { %p50_p2 = scmp.eq.s32.totalorder %s49_s28, 0  ;;  %p59_p9 = scmp.ne.s32.totalorder %s1767_s17, %s1763_s16 }
  0x25   : > { %p60_p10 = scmp.eq.s32.totalorder %s1771_s18, 0  ;;  %p1594_p12 = scmp.lt.s32.totalorder %s1771_s18, 2 }
  0x26   : > { %s1878_s7 = scalar_select %p50_p2, %s1767_s17, %s52_s27  }
  0x27   : > { %p61_p13 = por %p60_p10, %p59_p9  ;;  %p3517_p0 = scmp.eq.s32.totalorder %s1825_s0, 1 }
  0x28   : > { %s128_s9 = sand.u32 1, %s1767_s17   ;;  %s1570_s10 = sshll.u32 %s1771_s18, 12 }
  0x29   : > { %p1882_p3 = por %p3517_p0, %p59_p9  ;;  %s1551_s11 = sshll.u32 %s128_s9, 8 }
  0x2a   : > { %s1891_s14 = scalar_lea.hbm %s3334_s2, %s1570_s10  ;;  %s132_s19 = scalar_lea.vmem [#allocation7], %s1551_s11 }
  0x2b   : > { %s3518_s8 = scalar_select %p1882_p3, 1, 0 }
  0x2c   : > { %s140_s23 = sshll.u32 %s132_s19, 4  ;;  %p1893_p11 = pnand %p1594_p12, %p61_p13  ;;  %s1897_s23 = int_to_ptr.vmem [resolvable:$true] %s140_s23 }
  0x2d   : > { %s1899_s25 = scalar_lea.sflag [#allocation8], %s128_s9  ;;  %s1673_s27 = scalar_lea.hbm %s1891_s14, 4096 }
  0x2e   : > { %p1674_p5 = scmp.ne.s32.totalorder %s1891_s14, %s1673_s27  ;;  %p1675_p7 = pneg %p1893_p11 }
  0x2f   : > { %s1678_s5 = scalar_lea.hbm %s3334_s2, 8192  ;;  %p1679_p10 = scmp.lt.s32.totalorder %s1891_s14, %s3334_s2 }
  0x30   : > { %p1676_p2 = pnand %p1675_p7, %p1674_p5  ;;  %p1680_p12 = scmp.lt.s32.totalorder %s1678_s5, %s1673_s27 }
  0x32   : > { %p1677_p9 = pneg %p1676_p2  ;;  %p1681_p13 = por %p1680_p12, %p1679_p10 }
  0x34   : > { %p1682_p0 = pnand %p1681_p13, %p1677_p9 }
  0x36   : > { %1685 = shalt.err (!%p1682_p0)
}
  0x37   : > { %s1686_s9 = scalar_lea.vmem %s1897_s23, 4096  ;;  %s1777_s11 = smov [#allocation7]  }
  0x38   : > { %p1687_p1 = scmp.ne.s32.totalorder %s1897_s23, %s1686_s9  ;;  %s1691_s12 = sshll.u32 %s1777_s11, 4  ;;  %s1692_s12 = int_to_ptr.vmem [resolvable:$false] %s1691_s12 }
  0x39   : > { %s1693_s13 = scalar_lea.vmem %s1692_s12, 8192  ;;  %p1694_p2 = scmp.lt.s32.totalorder %s1897_s23, %s1692_s12 }
  0x3a   : > { %p1689_p6 = pnand %p1687_p1, %p1675_p7  ;;  %p1695_p3 = scmp.lt.s32.totalorder %s1693_s13, %s1686_s9 }
  0x3c   : > { %p1690_p5 = pneg %p1689_p6  ;;  %p1696_p4 = por %p1695_p3, %p1694_p2 }
  0x3e   : > { %p1697_p8 = pnand %p1696_p4, %p1690_p5 }
  0x40   : > { %1700 = shalt.err (!%p1697_p8)
}
  0x41   : > { %1588 = dma.hbm_to_vmem [thread:$0]  (!%p1893_p11), %s1891_s14, 4096, %s1897_s23, %s1899_s25, %s1775_s30, %s1775_s30, %s1776_s4  }
  0x42   : > { %p3520_p1 = scmp.ne.s32.totalorder %s3515_s22, 0 }
  0x44   : > { %152 = sbr.rel (%p3520_p1) target bundleno = 1018 (0x3fa), region = 28 }
  0x49   : > { %p3521_p6 = scmp.eq.s32.totalorder %s1825_s0, 0 }
  0x4b   : > { %1746 = dma.done.wait (%p3521_p6), [#allocation5], 8192   ;;  %p3522_p7 = pmov %p3521_p6 }
  0x4c   : > { %s1930_s19 = sand.u32 1, %s1763_s16   ;;  %p3523_p4 = scmp.ne.s32.totalorder %s3513_s20, 0 }
  0x4d   : > { %1748 = vsyncadd (%p3522_p7), [#allocation5], 4294959104  ;;  %s1557_s24 = sshll.u32 %s1930_s19, 8  ;;  %s159_s27 = scalar_lea.sflag [#allocation8], %s1930_s19 }
  0x4e   : > { %s1936_s30 = scalar_lea.vmem [#allocation7], %s1557_s24 }
  0x4f   : > { %1750 = dma.done.wait (%p3523_p4), %s159_s27, 4096  }
  0x50   : > { %1752 = vsyncadd (%p3523_p4), %s159_s27, 4294963200  ;;  %v1942_v0 = vld [vmem:[#allocation4 + $0xf8] sm:$0xff]  ;;  %v1944_v1 = vld [vmem:[#allocation4 + $0xf0] sm:$0xff]  ;;  %s281_s20 = sld [smem:[#allocation3]]  ;;  %s3054_s25 = scalar_lea.vmem [#allocation9], %s1557_s24 }
  0x51   : > { %v1946_v2 = vld [vmem:[#allocation4 + $0xe8] sm:$0xff]  ;;  %315 = vmatprep.subr.mxu0 %v1942_v0  ;;  %v1949_v3 = vld [vmem:[#allocation4 + $0xe0] sm:$0xff]  ;;  %542 = vmatprep.subr.mxu1 %v1942_v0  ;;  %v1953_v4 = vld [vmem:[#allocation4 + $0xd8] sm:$0xff]  ;;  %s1559_s22 = sld [smem:[#allocation3 + $0x1]]  ;;  %s1572_s28 = sshll.u32 %s1825_s0, 12 }
  0x52   : > { %316 = vmatpush1.msra.mxu0 %v1944_v1  ;;  %543 = vmatpush1.msra.mxu1 %v1944_v1  ;;  %v1957_v5 = vld [vmem:[#allocation4 + $0xd0] sm:$0xff]  ;;  %v1961_v6 = vld [vmem:[#allocation4 + $0xc8] sm:$0xff]  ;;  %v1965_v7 = vld [vmem:[#allocation4 + $0xc0] sm:$0xff]  ;;  %s2894_s4 = sld [smem:[#allocation3 + $0x2]]  ;;  %s1462_s29 = sshll.u32 %s3054_s25, 4  ;;  %s3287_s29 = int_to_ptr.vmem [resolvable:$true] %s1462_s29 }
  0x53   : > { %317 = vmatprep.subr.mxu0 %v1946_v2  ;;  %544 = vmatprep.subr.mxu1 %v1946_v2  ;;  %v1969_v8 = vld [vmem:[#allocation4 + $0xb8] sm:$0xff]  ;;  %v1973_v9 = vld [vmem:[#allocation4 + $0xb0] sm:$0xff]  ;;  %v1977_v10 = vld [vmem:[#allocation4 + $0xa8] sm:$0xff]  ;;  %s2912_s14 = sld [smem:[#allocation3 + $0x3]]  ;;  %s3285_s10 = scalar_lea.hbm %s3335_s3, %s1572_s28 }
  0x54   : > { %318 = vmatpush1.msra.mxu0 %v1949_v3  ;;  %545 = vmatpush1.msra.mxu1 %v1949_v3  ;;  %v1981_v11 = vld [vmem:[#allocation4 + $0xa0] sm:$0xff]  ;;  %v1985_v12 = vld [vmem:[#allocation4 + $0x98] sm:$0xff]  ;;  %v1989_v13 = vld [vmem:[#allocation4 + $0x90] sm:$0xff]  ;;  %s2946_s23 = sld [smem:[#allocation3 + $0x4]]  ;;  %s1448_s0 = scalar_lea.sflag [#allocation6], %s1930_s19 }
  0x55   : > { %319 = vmatprep.subr.mxu0 %v1953_v4  ;;  %546 = vmatprep.subr.mxu1 %v1953_v4  ;;  %v1993_v14 = vld [vmem:[#allocation4 + $0x88] sm:$0xff]  ;;  %v1997_v15 = vld [vmem:[#allocation4 + $0x80] sm:$0xff]  ;;  %v2001_v16 = vld [vmem:[#allocation4 + $0x78] sm:$0xff]  ;;  %s1701_s9 = scalar_lea.vmem %s3287_s29, 4096  ;;  %p3762_p3 = scmp.ne.s32.totalorder %s3518_s8, 0 }
  0x56   : > { %320 = vmatpush1.msra.mxu0 %v1957_v5  ;;  %547 = vmatpush1.msra.mxu1 %v1957_v5  ;;  %v2005_v17 = vld [vmem:[#allocation4 + $0x70] sm:$0xff]  ;;  %v2009_v18 = vld [vmem:[#allocation4 + $0x68] sm:$0xff]  ;;  %v2013_v19 = vld [vmem:[#allocation4 + $0x60] sm:$0xff]  ;;  %p1702_p8 = scmp.ne.s32.totalorder %s3287_s29, %s1701_s9  ;;  %s1778_s11 = smov [#allocation9]  }
  0x57   : > { %321 = vmatprep.subr.mxu0 %v1961_v6  ;;  %548 = vmatprep.subr.mxu1 %v1961_v6  ;;  %v2017_v20 = vld [vmem:[#allocation4 + $0x58] sm:$0xff]  ;;  %v2021_v21 = vld [vmem:[#allocation4 + $0x50] sm:$0xff]  ;;  %v2025_v22 = vld [vmem:[#allocation4 + $0x48] sm:$0xff]  ;;  %s1705_s12 = sshll.u32 %s1778_s11, 4  ;;  %s1706_s12 = int_to_ptr.vmem [resolvable:$false] %s1705_s12 }
  0x58   : > { %322 = vmatpush1.msra.mxu0 %v1965_v7  ;;  %549 = vmatpush1.msra.mxu1 %v1965_v7  ;;  %v2029_v23 = vld [vmem:[#allocation4 + $0x40] sm:$0xff]  ;;  %v2032_v24 = vld [vmem:[%s1936_s30 + $0x8] sm:$0xff]  ;;  %v2036_v25 = vld [vmem:[#allocation4 + $0x38] sm:$0xff]  ;;  %p1703_p11 = pnand %p1702_p8, %p3762_p3  ;;  %s1707_s13 = scalar_lea.vmem %s1706_s12, 8192 }
  0x59   : > { %323 = vmatprep.subr.mxu0 %v1969_v8  ;;  %550 = vmatprep.subr.mxu1 %v1969_v8  ;;  %3524 = vst [vmem:[#allocation14_spill] sm:$0xff] %v2032_v24  ;;  %v2040_v26 = vld [vmem:[#allocation4 + $0x30] sm:$0xff]  ;;  %v2044_v27 = vld [vmem:[#allocation4 + $0x28] sm:$0xff]  ;;  %v2048_v28 = vld [vmem:[#allocation4 + $0x20] sm:$0xff]  ;;  %p1708_p10 = scmp.lt.s32.totalorder %s3287_s29, %s1706_s12  ;;  %p1709_p12 = scmp.lt.s32.totalorder %s1707_s13, %s1701_s9 }
  0x5a   : > { %324 = vmatpush1.msra.mxu0 %v1973_v9  ;;  %551 = vmatpush1.msra.mxu1 %v1973_v9  ;;  %v2052_v29 = vld [vmem:[#allocation4 + $0x18] sm:$0xff]  ;;  %v2056_v30 = vld [vmem:[#allocation4 + $0x10] sm:$0xff]  ;;  %v2060_v31 = vld [vmem:[#allocation4 + $0x8] sm:$0xff]  ;;  %p1704_p9 = pneg %p1703_p11 }
  0x5b   : > { %325 = vmatprep.subr.mxu0 %v1977_v10  ;;  %552 = vmatprep.subr.mxu1 %v1977_v10  ;;  %v2064_v32 = vld [vmem:[#allocation4] sm:$0xff]  ;;  %v2068_v33 = vld [vmem:[#allocation4 + $0x1f8] sm:$0xff]  ;;  %v2072_v34 = vld [vmem:[#allocation4 + $0x1f0] sm:$0xff]  ;;  %p1710_p13 = por %p1709_p12, %p1708_p10 }
  0x5c   : > { %326 = vmatpush1.msra.mxu0 %v1981_v11  ;;  %553 = vmatpush1.msra.mxu1 %v1981_v11  ;;  %v2076_v35 = vld [vmem:[#allocation4 + $0x1e8] sm:$0xff]  ;;  %v2080_v36 = vld [vmem:[#allocation4 + $0x1e0] sm:$0xff]  ;;  %v2084_v37 = vld [vmem:[#allocation4 + $0x1d8] sm:$0xff] }
  0x5d   : > { %327 = vmatprep.subr.mxu0 %v1985_v12  ;;  %554 = vmatprep.subr.mxu1 %v1985_v12  ;;  %v2088_v38 = vld [vmem:[#allocation4 + $0x1d0] sm:$0xff]  ;;  %v2092_v39 = vld [vmem:[#allocation4 + $0x1c8] sm:$0xff]  ;;  %v2096_v40 = vld [vmem:[#allocation4 + $0x1c0] sm:$0xff]  ;;  %p1711_p0 = pnand %p1710_p13, %p1704_p9 }
  0x5e   : > { %328 = vmatpush1.msra.mxu0 %v1989_v13  ;;  %555 = vmatpush1.msra.mxu1 %v1989_v13  ;;  %v2100_v41 = vld [vmem:[#allocation4 + $0x1b8] sm:$0xff]  ;;  %v2104_v42 = vld [vmem:[#allocation4 + $0x1b0] sm:$0xff]  ;;  %v2108_v43 = vld [vmem:[#allocation4 + $0x1a8] sm:$0xff] }
  0x5f   : > { %329 = vmatprep.subr.mxu0 %v1993_v14  ;;  %556 = vmatprep.subr.mxu1 %v1993_v14  ;;  %v2112_v44 = vld [vmem:[#allocation4 + $0x1a0] sm:$0xff]  ;;  %v2116_v45 = vld [vmem:[#allocation4 + $0x198] sm:$0xff]  ;;  %v2120_v46 = vld [vmem:[#allocation4 + $0x190] sm:$0xff] }
  0x60   : > { %330 = vmatpush1.msra.mxu0 %v1997_v15  ;;  %557 = vmatpush1.msra.mxu1 %v1997_v15  ;;  %v2124_v47 = vld [vmem:[#allocation4 + $0x188] sm:$0xff]  ;;  %v2128_v48 = vld [vmem:[#allocation4 + $0x180] sm:$0xff]  ;;  %v2132_v49 = vld [vmem:[#allocation4 + $0x178] sm:$0xff] }
  0x61   : > { %331 = vmatprep.subr.mxu0 %v2001_v16  ;;  %558 = vmatprep.subr.mxu1 %v2001_v16  ;;  %v2136_v50 = vld [vmem:[#allocation4 + $0x170] sm:$0xff]  ;;  %v2140_v51 = vld [vmem:[#allocation4 + $0x168] sm:$0xff]  ;;  %v2144_v52 = vld [vmem:[#allocation4 + $0x160] sm:$0xff] }
  0x62   : > { %332 = vmatpush1.msra.mxu0 %v2005_v17  ;;  %559 = vmatpush1.msra.mxu1 %v2005_v17  ;;  %v2148_v53 = vld [vmem:[#allocation4 + $0x158] sm:$0xff]  ;;  %v2152_v54 = vld [vmem:[#allocation4 + $0x150] sm:$0xff]  ;;  %v2156_v55 = vld [vmem:[#allocation4 + $0x148] sm:$0xff] }
  0x63   : > { %333 = vmatprep.subr.mxu0 %v2009_v18  ;;  %560 = vmatprep.subr.mxu1 %v2009_v18  ;;  %3525 = vst [vmem:[#allocation15_spill] sm:$0xff] %v2148_v53  ;;  %3526 = vst [vmem:[#allocation16_spill] sm:$0xff] %v2152_v54  ;;  %v2160_v56 = vld [vmem:[#allocation4 + $0x140] sm:$0xff]  ;;  %v2164_v57 = vld [vmem:[#allocation4 + $0x138] sm:$0xff] }
  0x64   : > { %334 = vmatpush1.msra.mxu0 %v2013_v19  ;;  %561 = vmatpush1.msra.mxu1 %v2013_v19  ;;  %3527 = vst [vmem:[#allocation17_spill] sm:$0xff] %v2164_v57  ;;  %v2168_v58 = vld [vmem:[#allocation4 + $0x130] sm:$0xff]  ;;  %v2172_v59 = vld [vmem:[#allocation4 + $0x128] sm:$0xff]  ;;  %v2176_v60 = vld [vmem:[#allocation4 + $0x120] sm:$0xff] }
  0x65   : > { %335 = vmatprep.subr.mxu0 %v2017_v20  ;;  %562 = vmatprep.subr.mxu1 %v2017_v20  ;;  %3528 = vst [vmem:[#allocation18_spill] sm:$0xff] %v2168_v58  ;;  %3529 = vst [vmem:[#allocation19_spill] sm:$0xff] %v2176_v60  ;;  %v2180_v61 = vld [vmem:[#allocation4 + $0x118] sm:$0xff]  ;;  %v2184_v62 = vld [vmem:[#allocation4 + $0x110] sm:$0xff] }
  0x66   : > { %336 = vmatpush1.msra.mxu0 %v2021_v21  ;;  %379 = vmatprep.mubr.f32.mxu0 %v2032_v24  ;;  %3530 = vst [vmem:[#allocation20_spill] sm:$0xff] %v2180_v61  ;;  %v2188_v63 = vld [vmem:[#allocation4 + $0x108] sm:$0xff]  ;;  %v2192_v24 = vld [vmem:[#allocation4 + $0x100] sm:$0xff] }
  0x67   : > { %337 = vmatprep.subr.mxu0 %v2025_v22  ;;  %563 = vmatpush1.msra.mxu1 %v2021_v21  ;;  %3531 = vst [vmem:[#allocation21_spill] sm:$0xff] %v2192_v24 }
  0x68   : > { %338 = vmatpush1.msra.mxu0 %v2029_v23  ;;  %564 = vmatprep.subr.mxu1 %v2025_v22 }
  0x69   : > { %339 = vmatprep.subr.mxu0 %v2036_v25  ;;  %565 = vmatpush1.msra.mxu1 %v2029_v23 }
  0x6a   : > { %340 = vmatpush1.msra.mxu0 %v2040_v26  ;;  %566 = vmatprep.subr.mxu1 %v2036_v25 }
  0x6b   : > { %341 = vmatprep.subr.mxu0 %v2044_v27  ;;  %567 = vmatpush1.msra.mxu1 %v2040_v26 }
  0x6c   : > { %342 = vmatpush1.msra.mxu0 %v2048_v28  ;;  %568 = vmatprep.subr.mxu1 %v2044_v27 }
  0x6d   : > { %343 = vmatprep.subr.mxu0 %v2052_v29  ;;  %569 = vmatpush1.msra.mxu1 %v2048_v28 }
  0x6e   : > { %344 = vmatpush1.msra.mxu0 %v2056_v30  ;;  %570 = vmatprep.subr.mxu1 %v2052_v29 }
  0x6f   : > { %345 = vmatprep.subr.mxu0 %v2060_v31  ;;  %571 = vmatpush1.msra.mxu1 %v2056_v30 }
  0x70   : > { %346 = vmatpush1.msra.mxu0 %v2064_v32  ;;  %572 = vmatprep.subr.mxu1 %v2060_v31 }
  0x71   : > { %347 = vmatprep.subr.mxu0 %v2068_v33  ;;  %573 = vmatpush1.msra.mxu1 %v2064_v32 }
  0x72   : > { %348 = vmatpush2.msra.mxu0 %v2072_v34  ;;  %574 = vmatprep.subr.mxu1 %v2068_v33 }
  0x73   : > { %349 = vmatprep.subr.mxu0 %v2076_v35  ;;  %575 = vmatpush2.msra.mxu1 %v2072_v34 }
  0x74   : > { %350 = vmatpush2.msra.mxu0 %v2080_v36  ;;  %576 = vmatprep.subr.mxu1 %v2076_v35 }
  0x75   : > { %351 = vmatprep.subr.mxu0 %v2084_v37  ;;  %577 = vmatpush2.msra.mxu1 %v2080_v36 }
  0x76   : > { %352 = vmatpush2.msra.mxu0 %v2088_v38  ;;  %578 = vmatprep.subr.mxu1 %v2084_v37 }
  0x77   : > { %353 = vmatprep.subr.mxu0 %v2092_v39  ;;  %579 = vmatpush2.msra.mxu1 %v2088_v38 }
  0x78   : > { %354 = vmatpush2.msra.mxu0 %v2096_v40  ;;  %580 = vmatprep.subr.mxu1 %v2092_v39 }
  0x79   : > { %355 = vmatprep.subr.mxu0 %v2100_v41  ;;  %581 = vmatpush2.msra.mxu1 %v2096_v40 }
  0x7a   : > { %356 = vmatpush2.msra.mxu0 %v2104_v42  ;;  %582 = vmatprep.subr.mxu1 %v2100_v41 }
  0x7b   : > { %357 = vmatprep.subr.mxu0 %v2108_v43  ;;  %583 = vmatpush2.msra.mxu1 %v2104_v42 }
  0x7c   : > { %358 = vmatpush2.msra.mxu0 %v2112_v44  ;;  %584 = vmatprep.subr.mxu1 %v2108_v43 }
  0x7d   : > { %359 = vmatprep.subr.mxu0 %v2116_v45  ;;  %585 = vmatpush2.msra.mxu1 %v2112_v44 }
  0x7e   : > { %360 = vmatpush2.msra.mxu0 %v2120_v46  ;;  %586 = vmatprep.subr.mxu1 %v2116_v45 }
  0x7f   : > { %361 = vmatprep.subr.mxu0 %v2124_v47  ;;  %587 = vmatpush2.msra.mxu1 %v2120_v46 }
  0x80   : > { %362 = vmatpush2.msra.mxu0 %v2128_v48  ;;  %588 = vmatprep.subr.mxu1 %v2124_v47 }
  0x81   : > { %363 = vmatprep.subr.mxu0 %v2132_v49  ;;  %589 = vmatpush2.msra.mxu1 %v2128_v48 }
  0x82   : > { %364 = vmatpush2.msra.mxu0 %v2136_v50  ;;  %590 = vmatprep.subr.mxu1 %v2132_v49 }
  0x83   : > { %365 = vmatprep.subr.mxu0 %v2140_v51  ;;  %591 = vmatpush2.msra.mxu1 %v2136_v50 }
  0x84   : > { %366 = vmatpush2.msra.mxu0 %v2144_v52  ;;  %592 = vmatprep.subr.mxu1 %v2140_v51 }
  0x85   : > { %367 = vmatprep.subr.mxu0 %v2148_v53  ;;  %593 = vmatpush2.msra.mxu1 %v2144_v52 }
  0x86   : > { %368 = vmatpush2.msra.mxu0 %v2152_v54  ;;  %594 = vmatprep.subr.mxu1 %v2148_v53 }
  0x87   : > { %369 = vmatprep.subr.mxu0 %v2156_v55  ;;  %595 = vmatpush2.msra.mxu1 %v2152_v54 }
  0x88   : > { %370 = vmatpush2.msra.mxu0 %v2160_v56  ;;  %596 = vmatprep.subr.mxu1 %v2156_v55 }
  0x89   : > { %371 = vmatprep.subr.mxu0 %v2164_v57  ;;  %597 = vmatpush2.msra.mxu1 %v2160_v56 }
  0x8a   : > { %372 = vmatpush2.msra.mxu0 %v2168_v58  ;;  %598 = vmatprep.subr.mxu1 %v2164_v57  ;;  %v2197_v57 = vld [vmem:[%s1936_s30] sm:$0xff] }
  0x8b   : > { %373 = vmatprep.subr.mxu0 %v2172_v59  ;;  %599 = vmatpush2.msra.mxu1 %v2168_v58  ;;  %3532 = vst [vmem:[#allocation22_spill] sm:$0xff] %v2197_v57  ;;  %v2202_v58 = vld [vmem:[%s1936_s30 + $0x18] sm:$0xff] }
  0x8c   : > { %374 = vmatpush2.msra.mxu0 %v2176_v60  ;;  %600 = vmatprep.subr.mxu1 %v2172_v59  ;;  %3533 = vst [vmem:[#allocation23_spill] sm:$0xff] %v2202_v58 }
  0x8d   : > { %375 = vmatprep.subr.mxu0 %v2180_v61  ;;  %601 = vmatpush2.msra.mxu1 %v2176_v60  ;;  %v2211_v60 = vld [vmem:[%s1936_s30 + $0x10] sm:$0xff] }
  0x8e   : > { %376 = vmatpush2.msra.mxu0 %v2184_v62  ;;  %602 = vmatprep.subr.mxu1 %v2180_v61  ;;  %3534 = vst [vmem:[#allocation24_spill] sm:$0xff] %v2211_v60  ;;  %v2215_v61 = vld [vmem:[%s1936_s30 + $0x28] sm:$0xff] }
  0x8f   : > { %377 = vmatprep.subr.mxu0 %v2188_v63  ;;  %603 = vmatpush2.msra.mxu1 %v2184_v62  ;;  %3535 = vst [vmem:[#allocation25_spill] sm:$0xff] %v2215_v61 }
  0x90   : > { %378 = vmatpush2.msra.mxu0 %v2192_v24  ;;  %604 = vmatprep.subr.mxu1 %v2188_v63 }
  0x91   : > { %380 = vmatmul.mubr.f32.vlgmr.msra.gmra.mxu0 %v2197_v57  ;;  %605 = vmatpush2.msra.mxu1 %v2192_v24  ;;  %v2223_v57 = vld [vmem:[%s1936_s30 + $0x20] sm:$0xff] }
  0x92   : > { %385 = vmatprep.mubr.f32.mxu0 %v2202_v58  ;;  %833 = vmatprep.subr.mxu0 %v1942_v0  ;;  %3536 = vst [vmem:[#allocation26_spill] sm:$0xff] %v2223_v57  ;;  %v2227_v58 = vld [vmem:[%s1936_s30 + $0x38] sm:$0xff] }
  0x93   : > { %834 = vmatpush1.msra.mxu0 %v1944_v1  ;;  %1124 = vmatprep.subr.mxu1 %v1942_v0  ;;  %3537 = vst [vmem:[#allocation27_spill] sm:$0xff] %v2227_v58  ;;  %v2235_v0 = vld [vmem:[%s1936_s30 + $0x30] sm:$0xff] }
  0x94   : > { %835 = vmatprep.subr.mxu0 %v1946_v2  ;;  %3538 = vst [vmem:[#allocation28_spill] sm:$0xff] %v2235_v0 }
  0x95   : > { %386 = vmatmul.mubr.f32.gmra.mxu0 %v2211_v60  ;;  %v3564_v60 = vld [vmem:[#allocation18_spill] sm:$0xff] }
  0x96   : > { %391 = vmatprep.mubr.f32.mxu0 %v2215_v61  ;;  %836 = vmatpush1.msra.mxu0 %v1949_v3  ;;  %v2239_v61 = vld [vmem:[%s1936_s30 + $0x48] sm:$0xff] }
  0x97   : > { %837 = vmatprep.subr.mxu0 %v1953_v4  ;;  %3539 = vst [vmem:[#allocation29_spill] sm:$0xff] %v2239_v61 }
  0x98   : > { %838 = vmatpush1.msra.mxu0 %v1957_v5 }
  0x99   : > { %392 = vmatmul.mubr.f32.gmra.mxu0 %v2223_v57  ;;  %839 = vmatprep.subr.mxu0 %v1961_v6  ;;  %v2247_v57 = vld [vmem:[%s1936_s30 + $0x40] sm:$0xff] }
  0x9a   : > { %397 = vmatprep.mubr.f32.mxu0 %v2227_v58  ;;  %840 = vmatpush1.msra.mxu0 %v1965_v7  ;;  %3540 = vst [vmem:[#allocation30_spill] sm:$0xff] %v2247_v57  ;;  %v2251_v58 = vld [vmem:[%s1936_s30 + $0x58] sm:$0xff] }
  0x9b   : > { %841 = vmatprep.subr.mxu0 %v1969_v8  ;;  %3541 = vst [vmem:[#allocation31_spill] sm:$0xff] %v2251_v58 }
  0x9c   : > { %842 = vmatpush1.msra.mxu0 %v1973_v9 }
  0x9d   : > { %398 = vmatmul.mubr.f32.gmra.mxu0 %v2235_v0  ;;  %843 = vmatprep.subr.mxu0 %v1977_v10  ;;  %v2259_v0 = vld [vmem:[%s1936_s30 + $0x50] sm:$0xff] }
  0x9e   : > { %403 = vmatprep.mubr.f32.mxu0 %v2239_v61  ;;  %844 = vmatpush1.msra.mxu0 %v1981_v11  ;;  %3542 = vst [vmem:[#allocation32_spill] sm:$0xff] %v2259_v0  ;;  %v2263_v61 = vld [vmem:[%s1936_s30 + $0x68] sm:$0xff] }
  0x9f   : > { %845 = vmatprep.subr.mxu0 %v1985_v12  ;;  %3543 = vst [vmem:[#allocation33_spill] sm:$0xff] %v2263_v61 }
  0xa0   : > { %846 = vmatpush1.msra.mxu0 %v1989_v13 }
  0xa1   : > { %404 = vmatmul.mubr.f32.gmra.mxu0 %v2247_v57  ;;  %847 = vmatprep.subr.mxu0 %v1993_v14  ;;  %v2271_v57 = vld [vmem:[%s1936_s30 + $0x60] sm:$0xff] }
  0xa2   : > { %409 = vmatprep.mubr.f32.mxu0 %v2251_v58  ;;  %848 = vmatpush1.msra.mxu0 %v1997_v15  ;;  %3544 = vst [vmem:[#allocation34_spill] sm:$0xff] %v2271_v57  ;;  %v2275_v58 = vld [vmem:[%s1936_s30 + $0x78] sm:$0xff] }
  0xa3   : > { %849 = vmatprep.subr.mxu0 %v2001_v16  ;;  %3545 = vst [vmem:[#allocation35_spill] sm:$0xff] %v2275_v58 }
  0xa4   : > { %850 = vmatpush1.msra.mxu0 %v2005_v17 }
  0xa5   : > { %410 = vmatmul.mubr.f32.gmra.mxu0 %v2259_v0  ;;  %851 = vmatprep.subr.mxu0 %v2009_v18  ;;  %v2283_v0 = vld [vmem:[%s1936_s30 + $0x70] sm:$0xff] }
  0xa6   : > { %415 = vmatprep.mubr.f32.mxu0 %v2263_v61  ;;  %852 = vmatpush1.msra.mxu0 %v2013_v19  ;;  %3546 = vst [vmem:[#allocation36_spill] sm:$0xff] %v2283_v0  ;;  %v2287_v61 = vld [vmem:[%s1936_s30 + $0x88] sm:$0xff] }
  0xa7   : > { %853 = vmatprep.subr.mxu0 %v2017_v20  ;;  %3547 = vst [vmem:[#allocation37_spill] sm:$0xff] %v2287_v61 }
  0xa8   : > { %854 = vmatpush1.msra.mxu0 %v2021_v21 }
  0xa9   : > { %416 = vmatmul.mubr.f32.gmra.mxu0 %v2271_v57  ;;  %855 = vmatprep.subr.mxu0 %v2025_v22  ;;  %v2295_v57 = vld [vmem:[%s1936_s30 + $0x80] sm:$0xff] }
  0xaa   : > { %421 = vmatprep.mubr.f32.mxu0 %v2275_v58  ;;  %856 = vmatpush1.msra.mxu0 %v2029_v23  ;;  %3548 = vst [vmem:[#allocation38_spill] sm:$0xff] %v2295_v57  ;;  %v2299_v58 = vld [vmem:[%s1936_s30 + $0x98] sm:$0xff] }
  0xab   : > { %857 = vmatprep.subr.mxu0 %v2036_v25  ;;  %3549 = vst [vmem:[#allocation39_spill] sm:$0xff] %v2299_v58 }
  0xac   : > { %858 = vmatpush1.msra.mxu0 %v2040_v26 }
  0xad   : > { %422 = vmatmul.mubr.f32.gmra.mxu0 %v2283_v0  ;;  %859 = vmatprep.subr.mxu0 %v2044_v27  ;;  %v2307_v0 = vld [vmem:[%s1936_s30 + $0x90] sm:$0xff] }
  0xae   : > { %427 = vmatprep.mubr.f32.mxu0 %v2287_v61  ;;  %860 = vmatpush1.msra.mxu0 %v2048_v28  ;;  %3550 = vst [vmem:[#allocation40_spill] sm:$0xff] %v2307_v0  ;;  %v2311_v61 = vld [vmem:[%s1936_s30 + $0xa8] sm:$0xff] }
  0xaf   : > { %861 = vmatprep.subr.mxu0 %v2052_v29  ;;  %3551 = vst [vmem:[#allocation41_spill] sm:$0xff] %v2311_v61 }
  0xb0   : > { %862 = vmatpush1.msra.mxu0 %v2056_v30 }
  0xb1   : > { %428 = vmatmul.mubr.f32.gmra.mxu0 %v2295_v57  ;;  %863 = vmatprep.subr.mxu0 %v2060_v31  ;;  %v2319_v57 = vld [vmem:[%s1936_s30 + $0xa0] sm:$0xff] }
  0xb2   : > { %433 = vmatprep.mubr.f32.mxu0 %v2299_v58  ;;  %864 = vmatpush1.msra.mxu0 %v2064_v32  ;;  %3552 = vst [vmem:[#allocation42_spill] sm:$0xff] %v2319_v57  ;;  %v2323_v58 = vld [vmem:[%s1936_s30 + $0xb8] sm:$0xff] }
  0xb3   : > { %865 = vmatprep.subr.mxu0 %v2068_v33  ;;  %3553 = vst [vmem:[#allocation43_spill] sm:$0xff] %v2323_v58 }
  0xb4   : > { %866 = vmatpush2.msra.mxu0 %v2072_v34 }
  0xb5   : > { %434 = vmatmul.mubr.f32.gmra.mxu0 %v2307_v0  ;;  %867 = vmatprep.subr.mxu0 %v2076_v35  ;;  %v2331_v0 = vld [vmem:[%s1936_s30 + $0xb0] sm:$0xff] }
  0xb6   : > { %439 = vmatprep.mubr.f32.mxu0 %v2311_v61  ;;  %868 = vmatpush2.msra.mxu0 %v2080_v36  ;;  %3554 = vst [vmem:[#allocation44_spill] sm:$0xff] %v2331_v0  ;;  %v2335_v61 = vld [vmem:[%s1936_s30 + $0xc8] sm:$0xff] }
  0xb7   : > { %869 = vmatprep.subr.mxu0 %v2084_v37  ;;  %3555 = vst [vmem:[#allocation45_spill] sm:$0xff] %v2335_v61 }
  0xb8   : > { %870 = vmatpush2.msra.mxu0 %v2088_v38 }
  0xb9   : > { %440 = vmatmul.mubr.f32.gmra.mxu0 %v2319_v57  ;;  %871 = vmatprep.subr.mxu0 %v2092_v39  ;;  %v2343_v57 = vld [vmem:[%s1936_s30 + $0xc0] sm:$0xff] }
  0xba   : > { %445 = vmatprep.mubr.f32.mxu0 %v2323_v58  ;;  %872 = vmatpush2.msra.mxu0 %v2096_v40  ;;  %3556 = vst [vmem:[#allocation46_spill] sm:$0xff] %v2343_v57  ;;  %v2347_v58 = vld [vmem:[%s1936_s30 + $0xd8] sm:$0xff] }
  0xbb   : > { %873 = vmatprep.subr.mxu0 %v2100_v41  ;;  %3557 = vst [vmem:[#allocation47_spill] sm:$0xff] %v2347_v58 }
  0xbc   : > { %874 = vmatpush2.msra.mxu0 %v2104_v42 }
  0xbd   : > { %446 = vmatmul.mubr.f32.gmra.mxu0 %v2331_v0  ;;  %875 = vmatprep.subr.mxu0 %v2108_v43  ;;  %v2355_v0 = vld [vmem:[%s1936_s30 + $0xd0] sm:$0xff] }
  0xbe   : > { %451 = vmatprep.mubr.f32.mxu0 %v2335_v61  ;;  %876 = vmatpush2.msra.mxu0 %v2112_v44  ;;  %3558 = vst [vmem:[#allocation48_spill] sm:$0xff] %v2355_v0  ;;  %v2359_v61 = vld [vmem:[%s1936_s30 + $0xe8] sm:$0xff] }
  0xbf   : > { %877 = vmatprep.subr.mxu0 %v2116_v45  ;;  %3559 = vst [vmem:[#allocation49_spill] sm:$0xff] %v2359_v61 }
  0xc0   : > { %878 = vmatpush2.msra.mxu0 %v2120_v46 }
  0xc1   : > { %452 = vmatmul.mubr.f32.gmra.mxu0 %v2343_v57  ;;  %879 = vmatprep.subr.mxu0 %v2124_v47  ;;  %v2367_v57 = vld [vmem:[%s1936_s30 + $0xe0] sm:$0xff] }
  0xc2   : > { %457 = vmatprep.mubr.f32.mxu0 %v2347_v58  ;;  %880 = vmatpush2.msra.mxu0 %v2128_v48  ;;  %3560 = vst [vmem:[#allocation50_spill] sm:$0xff] %v2367_v57  ;;  %v2371_v58 = vld [vmem:[%s1936_s30 + $0xf8] sm:$0xff] }
  0xc3   : > { %881 = vmatprep.subr.mxu0 %v2132_v49  ;;  %3561 = vst [vmem:[#allocation51_spill] sm:$0xff] %v2371_v58 }
  0xc4   : > { %882 = vmatpush2.msra.mxu0 %v2136_v50 }
  0xc5   : > { %458 = vmatmul.mubr.f32.gmra.mxu0 %v2355_v0  ;;  %883 = vmatprep.subr.mxu0 %v2140_v51  ;;  %v2379_v0 = vld [vmem:[%s1936_s30 + $0xf0] sm:$0xff] }
  0xc6   : > { %463 = vmatprep.mubr.f32.mxu0 %v2359_v61  ;;  %884 = vmatpush2.msra.mxu0 %v2144_v52  ;;  %3562 = vst [vmem:[#allocation52_spill] sm:$0xff] %v2379_v0  ;;  %v3563_v61 = vld [vmem:[#allocation17_spill] sm:$0xff] }
  0xc7   : > { %885 = vmatprep.subr.mxu0 %v2148_v53  ;;  %v3565_v53 = vld [vmem:[#allocation19_spill] sm:$0xff] }
  0xc8   : > { %886 = vmatpush2.msra.mxu0 %v2152_v54  ;;  %v3566_v54 = vld [vmem:[#allocation20_spill] sm:$0xff] }
  0xc9   : > { %464 = vmatmul.mubr.f32.gmra.mxu0 %v2367_v57  ;;  %887 = vmatprep.subr.mxu0 %v2156_v55 }
  0xca   : > { %469 = vmatprep.mubr.f32.mxu0 %v2371_v58  ;;  %888 = vmatpush2.msra.mxu0 %v2160_v56 }
  0xcb   : > { %889 = vmatprep.subr.mxu0 %v3563_v61 }
  0xcc   : > { %890 = vmatpush2.msra.mxu0 %v3564_v60 }
  0xcd   : > { %470 = vmatmul.mubr.f32.gmra.mxu0 %v2379_v0  ;;  %891 = vmatprep.subr.mxu0 %v2172_v59 }
  0xce   : > { %892 = vmatpush2.msra.mxu0 %v3565_v53 }
  0xcf   : > { %893 = vmatprep.subr.mxu0 %v3566_v54 }
  0xd0   : > { %894 = vmatpush2.msra.mxu0 %v2184_v62 }
  0xd1   : > { %895 = vmatprep.subr.mxu0 %v2188_v63 }
  0xd2   : > { %896 = vmatpush2.msra.mxu0 %v2192_v24 }
 0x151   : > { %v2391_v58 = vpop.f32.mrf.mxu0 }
 0x153   : > { %v2393_v57 = vpop.f32.mrf.mxu0 }
 0x154   : > { %3567 = vst [vmem:[#allocation17_spill] sm:$0xff] %v2393_v57  ;;  %606 = vmatprep.mubr.f32.mxu1 %v2393_v57 }
 0x155   : > { %v2396_v60 = vpop.f32.mrf.mxu0  ;;  %607 = vmatmul.mubr.f32.vlgmr.msra.gmra.mxu1 %v2391_v58 }
 0x156   : > { %1125 = vmatpush1.msra.mxu1 %v1944_v1 }
 0x157   : > { %v2400_v0 = vpop.f32.mrf.mxu0  ;;  %1126 = vmatprep.subr.mxu1 %v1946_v2 }
 0x158   : > { %612 = vmatprep.mubr.f32.mxu1 %v2400_v0  ;;  %1127 = vmatpush1.msra.mxu1 %v1949_v3 }
 0x159   : > { %v2405_v24 = vpop.f32.mrf.mxu0  ;;  %613 = vmatmul.mubr.f32.gmra.mxu1 %v2396_v60  ;;  %1128 = vmatprep.subr.mxu1 %v1953_v4 }
 0x15a   : > { %1129 = vmatpush1.msra.mxu1 %v1957_v5 }
 0x15b   : > { %v2410_v57 = vpop.f32.mrf.mxu0  ;;  %1130 = vmatprep.subr.mxu1 %v1961_v6 }
 0x15c   : > { %618 = vmatprep.mubr.f32.mxu1 %v2410_v57  ;;  %1131 = vmatpush1.msra.mxu1 %v1965_v7 }
 0x15d   : > { %v2415_v1 = vpop.f32.mrf.mxu0  ;;  %619 = vmatmul.mubr.f32.gmra.mxu1 %v2405_v24  ;;  %1132 = vmatprep.subr.mxu1 %v1969_v8 }
 0x15e   : > { %1133 = vmatpush1.msra.mxu1 %v1973_v9 }
 0x15f   : > { %v2420_v2 = vpop.f32.mrf.mxu0  ;;  %1134 = vmatprep.subr.mxu1 %v1977_v10 }
 0x160   : > { %624 = vmatprep.mubr.f32.mxu1 %v2420_v2  ;;  %1135 = vmatpush1.msra.mxu1 %v1981_v11 }
 0x161   : > { %v2425_v3 = vpop.f32.mrf.mxu0  ;;  %625 = vmatmul.mubr.f32.gmra.mxu1 %v2415_v1  ;;  %1136 = vmatprep.subr.mxu1 %v1985_v12 }
 0x162   : > { %1137 = vmatpush1.msra.mxu1 %v1989_v13 }
 0x163   : > { %v2430_v4 = vpop.f32.mrf.mxu0  ;;  %1138 = vmatprep.subr.mxu1 %v1993_v14 }
 0x164   : > { %630 = vmatprep.mubr.f32.mxu1 %v2430_v4  ;;  %1139 = vmatpush1.msra.mxu1 %v1997_v15 }
 0x165   : > { %v2435_v5 = vpop.f32.mrf.mxu0  ;;  %631 = vmatmul.mubr.f32.gmra.mxu1 %v2425_v3  ;;  %1140 = vmatprep.subr.mxu1 %v2001_v16 }
 0x166   : > { %1141 = vmatpush1.msra.mxu1 %v2005_v17 }
 0x167   : > { %v2440_v6 = vpop.f32.mrf.mxu0  ;;  %1142 = vmatprep.subr.mxu1 %v2009_v18 }
 0x168   : > { %636 = vmatprep.mubr.f32.mxu1 %v2440_v6  ;;  %1143 = vmatpush1.msra.mxu1 %v2013_v19 }
 0x169   : > { %v2445_v7 = vpop.f32.mrf.mxu0  ;;  %637 = vmatmul.mubr.f32.gmra.mxu1 %v2435_v5  ;;  %1144 = vmatprep.subr.mxu1 %v2017_v20 }
 0x16a   : > { %1145 = vmatpush1.msra.mxu1 %v2021_v21 }
 0x16b   : > { %v2450_v8 = vpop.f32.mrf.mxu0  ;;  %1146 = vmatprep.subr.mxu1 %v2025_v22 }
 0x16c   : > { %642 = vmatprep.mubr.f32.mxu1 %v2450_v8  ;;  %1147 = vmatpush1.msra.mxu1 %v2029_v23 }
 0x16d   : > { %v2455_v9 = vpop.f32.mrf.mxu0  ;;  %643 = vmatmul.mubr.f32.gmra.mxu1 %v2445_v7  ;;  %1148 = vmatprep.subr.mxu1 %v2036_v25  ;;  %v3569_v25 = vld [vmem:[#allocation15_spill] sm:$0xff] }
 0x16e   : > { %1149 = vmatpush1.msra.mxu1 %v2040_v26  ;;  %v3570_v26 = vld [vmem:[#allocation16_spill] sm:$0xff] }
 0x16f   : > { %v2460_v10 = vpop.f32.mrf.mxu0  ;;  %1150 = vmatprep.subr.mxu1 %v2044_v27 }
 0x170   : > { %648 = vmatprep.mubr.f32.mxu1 %v2460_v10  ;;  %1151 = vmatpush1.msra.mxu1 %v2048_v28 }
 0x171   : > { %v2465_v11 = vpop.f32.mrf.mxu0  ;;  %649 = vmatmul.mubr.f32.gmra.mxu1 %v2455_v9  ;;  %1152 = vmatprep.subr.mxu1 %v2052_v29  ;;  %v3573_v29 = vld [vmem:[#allocation18_spill] sm:$0xff] }
 0x172   : > { %1153 = vmatpush1.msra.mxu1 %v2056_v30 }
 0x173   : > { %v2470_v12 = vpop.f32.mrf.mxu0  ;;  %1154 = vmatprep.subr.mxu1 %v2060_v31  ;;  %v3575_v31 = vld [vmem:[#allocation21_spill] sm:$0xff] }
 0x174   : > { %654 = vmatprep.mubr.f32.mxu1 %v2470_v12  ;;  %1155 = vmatpush1.msra.mxu1 %v2064_v32 }
 0x175   : > { %v2475_v13 = vpop.f32.mrf.mxu0  ;;  %655 = vmatmul.mubr.f32.gmra.mxu1 %v2465_v11  ;;  %1156 = vmatprep.subr.mxu1 %v2068_v33 }
 0x176   : > { %1157 = vmatpush2.msra.mxu1 %v2072_v34 }
 0x177   : > { %v2480_v14 = vpop.f32.mrf.mxu0  ;;  %1158 = vmatprep.subr.mxu1 %v2076_v35 }
 0x178   : > { %660 = vmatprep.mubr.f32.mxu1 %v2480_v14  ;;  %1159 = vmatpush2.msra.mxu1 %v2080_v36 }
 0x179   : > { %v2485_v15 = vpop.f32.mrf.mxu0  ;;  %661 = vmatmul.mubr.f32.gmra.mxu1 %v2475_v13  ;;  %1160 = vmatprep.subr.mxu1 %v2084_v37  ;;  %v3576_v37 = vld [vmem:[#allocation14_spill] sm:$0xff] }
 0x17a   : > { %1161 = vmatpush2.msra.mxu1 %v2088_v38 }
 0x17b   : > { %v2490_v16 = vpop.f32.mrf.mxu0  ;;  %1162 = vmatprep.subr.mxu1 %v2092_v39  ;;  %v3578_v39 = vld [vmem:[#allocation22_spill] sm:$0xff] }
 0x17c   : > { %666 = vmatprep.mubr.f32.mxu1 %v2490_v16  ;;  %1163 = vmatpush2.msra.mxu1 %v2096_v40 }
 0x17d   : > { %v2495_v17 = vpop.f32.mrf.mxu0  ;;  %667 = vmatmul.mubr.f32.gmra.mxu1 %v2485_v15  ;;  %1164 = vmatprep.subr.mxu1 %v2100_v41 }
 0x17e   : > { %1165 = vmatpush2.msra.mxu1 %v2104_v42 }
 0x17f   : > { %v2500_v18 = vpop.f32.mrf.mxu0  ;;  %1166 = vmatprep.subr.mxu1 %v2108_v43 }
 0x180   : > { %672 = vmatprep.mubr.f32.mxu1 %v2500_v18  ;;  %1167 = vmatpush2.msra.mxu1 %v2112_v44 }
 0x181   : > { %v2505_v19 = vpop.f32.mrf.mxu0  ;;  %673 = vmatmul.mubr.f32.gmra.mxu1 %v2495_v17  ;;  %1168 = vmatprep.subr.mxu1 %v2116_v45  ;;  %v3580_v45 = vld [vmem:[#allocation23_spill] sm:$0xff] }
 0x182   : > { %1169 = vmatpush2.msra.mxu1 %v2120_v46 }
 0x183   : > { %v2510_v20 = vpop.f32.mrf.mxu0  ;;  %1170 = vmatprep.subr.mxu1 %v2124_v47  ;;  %v3582_v47 = vld [vmem:[#allocation24_spill] sm:$0xff] }
 0x184   : > { %678 = vmatprep.mubr.f32.mxu1 %v2510_v20  ;;  %1171 = vmatpush2.msra.mxu1 %v2128_v48 }
 0x185   : > { %v2515_v21 = vpop.f32.mrf.mxu0  ;;  %679 = vmatmul.mubr.f32.gmra.mxu1 %v2505_v19  ;;  %1172 = vmatprep.subr.mxu1 %v2132_v49 }
 0x186   : > { %1173 = vmatpush2.msra.mxu1 %v2136_v50 }
 0x187   : > { %v2520_v22 = vpop.f32.mrf.mxu0  ;;  %1174 = vmatprep.subr.mxu1 %v2140_v51 }
 0x188   : > { %684 = vmatprep.mubr.f32.mxu1 %v2520_v22  ;;  %1175 = vmatpush2.msra.mxu1 %v2144_v52 }
 0x189   : > { %v2525_v23 = vpop.f32.mrf.mxu0  ;;  %685 = vmatmul.mubr.f32.gmra.mxu1 %v2515_v21  ;;  %1176 = vmatprep.subr.mxu1 %v3569_v25  ;;  %v3588_v25 = vld [vmem:[#allocation27_spill] sm:$0xff] }
 0x18a   : > { %3568 = vst [vmem:[#allocation19_spill] sm:$0xff] %v2525_v23  ;;  %1177 = vmatpush2.msra.mxu1 %v3570_v26 }
 0x18b   : > { %v2530_v27 = vpop.f32.mrf.mxu0  ;;  %1178 = vmatprep.subr.mxu1 %v2156_v55  ;;  %v3586_v55 = vld [vmem:[#allocation26_spill] sm:$0xff] }
 0x18c   : > { %3571 = vst [vmem:[#allocation20_spill] sm:$0xff] %v2530_v27  ;;  %690 = vmatprep.mubr.f32.mxu1 %v2530_v27  ;;  %1179 = vmatpush2.msra.mxu1 %v2160_v56 }
 0x18d   : > { %v2535_v28 = vpop.f32.mrf.mxu0  ;;  %691 = vmatmul.mubr.f32.gmra.mxu1 %v2525_v23  ;;  %1180 = vmatprep.subr.mxu1 %v3563_v61 }
 0x18e   : > { %3572 = vst [vmem:[#allocation15_spill] sm:$0xff] %v2535_v28  ;;  %1181 = vmatpush2.msra.mxu1 %v3573_v29  ;;  %v3590_v29 = vld [vmem:[#allocation28_spill] sm:$0xff] }
 0x18f   : > { %v2540_v30 = vpop.f32.mrf.mxu0  ;;  %1182 = vmatprep.subr.mxu1 %v2172_v59 }
 0x190   : > { %3574 = vst [vmem:[#allocation16_spill] sm:$0xff] %v2540_v30  ;;  %696 = vmatprep.mubr.f32.mxu1 %v2540_v30  ;;  %1183 = vmatpush2.msra.mxu1 %v3565_v53  ;;  %v3584_v53 = vld [vmem:[#allocation25_spill] sm:$0xff] }
 0x191   : > { %697 = vmatmul.mubr.f32.gmra.mxu1 %v2535_v28  ;;  %1184 = vmatprep.subr.mxu1 %v3566_v54 }
 0x192   : > { %1185 = vmatpush2.msra.mxu1 %v2184_v62 }
 0x193   : > { %1186 = vmatprep.subr.mxu1 %v2188_v63 }
 0x194   : > { %1187 = vmatpush2.msra.mxu1 %v3575_v31 }
 0x215   : > { %v608_v32 = vpop.f32.mrf.mxu1 }
 0x216   : > { %v703_v33 = vmul.f32 2.0, %v608_v32 }
 0x217   : > { %v610_v34 = vpop.f32.mrf.mxu1 }
 0x218   : > { %v704_v35 = vmul.f32 2.0, %v610_v34  ;;  %v2554_v40 = vsub.f32 %v703_v33, %v3578_v39  ;;  %v3594_v39 = vld [vmem:[#allocation30_spill] sm:$0xff] }
 0x219   : > { %v614_v36 = vpop.f32.mrf.mxu1 }
 0x21a   : > { %v2551_v38 = vsub.f32 %v704_v35, %v3576_v37  ;;  %3579 = vst [vmem:[#allocation21_spill] sm:$0xff] %v2554_v40  ;;  %v705_v41 = vmul.f32 2.0, %v614_v36  ;;  %v3592_v36 = vld [vmem:[#allocation29_spill] sm:$0xff] }
 0x21b   : > { %v616_v42 = vpop.f32.mrf.mxu1 }
 0x21c   : > { %3577 = vst [vmem:[#allocation18_spill] sm:$0xff] %v2551_v38  ;;  %v706_v43 = vmul.f32 2.0, %v616_v42  ;;  %897 = vmatprep.mubr.f32.mxu0 %v2551_v38  ;;  %v2562_v48 = vsub.f32 %v705_v41, %v3582_v47  ;;  %v3596_v47 = vld [vmem:[#allocation31_spill] sm:$0xff] }
 0x21d   : > { %v620_v44 = vpop.f32.mrf.mxu1  ;;  %898 = vmatmul.mubr.f32.vlgmr.msra.gmra.mxu0 %v2554_v40 }
 0x21e   : > { %v2559_v46 = vsub.f32 %v706_v43, %v3580_v45  ;;  %3583 = vst [vmem:[#allocation22_spill] sm:$0xff] %v2562_v48  ;;  %v707_v49 = vmul.f32 2.0, %v620_v44 }
 0x21f   : > { %v622_v50 = vpop.f32.mrf.mxu1 }
 0x220   : > { %3581 = vst [vmem:[#allocation14_spill] sm:$0xff] %v2559_v46  ;;  %v708_v51 = vmul.f32 2.0, %v622_v50  ;;  %903 = vmatprep.mubr.f32.mxu0 %v2559_v46  ;;  %v2570_v56 = vsub.f32 %v707_v49, %v3586_v55  ;;  %v3598_v50 = vld [vmem:[#allocation32_spill] sm:$0xff] }
 0x221   : > { %v626_v52 = vpop.f32.mrf.mxu1  ;;  %904 = vmatmul.mubr.f32.gmra.mxu0 %v2562_v48 }
 0x222   : > { %v2567_v54 = vsub.f32 %v708_v51, %v3584_v53  ;;  %3587 = vst [vmem:[#allocation24_spill] sm:$0xff] %v2570_v56  ;;  %v709_v59 = vmul.f32 2.0, %v626_v52 }
 0x223   : > { %v628_v61 = vpop.f32.mrf.mxu1 }
 0x224   : > { %3585 = vst [vmem:[#allocation23_spill] sm:$0xff] %v2567_v54  ;;  %v710_v62 = vmul.f32 2.0, %v628_v61  ;;  %909 = vmatprep.mubr.f32.mxu0 %v2567_v54  ;;  %v2578_v31 = vsub.f32 %v709_v59, %v3590_v29 }
 0x225   : > { %v632_v63 = vpop.f32.mrf.mxu1  ;;  %910 = vmatmul.mubr.f32.gmra.mxu0 %v2570_v56 }
 0x226   : > { %v2575_v26 = vsub.f32 %v710_v62, %v3588_v25  ;;  %3591 = vst [vmem:[#allocation26_spill] sm:$0xff] %v2578_v31  ;;  %v711_v32 = vmul.f32 2.0, %v632_v63  ;;  %v3600_v63 = vld [vmem:[#allocation33_spill] sm:$0xff] }
 0x227   : > { %v634_v33 = vpop.f32.mrf.mxu1 }
 0x228   : > { %3589 = vst [vmem:[#allocation25_spill] sm:$0xff] %v2575_v26  ;;  %v712_v34 = vmul.f32 2.0, %v634_v33  ;;  %915 = vmatprep.mubr.f32.mxu0 %v2575_v26  ;;  %v2586_v41 = vsub.f32 %v711_v32, %v3594_v39  ;;  %v3602_v33 = vld [vmem:[#allocation34_spill] sm:$0xff] }
 0x229   : > { %v638_v35 = vpop.f32.mrf.mxu1  ;;  %916 = vmatmul.mubr.f32.gmra.mxu0 %v2578_v31 }
 0x22a   : > { %v2583_v37 = vsub.f32 %v712_v34, %v3592_v36  ;;  %3595 = vst [vmem:[#allocation28_spill] sm:$0xff] %v2586_v41  ;;  %v713_v42 = vmul.f32 2.0, %v638_v35 }
 0x22b   : > { %v640_v43 = vpop.f32.mrf.mxu1 }
 0x22c   : > { %3593 = vst [vmem:[#allocation27_spill] sm:$0xff] %v2583_v37  ;;  %v714_v44 = vmul.f32 2.0, %v640_v43  ;;  %921 = vmatprep.mubr.f32.mxu0 %v2583_v37  ;;  %v2594_v51 = vsub.f32 %v713_v42, %v3598_v50 }
 0x22d   : > { %v644_v45 = vpop.f32.mrf.mxu1  ;;  %922 = vmatmul.mubr.f32.gmra.mxu0 %v2586_v41 }
 0x22e   : > { %v2591_v49 = vsub.f32 %v714_v44, %v3596_v47  ;;  %3599 = vst [vmem:[#allocation30_spill] sm:$0xff] %v2594_v51  ;;  %v715_v52 = vmul.f32 2.0, %v644_v45  ;;  %v3604_v45 = vld [vmem:[#allocation35_spill] sm:$0xff] }
 0x22f   : > { %v646_v59 = vpop.f32.mrf.mxu1 }
 0x230   : > { %3597 = vst [vmem:[#allocation29_spill] sm:$0xff] %v2591_v49  ;;  %v716_v61 = vmul.f32 2.0, %v646_v59  ;;  %927 = vmatprep.mubr.f32.mxu0 %v2591_v49  ;;  %v2602_v34 = vsub.f32 %v715_v52, %v3602_v33  ;;  %v3606_v49 = vld [vmem:[#allocation36_spill] sm:$0xff] }
 0x231   : > { %v650_v62 = vpop.f32.mrf.mxu1  ;;  %928 = vmatmul.mubr.f32.gmra.mxu0 %v2594_v51 }
 0x232   : > { %v2599_v32 = vsub.f32 %v716_v61, %v3600_v63  ;;  %3603 = vst [vmem:[#allocation32_spill] sm:$0xff] %v2602_v34  ;;  %v717_v35 = vmul.f32 2.0, %v650_v62  ;;  %v3608_v62 = vld [vmem:[#allocation37_spill] sm:$0xff] }
 0x233   : > { %v652_v43 = vpop.f32.mrf.mxu1 }
 0x234   : > { %3601 = vst [vmem:[#allocation31_spill] sm:$0xff] %v2599_v32  ;;  %v718_v44 = vmul.f32 2.0, %v652_v43  ;;  %933 = vmatprep.mubr.f32.mxu0 %v2599_v32  ;;  %v2610_v37 = vsub.f32 %v717_v35, %v3606_v49  ;;  %v3610_v32 = vld [vmem:[#allocation38_spill] sm:$0xff] }
 0x235   : > { %v656_v42 = vpop.f32.mrf.mxu1  ;;  %934 = vmatmul.mubr.f32.gmra.mxu0 %v2602_v34 }
 0x236   : > { %v2607_v59 = vsub.f32 %v718_v44, %v3604_v45  ;;  %3607 = vst [vmem:[#allocation34_spill] sm:$0xff] %v2610_v37  ;;  %v719_v51 = vmul.f32 2.0, %v656_v42  ;;  %v3612_v42 = vld [vmem:[#allocation39_spill] sm:$0xff] }
 0x237   : > { %v658_v61 = vpop.f32.mrf.mxu1 }
 0x238   : > { %3605 = vst [vmem:[#allocation33_spill] sm:$0xff] %v2607_v59  ;;  %v720_v41 = vmul.f32 2.0, %v658_v61  ;;  %939 = vmatprep.mubr.f32.mxu0 %v2607_v59  ;;  %v2618_v26 = vsub.f32 %v719_v51, %v3610_v32  ;;  %v3614_v59 = vld [vmem:[#allocation40_spill] sm:$0xff] }
 0x239   : > { %v662_v52 = vpop.f32.mrf.mxu1  ;;  %940 = vmatmul.mubr.f32.gmra.mxu0 %v2610_v37 }
 0x23a   : > { %v2615_v43 = vsub.f32 %v720_v41, %v3608_v62  ;;  %3611 = vst [vmem:[#allocation36_spill] sm:$0xff] %v2618_v26  ;;  %v721_v34 = vmul.f32 2.0, %v662_v52  ;;  %v3616_v52 = vld [vmem:[#allocation41_spill] sm:$0xff] }
 0x23b   : > { %v664_v44 = vpop.f32.mrf.mxu1 }
 0x23c   : > { %3609 = vst [vmem:[#allocation35_spill] sm:$0xff] %v2615_v43  ;;  %v722_v31 = vmul.f32 2.0, %v664_v44  ;;  %945 = vmatprep.mubr.f32.mxu0 %v2615_v43  ;;  %v2626_v54 = vsub.f32 %v721_v34, %v3614_v59  ;;  %v3618_v43 = vld [vmem:[#allocation42_spill] sm:$0xff] }
 0x23d   : > { %v668_v35 = vpop.f32.mrf.mxu1  ;;  %946 = vmatmul.mubr.f32.gmra.mxu0 %v2618_v26 }
 0x23e   : > { %v2623_v61 = vsub.f32 %v722_v31, %v3612_v42  ;;  %3615 = vst [vmem:[#allocation38_spill] sm:$0xff] %v2626_v54  ;;  %v723_v37 = vmul.f32 2.0, %v668_v35  ;;  %v3620_v35 = vld [vmem:[#allocation43_spill] sm:$0xff] }
 0x23f   : > { %v670_v41 = vpop.f32.mrf.mxu1 }
 0x240   : > { %3613 = vst [vmem:[#allocation37_spill] sm:$0xff] %v2623_v61  ;;  %v724_v56 = vmul.f32 2.0, %v670_v41  ;;  %951 = vmatprep.mubr.f32.mxu0 %v2623_v61  ;;  %v2634_v46 = vsub.f32 %v723_v37, %v3618_v43  ;;  %v3622_v61 = vld [vmem:[#allocation44_spill] sm:$0xff] }
 0x241   : > { %v674_v51 = vpop.f32.mrf.mxu1  ;;  %952 = vmatmul.mubr.f32.gmra.mxu0 %v2626_v54 }
 0x242   : > { %v2631_v44 = vsub.f32 %v724_v56, %v3616_v52  ;;  %3619 = vst [vmem:[#allocation40_spill] sm:$0xff] %v2634_v46  ;;  %v725_v26 = vmul.f32 2.0, %v674_v51  ;;  %v3624_v51 = vld [vmem:[#allocation45_spill] sm:$0xff] }
 0x243   : > { %v676_v31 = vpop.f32.mrf.mxu1 }
 0x244   : > { %3617 = vst [vmem:[#allocation39_spill] sm:$0xff] %v2631_v44  ;;  %v726_v48 = vmul.f32 2.0, %v676_v31  ;;  %957 = vmatprep.mubr.f32.mxu0 %v2631_v44  ;;  %v2642_v38 = vsub.f32 %v725_v26, %v3622_v61  ;;  %v3626_v44 = vld [vmem:[#allocation46_spill] sm:$0xff] }
 0x245   : > { %v680_v34 = vpop.f32.mrf.mxu1  ;;  %958 = vmatmul.mubr.f32.gmra.mxu0 %v2634_v46 }
 0x246   : > { %v2639_v41 = vsub.f32 %v726_v48, %v3620_v35  ;;  %3623 = vst [vmem:[#allocation53_spill] sm:$0xff] %v2642_v38  ;;  %v727_v54 = vmul.f32 2.0, %v680_v34  ;;  %v3628_v34 = vld [vmem:[#allocation47_spill] sm:$0xff] }
 0x247   : > { %v682_v56 = vpop.f32.mrf.mxu1 }
 0x248   : > { %3621 = vst [vmem:[#allocation41_spill] sm:$0xff] %v2639_v41  ;;  %v728_v40 = vmul.f32 2.0, %v682_v56  ;;  %963 = vmatprep.mubr.f32.mxu0 %v2639_v41  ;;  %v2650_v43 = vsub.f32 %v727_v54, %v3626_v44  ;;  %v3630_v41 = vld [vmem:[#allocation48_spill] sm:$0xff] }
 0x249   : > { %v686_v37 = vpop.f32.mrf.mxu1  ;;  %964 = vmatmul.mubr.f32.gmra.mxu0 %v2642_v38 }
 0x24a   : > { %v2647_v31 = vsub.f32 %v728_v40, %v3624_v51  ;;  %3627 = vst [vmem:[#allocation55_spill] sm:$0xff] %v2650_v43  ;;  %v729_v46 = vmul.f32 2.0, %v686_v37  ;;  %v3632_v37 = vld [vmem:[#allocation49_spill] sm:$0xff] }
 0x24b   : > { %v688_v48 = vpop.f32.mrf.mxu1 }
 0x24c   : > { %3625 = vst [vmem:[#allocation54_spill] sm:$0xff] %v2647_v31  ;;  %v730_v35 = vmul.f32 2.0, %v688_v48  ;;  %969 = vmatprep.mubr.f32.mxu0 %v2647_v31  ;;  %v2658_v61 = vsub.f32 %v729_v46, %v3630_v41  ;;  %v3634_v31 = vld [vmem:[#allocation50_spill] sm:$0xff]  ;;  %v3636_v46 = vld [vmem:[#allocation51_spill] sm:$0xff] }
 0x24d   : > { %v692_v26 = vpop.f32.mrf.mxu1  ;;  %970 = vmatmul.mubr.f32.gmra.mxu0 %v2650_v43 }
 0x24e   : > { %v2655_v56 = vsub.f32 %v730_v35, %v3628_v34  ;;  %3631 = vst [vmem:[#allocation48_spill] sm:$0xff] %v2658_v61  ;;  %v731_v38 = vmul.f32 2.0, %v692_v26 }
 0x24f   : > { %v694_v40 = vpop.f32.mrf.mxu1 }
 0x250   : > { %3629 = vst [vmem:[#allocation56_spill] sm:$0xff] %v2655_v56  ;;  %v732_v51 = vmul.f32 2.0, %v694_v40  ;;  %975 = vmatprep.mubr.f32.mxu0 %v2655_v56  ;;  %v2666_v44 = vsub.f32 %v731_v38, %v3634_v31  ;;  %v3638_v40 = vld [vmem:[#allocation52_spill] sm:$0xff] }
 0x251   : > { %v698_v54 = vpop.f32.mrf.mxu1  ;;  %976 = vmatmul.mubr.f32.gmra.mxu0 %v2658_v61 }
 0x252   : > { %v2663_v48 = vsub.f32 %v732_v51, %v3632_v37  ;;  %3635 = vst [vmem:[#allocation58_spill] sm:$0xff] %v2666_v44  ;;  %v733_v43 = vmul.f32 2.0, %v698_v54 }
 0x253   : > { %v700_v35 = vpop.f32.mrf.mxu1 }
 0x254   : > { %3633 = vst [vmem:[#allocation57_spill] sm:$0xff] %v2663_v48  ;;  %v734_v34 = vmul.f32 2.0, %v700_v35  ;;  %981 = vmatprep.mubr.f32.mxu0 %v2663_v48  ;;  %v2674_v56 = vsub.f32 %v733_v43, %v3638_v40  ;;  %v3640_v35 = vld [vmem:[#allocation17_spill] sm:$0xff] }
 0x255   : > { %982 = vmatmul.mubr.f32.gmra.mxu0 %v2666_v44 }
 0x256   : > { %v2671_v26 = vsub.f32 %v734_v34, %v3636_v46  ;;  %3639 = vst [vmem:[#allocation52_spill] sm:$0xff] %v2674_v56 }
 0x258   : > { %3637 = vst [vmem:[#allocation59_spill] sm:$0xff] %v2671_v26  ;;  %987 = vmatprep.mubr.f32.mxu0 %v2671_v26 }
 0x259   : > { %988 = vmatmul.mubr.f32.gmra.mxu0 %v2674_v56 }
 0x2dd   : > { %v899_v51 = vpop.f32.mrf.mxu0 }
 0x2de   : > { %v994_v38 = vmul.f32 2.0, %v899_v51 }
 0x2df   : > { %v901_v61 = vpop.f32.mrf.mxu0 }
 0x2e0   : > { %v995_v54 = vmul.f32 2.0, %v901_v61  ;;  %v2682_v48 = vsub.f32 %v994_v38, %v2391_v58 }
 0x2e1   : > { %v905_v31 = vpop.f32.mrf.mxu0 }
 0x2e2   : > { %v2679_v37 = vsub.f32 %v995_v54, %v3640_v35  ;;  %3642 = vst [vmem:[#allocation60_spill] sm:$0xff] %v2682_v48  ;;  %v996_v34 = vmul.f32 2.0, %v905_v31 }
 0x2e3   : > { %v907_v44 = vpop.f32.mrf.mxu0 }
 0x2e4   : > { %3641 = vst [vmem:[#allocation17_spill] sm:$0xff] %v2679_v37  ;;  %v997_v46 = vmul.f32 2.0, %v907_v44  ;;  %1188 = vmatprep.mubr.f32.mxu1 %v2679_v37  ;;  %v2690_v61 = vsub.f32 %v996_v34, %v2396_v60 }
 0x2e5   : > { %v911_v43 = vpop.f32.mrf.mxu0  ;;  %1189 = vmatmul.mubr.f32.vlgmr.msra.gmra.mxu1 %v2682_v48 }
 0x2e6   : > { %v2687_v26 = vsub.f32 %v997_v46, %v2400_v0  ;;  %3644 = vst [vmem:[#allocation62_spill] sm:$0xff] %v2690_v61  ;;  %v998_v51 = vmul.f32 2.0, %v911_v43 }
 0x2e7   : > { %v913_v54 = vpop.f32.mrf.mxu0 }
 0x2e8   : > { %3643 = vst [vmem:[#allocation61_spill] sm:$0xff] %v2687_v26  ;;  %v999_v56 = vmul.f32 2.0, %v913_v54  ;;  %1194 = vmatprep.mubr.f32.mxu1 %v2687_v26  ;;  %v2698_v31 = vsub.f32 %v998_v51, %v2405_v24 }
 0x2e9   : > { %v917_v38 = vpop.f32.mrf.mxu0  ;;  %1195 = vmatmul.mubr.f32.gmra.mxu1 %v2690_v61 }
 0x2ea   : > { %v2695_v44 = vsub.f32 %v999_v56, %v2410_v57  ;;  %3646 = vst [vmem:[#allocation64_spill] sm:$0xff] %v2698_v31  ;;  %v1000_v37 = vmul.f32 2.0, %v917_v38 }
 0x2eb   : > { %v919_v46 = vpop.f32.mrf.mxu0 }
 0x2ec   : > { %3645 = vst [vmem:[#allocation63_spill] sm:$0xff] %v2695_v44  ;;  %v1001_v48 = vmul.f32 2.0, %v919_v46  ;;  %1200 = vmatprep.mubr.f32.mxu1 %v2695_v44  ;;  %v2706_v54 = vsub.f32 %v1000_v37, %v2415_v1 }
 0x2ed   : > { %v923_v34 = vpop.f32.mrf.mxu0  ;;  %1201 = vmatmul.mubr.f32.gmra.mxu1 %v2698_v31 }
 0x2ee   : > { %v2703_v43 = vsub.f32 %v1001_v48, %v2420_v2  ;;  %3648 = vst [vmem:[#allocation66_spill] sm:$0xff] %v2706_v54  ;;  %v1002_v26 = vmul.f32 2.0, %v923_v34 }
 0x2ef   : > { %v925_v56 = vpop.f32.mrf.mxu0 }
 0x2f0   : > { %3647 = vst [vmem:[#allocation65_spill] sm:$0xff] %v2703_v43  ;;  %v1003_v61 = vmul.f32 2.0, %v925_v56  ;;  %1206 = vmatprep.mubr.f32.mxu1 %v2703_v43  ;;  %v2714_v46 = vsub.f32 %v1002_v26, %v2425_v3 }
 0x2f1   : > { %v929_v51 = vpop.f32.mrf.mxu0  ;;  %1207 = vmatmul.mubr.f32.gmra.mxu1 %v2706_v54 }
 0x2f2   : > { %v2711_v38 = vsub.f32 %v1003_v61, %v2430_v4  ;;  %3650 = vst [vmem:[#allocation68_spill] sm:$0xff] %v2714_v46  ;;  %v1004_v44 = vmul.f32 2.0, %v929_v51 }
 0x2f3   : > { %v931_v48 = vpop.f32.mrf.mxu0 }
 0x2f4   : > { %3649 = vst [vmem:[#allocation67_spill] sm:$0xff] %v2711_v38  ;;  %v1005_v31 = vmul.f32 2.0, %v931_v48  ;;  %1212 = vmatprep.mubr.f32.mxu1 %v2711_v38  ;;  %v2722_v56 = vsub.f32 %v1004_v44, %v2435_v5 }
 0x2f5   : > { %v935_v37 = vpop.f32.mrf.mxu0  ;;  %1213 = vmatmul.mubr.f32.gmra.mxu1 %v2714_v46 }
 0x2f6   : > { %v2719_v34 = vsub.f32 %v1005_v31, %v2440_v6  ;;  %3652 = vst [vmem:[#allocation70_spill] sm:$0xff] %v2722_v56  ;;  %v1006_v43 = vmul.f32 2.0, %v935_v37 }
 0x2f7   : > { %v937_v61 = vpop.f32.mrf.mxu0 }
 0x2f8   : > { %3651 = vst [vmem:[#allocation69_spill] sm:$0xff] %v2719_v34  ;;  %v1007_v54 = vmul.f32 2.0, %v937_v61  ;;  %1218 = vmatprep.mubr.f32.mxu1 %v2719_v34  ;;  %v2730_v48 = vsub.f32 %v1006_v43, %v2445_v7 }
 0x2f9   : > { %v941_v26 = vpop.f32.mrf.mxu0  ;;  %1219 = vmatmul.mubr.f32.gmra.mxu1 %v2722_v56 }
 0x2fa   : > { %v2727_v51 = vsub.f32 %v1007_v54, %v2450_v8  ;;  %3654 = vst [vmem:[#allocation72_spill] sm:$0xff] %v2730_v48  ;;  %v1008_v38 = vmul.f32 2.0, %v941_v26 }
 0x2fb   : > { %v943_v31 = vpop.f32.mrf.mxu0 }
 0x2fc   : > { %3653 = vst [vmem:[#allocation71_spill] sm:$0xff] %v2727_v51  ;;  %v1009_v46 = vmul.f32 2.0, %v943_v31  ;;  %1224 = vmatprep.mubr.f32.mxu1 %v2727_v51  ;;  %v2738_v61 = vsub.f32 %v1008_v38, %v2455_v9 }
 0x2fd   : > { %v947_v44 = vpop.f32.mrf.mxu0  ;;  %1225 = vmatmul.mubr.f32.gmra.mxu1 %v2730_v48 }
 0x2fe   : > { %v2735_v37 = vsub.f32 %v1009_v46, %v2460_v10  ;;  %3656 = vst [vmem:[#allocation74_spill] sm:$0xff] %v2738_v61  ;;  %v1010_v34 = vmul.f32 2.0, %v947_v44 }
 0x2ff   : > { %v949_v54 = vpop.f32.mrf.mxu0 }
 0x300   : > { %3655 = vst [vmem:[#allocation73_spill] sm:$0xff] %v2735_v37  ;;  %v1011_v56 = vmul.f32 2.0, %v949_v54  ;;  %1230 = vmatprep.mubr.f32.mxu1 %v2735_v37  ;;  %v2746_v31 = vsub.f32 %v1010_v34, %v2465_v11 }
 0x301   : > { %v953_v43 = vpop.f32.mrf.mxu0  ;;  %1231 = vmatmul.mubr.f32.gmra.mxu1 %v2738_v61 }
 0x302   : > { %v2743_v26 = vsub.f32 %v1011_v56, %v2470_v12  ;;  %3658 = vst [vmem:[#allocation76_spill] sm:$0xff] %v2746_v31  ;;  %v1012_v51 = vmul.f32 2.0, %v953_v43 }
 0x303   : > { %v955_v46 = vpop.f32.mrf.mxu0 }
 0x304   : > { %3657 = vst [vmem:[#allocation75_spill] sm:$0xff] %v2743_v26  ;;  %v1013_v48 = vmul.f32 2.0, %v955_v46  ;;  %1236 = vmatprep.mubr.f32.mxu1 %v2743_v26  ;;  %v2754_v54 = vsub.f32 %v1012_v51, %v2475_v13 }
 0x305   : > { %v959_v38 = vpop.f32.mrf.mxu0  ;;  %1237 = vmatmul.mubr.f32.gmra.mxu1 %v2746_v31 }
 0x306   : > { %v2751_v44 = vsub.f32 %v1013_v48, %v2480_v14  ;;  %3660 = vst [vmem:[#allocation78_spill] sm:$0xff] %v2754_v54  ;;  %v1014_v37 = vmul.f32 2.0, %v959_v38 }
 0x307   : > { %v961_v56 = vpop.f32.mrf.mxu0 }
 0x308   : > { %3659 = vst [vmem:[#allocation77_spill] sm:$0xff] %v2751_v44  ;;  %v1015_v61 = vmul.f32 2.0, %v961_v56  ;;  %1242 = vmatprep.mubr.f32.mxu1 %v2751_v44  ;;  %v2762_v46 = vsub.f32 %v1014_v37, %v2485_v15 }
 0x309   : > { %v965_v34 = vpop.f32.mrf.mxu0  ;;  %1243 = vmatmul.mubr.f32.gmra.mxu1 %v2754_v54 }
 0x30a   : > { %v2759_v43 = vsub.f32 %v1015_v61, %v2490_v16  ;;  %3662 = vst [vmem:[#allocation80_spill] sm:$0xff] %v2762_v46  ;;  %v1016_v26 = vmul.f32 2.0, %v965_v34 }
 0x30b   : > { %v967_v48 = vpop.f32.mrf.mxu0 }
 0x30c   : > { %3661 = vst [vmem:[#allocation79_spill] sm:$0xff] %v2759_v43  ;;  %v1017_v31 = vmul.f32 2.0, %v967_v48  ;;  %1248 = vmatprep.mubr.f32.mxu1 %v2759_v43  ;;  %v2770_v56 = vsub.f32 %v1016_v26, %v2495_v17 }
 0x30d   : > { %v971_v51 = vpop.f32.mrf.mxu0  ;;  %1249 = vmatmul.mubr.f32.gmra.mxu1 %v2762_v46 }
 0x30e   : > { %v2767_v38 = vsub.f32 %v1017_v31, %v2500_v18  ;;  %3664 = vst [vmem:[#allocation82_spill] sm:$0xff] %v2770_v56  ;;  %v1018_v44 = vmul.f32 2.0, %v971_v51 }
 0x30f   : > { %v973_v61 = vpop.f32.mrf.mxu0 }
 0x310   : > { %3663 = vst [vmem:[#allocation81_spill] sm:$0xff] %v2767_v38  ;;  %v1019_v54 = vmul.f32 2.0, %v973_v61  ;;  %1254 = vmatprep.mubr.f32.mxu1 %v2767_v38  ;;  %v2778_v48 = vsub.f32 %v1018_v44, %v2505_v19 }
 0x311   : > { %v977_v37 = vpop.f32.mrf.mxu0  ;;  %1255 = vmatmul.mubr.f32.gmra.mxu1 %v2770_v56 }
 0x312   : > { %v2775_v34 = vsub.f32 %v1019_v54, %v2510_v20  ;;  %3666 = vst [vmem:[#allocation84_spill] sm:$0xff] %v2778_v48  ;;  %v1020_v43 = vmul.f32 2.0, %v977_v37 }
 0x313   : > { %v979_v31 = vpop.f32.mrf.mxu0 }
 0x314   : > { %3665 = vst [vmem:[#allocation83_spill] sm:$0xff] %v2775_v34  ;;  %v1021_v46 = vmul.f32 2.0, %v979_v31  ;;  %1260 = vmatprep.mubr.f32.mxu1 %v2775_v34  ;;  %v2786_v61 = vsub.f32 %v1020_v43, %v2515_v21 }
 0x315   : > { %v983_v26 = vpop.f32.mrf.mxu0  ;;  %1261 = vmatmul.mubr.f32.gmra.mxu1 %v2778_v48 }
 0x316   : > { %v2783_v51 = vsub.f32 %v1021_v46, %v2520_v22  ;;  %3668 = vst [vmem:[#allocation86_spill] sm:$0xff] %v2786_v61  ;;  %v1022_v38 = vmul.f32 2.0, %v983_v26 }
 0x317   : > { %v985_v54 = vpop.f32.mrf.mxu0 }
 0x318   : > { %3667 = vst [vmem:[#allocation85_spill] sm:$0xff] %v2783_v51  ;;  %v1023_v56 = vmul.f32 2.0, %v985_v54  ;;  %1266 = vmatprep.mubr.f32.mxu1 %v2783_v51  ;;  %v2794_v31 = vsub.f32 %v1022_v38, %v2525_v23  ;;  %v282_v38 = vstv %s281_s20 }
 0x319   : > { %v989_v44 = vpop.f32.mrf.mxu0  ;;  %1267 = vmatmul.mubr.f32.gmra.mxu1 %v2786_v61 }
 0x31a   : > { %v2791_v37 = vsub.f32 %v1023_v56, %v2530_v27  ;;  %3670 = vst [vmem:[#allocation88_spill] sm:$0xff] %v2794_v31  ;;  %v1024_v46 = vmul.f32 2.0, %v989_v44  ;;  %v1635_v56 = vld [vmem:[%s1936_s30 + $0x8] sm:$0xff]  ;;  %v2820_v27 = vstv %s1559_s22 }
 0x31b   : > { %v991_v43 = vpop.f32.mrf.mxu0  ;;  %v284_v44 = vmul.f32 %v1635_v56, %v282_v38  ;;  %v294_v56 = vmul.f32 %v282_v38, %v3596_v47  ;;  %v2831_v47 = vmul.f32 %v282_v38, %v3616_v52  ;;  %v3682_v52 = vld [vmem:[#allocation46_spill] sm:$0xff] }
 0x31c   : > { %3669 = vst [vmem:[#allocation87_spill] sm:$0xff] %v2791_v37  ;;  %v1025_v34 = vmul.f32 2.0, %v991_v43  ;;  %1272 = vmatprep.mubr.f32.mxu1 %v2791_v37  ;;  %v2802_v54 = vsub.f32 %v1024_v46, %v2535_v28  ;;  %v1636_v43 = vld [vmem:[%s1936_s30] sm:$0xff]  ;;  %v1637_v37 = vld [vmem:[%s1936_s30 + $0x18] sm:$0xff]  ;;  %v287_v46 = vmul.f32 %v282_v38, %v3586_v55  ;;  %v291_v28 = vmul.f32 %v282_v38, %v3594_v39 }
 0x31d   : > { %1273 = vmatmul.mubr.f32.gmra.mxu1 %v2794_v31  ;;  %v283_v51 = vmul.f32 %v1636_v43, %v282_v38  ;;  %v286_v61 = vmul.f32 %v1637_v37, %v282_v38  ;;  %v1638_v31 = vld [vmem:[%s1936_s30 + $0x10] sm:$0xff]  ;;  %v293_v43 = vmul.f32 %v282_v38, %v3598_v50  ;;  %v296_v37 = vmul.f32 %v282_v38, %v3600_v63  ;;  %v3674_v50 = vld [vmem:[#allocation42_spill] sm:$0xff] }
 0x31e   : > { %v2799_v26 = vsub.f32 %v1025_v34, %v2540_v30  ;;  %3672 = vst [vmem:[#allocation90_spill] sm:$0xff] %v2802_v54  ;;  %v285_v48 = vmul.f32 %v1638_v31, %v282_v38  ;;  %v288_v34 = vmul.f32 %v282_v38, %v3584_v53  ;;  %v290_v30 = vmul.f32 %v282_v38, %v3588_v25 }
 0x31f   : > { %v295_v31 = vmul.f32 %v282_v38, %v3602_v33  ;;  %v298_v53 = vmul.f32 %v282_v38, %v3604_v45  ;;  %v297_v55 = vmul.f32 %v282_v38, %v3606_v49  ;;  %v300_v25 = vmul.f32 %v282_v38, %v3608_v62  ;;  %3673 = vst [vmem:[#allocation91_spill] sm:$0xff] %v2831_v47  ;;  %v3676_v33 = vld [vmem:[#allocation43_spill] sm:$0xff]  ;;  %v3678_v45 = vld [vmem:[#allocation44_spill] sm:$0xff] }
 0x320   : > { %3671 = vst [vmem:[#allocation89_spill] sm:$0xff] %v2799_v26  ;;  %1278 = vmatprep.mubr.f32.mxu1 %v2799_v26  ;;  %v289_v26 = vmul.f32 %v282_v38, %v3590_v29  ;;  %v299_v29 = vmul.f32 %v282_v38, %v3610_v32  ;;  %v301_v39 = vmul.f32 %v282_v38, %v3614_v59 }
 0x321   : > { %1279 = vmatmul.mubr.f32.gmra.mxu1 %v2802_v54  ;;  %v292_v54 = vmul.f32 %v282_v38, %v3592_v36  ;;  %v2827_v36 = vmul.f32 %v282_v38, %v3612_v42  ;;  %v2834_v63 = vmul.f32 %v282_v38, %v3674_v50  ;;  %v2837_v23 = vmul.f32 %v282_v38, %v3676_v33  ;;  %v3680_v42 = vld [vmem:[#allocation45_spill] sm:$0xff]  ;;  %v3683_v50 = vld [vmem:[#allocation47_spill] sm:$0xff] }
 0x322   : > { %v2840_v49 = vmul.f32 %v282_v38, %v3678_v45  ;;  %v478_v32 = vmul.f32 %v2820_v27, %v2391_v58  ;;  %v479_v62 = vmul.f32 %v2820_v27, %v3640_v35  ;;  %v2847_v59 = vmul.f32 %v282_v38, %v3680_v42  ;;  %v3684_v45 = vld [vmem:[#allocation49_spill] sm:$0xff] }
 0x323   : > { %3675 = vst [vmem:[#allocation42_spill] sm:$0xff] %v2834_v63  ;;  %3677 = vst [vmem:[#allocation43_spill] sm:$0xff] %v2837_v23  ;;  %v2850_v47 = vmul.f32 %v282_v38, %v3682_v52  ;;  %v2853_v63 = vmul.f32 %v282_v38, %v3683_v50  ;;  %v2856_v33 = vmul.f32 %v282_v38, %v3630_v41  ;;  %v3687_v52 = vld [vmem:[#allocation51_spill] sm:$0xff] }
 0x324   : > { %3679 = vst [vmem:[#allocation44_spill] sm:$0xff] %v2840_v49  ;;  %3681 = vst [vmem:[#allocation45_spill] sm:$0xff] %v2847_v59  ;;  %v2859_v23 = vmul.f32 %v282_v38, %v3684_v45  ;;  %v3686_v49 = vld [vmem:[#allocation50_spill] sm:$0xff]  ;;  %v480_v35 = vmul.f32 %v2820_v27, %v2396_v60  ;;  %v481_v42 = vmul.f32 %v2820_v27, %v2400_v0 }
 0x325   : > { %v2862_v58 = vmul.f32 %v282_v38, %v3686_v49  ;;  %v2869_v59 = vmul.f32 %v282_v38, %v3687_v52  ;;  %v2872_v50 = vmul.f32 %v282_v38, %v3638_v40  ;;  %v482_v41 = vmul.f32 %v2820_v27, %v2405_v24 }
 0x326   : > { %3685 = vst [vmem:[#allocation46_spill] sm:$0xff] %v2859_v23  ;;  %v483_v45 = vmul.f32 %v2820_v27, %v2410_v57  ;;  %v2878_v49 = vadd.f32 %v478_v32, %v283_v51  ;;  %v2880_v23 = vadd.f32 %v479_v62, %v284_v44  ;;  %v484_v60 = vmul.f32 %v2820_v27, %v2415_v1 }
 0x327   : > { %v485_v0 = vmul.f32 %v2820_v27, %v2420_v2  ;;  %v486_v40 = vmul.f32 %v2820_v27, %v2425_v3  ;;  %v487_v38 = vmul.f32 %v2820_v27, %v2430_v4  ;;  %v488_v24 = vmul.f32 %v2820_v27, %v2435_v5 }
 0x328   : > { %v489_v57 = vmul.f32 %v2820_v27, %v2440_v6  ;;  %v2896_v51 = vadd.f32 %v480_v35, %v285_v48  ;;  %v2898_v1 = vadd.f32 %v481_v42, %v286_v61  ;;  %v490_v2 = vmul.f32 %v2820_v27, %v2445_v7 }
 0x329   : > { %v491_v3 = vmul.f32 %v2820_v27, %v2450_v8  ;;  %v2904_v44 = vadd.f32 %v482_v41, %v287_v46  ;;  %v2906_v4 = vadd.f32 %v483_v45, %v288_v34  ;;  %v492_v5 = vmul.f32 %v2820_v27, %v2455_v9  ;;  %v3694_v45 = vld [vmem:[#allocation15_spill] sm:$0xff] }
 0x32a   : > { %v493_v6 = vmul.f32 %v2820_v27, %v2460_v10  ;;  %v2914_v48 = vadd.f32 %v484_v60, %v289_v26  ;;  %v2916_v61 = vadd.f32 %v485_v0, %v290_v30  ;;  %v494_v7 = vmul.f32 %v2820_v27, %v2465_v11  ;;  %v3693_v41 = vld [vmem:[#allocation43_spill] sm:$0xff]  ;;  %v3695_v0 = vld [vmem:[#allocation21_spill] sm:$0xff] }
 0x32b   : > { %v495_v8 = vmul.f32 %v2820_v27, %v2470_v12  ;;  %v2922_v34 = vadd.f32 %v486_v40, %v291_v28  ;;  %v2924_v46 = vadd.f32 %v487_v38, %v292_v54  ;;  %v2926_v9 = vadd.f32 %v488_v24, %v293_v43  ;;  %v3692_v52 = vld [vmem:[#allocation44_spill] sm:$0xff]  ;;  %v3696_v24 = vld [vmem:[#allocation45_spill] sm:$0xff] }
 0x32c   : > { %v2928_v32 = vadd.f32 %v489_v57, %v294_v56  ;;  %v2930_v10 = vadd.f32 %v490_v2, %v295_v31  ;;  %v2932_v26 = vadd.f32 %v491_v3, %v296_v37  ;;  %v496_v30 = vmul.f32 %v2820_v27, %v2475_v13  ;;  %v3697_v3 = vld [vmem:[#allocation18_spill] sm:$0xff] }
 0x32d   : > { %v497_v11 = vmul.f32 %v2820_v27, %v2480_v14  ;;  %v2938_v12 = vadd.f32 %v492_v5, %v297_v55  ;;  %v2940_v28 = vadd.f32 %v493_v6, %v298_v53  ;;  %v498_v54 = vmul.f32 %v2820_v27, %v2485_v15 }
 0x32e   : > { %v499_v56 = vmul.f32 %v2820_v27, %v2490_v16  ;;  %v2948_v43 = vadd.f32 %v494_v7, %v299_v29  ;;  %v2950_v37 = vadd.f32 %v495_v8, %v300_v25  ;;  %v500_v13 = vmul.f32 %v2820_v27, %v2495_v17 }
 0x32f   : > { %v501_v14 = vmul.f32 %v2820_v27, %v2500_v18  ;;  %v502_v31 = vmul.f32 %v2820_v27, %v2505_v19  ;;  %v503_v15 = vmul.f32 %v2820_v27, %v2510_v20  ;;  %v504_v16 = vmul.f32 %v2820_v27, %v2515_v21  ;;  %v3688_v18 = vld [vmem:[#allocation19_spill] sm:$0xff]  ;;  %v3689_v19 = vld [vmem:[#allocation42_spill] sm:$0xff]  ;;  %v3691_v21 = vld [vmem:[#allocation20_spill] sm:$0xff] }
 0x330   : > { %v2963_v53 = vstv %s2894_s4  ;;  %v2965_v55 = vadd.f32 %v496_v30, %v301_v39  ;;  %v2968_v25 = vadd.f32 %v497_v11, %v2827_v36  ;;  %v505_v17 = vmul.f32 %v2820_v27, %v2520_v22  ;;  %v3690_v20 = vld [vmem:[#allocation91_spill] sm:$0xff]  ;;  %v3698_v30 = vld [vmem:[#allocation60_spill] sm:$0xff] }
 0x331   : > { %v506_v29 = vmul.f32 %v2820_v27, %v3688_v18  ;;  %v2975_v62 = vadd.f32 %v498_v54, %v3689_v19  ;;  %v2978_v35 = vadd.f32 %v499_v56, %v3690_v20  ;;  %v507_v42 = vmul.f32 %v2820_v27, %v3691_v21  ;;  %v3699_v54 = vld [vmem:[#allocation46_spill] sm:$0xff] }
 0x332   : > { %v2983_v39 = vstv %s2912_s14  ;;  %v2986_v36 = vadd.f32 %v500_v13, %v3692_v52  ;;  %v2989_v22 = vadd.f32 %v501_v14, %v3693_v41  ;;  %v508_v60 = vmul.f32 %v2820_v27, %v3694_v45  ;;  %v3700_v13 = vld [vmem:[#allocation22_spill] sm:$0xff]  ;;  %v3701_v14 = vld [vmem:[#allocation17_spill] sm:$0xff] }
 0x333   : > { %v769_v40 = vmul.f32 %v2963_v53, %v3695_v0  ;;  %v2996_v38 = vadd.f32 %v502_v31, %v2850_v47  ;;  %v2999_v57 = vadd.f32 %v503_v15, %v3696_v24  ;;  %v3002_v2 = vadd.f32 %v504_v16, %v2856_v33  ;;  %v3703_v20 = vld [vmem:[#allocation14_spill] sm:$0xff] }
 0x334   : > { %v770_v5 = vmul.f32 %v2963_v53, %v3697_v3  ;;  %v3007_v7 = vadd.f32 %v505_v17, %v2853_v63  ;;  %v3010_v8 = vadd.f32 %v506_v29, %v2862_v58  ;;  %v1060_v47 = vmul.f32 %v2983_v39, %v3698_v30  ;;  %v3702_v29 = vld [vmem:[#allocation16_spill] sm:$0xff]  ;;  %v3704_v52 = vld [vmem:[#allocation62_spill] sm:$0xff]  ;;  %v3706_v30 = vld [vmem:[#allocation61_spill] sm:$0xff] }
 0x335   : > { %v3015_v56 = vadd.f32 %v507_v42, %v3699_v54  ;;  %v771_v33 = vmul.f32 %v2963_v53, %v3700_v13  ;;  %v1061_v31 = vmul.f32 %v2983_v39, %v3701_v14  ;;  %v3022_v15 = vstv %s2946_s23 }
 0x336   : > { %v3025_v16 = vadd.f32 %v508_v60, %v2872_v50  ;;  %v801_v58 = vadd.f32 %v769_v40, %v2878_v49  ;;  %v3031_v19 = vmul.f32 %v2820_v27, %v3702_v29  ;;  %v772_v21 = vmul.f32 %v2963_v53, %v3703_v20  ;;  %v3705_v40 = vld [vmem:[#allocation24_spill] sm:$0xff] }
 0x337   : > { %v802_v42 = vadd.f32 %v770_v5, %v2880_v23  ;;  %v1062_v41 = vmul.f32 %v2983_v39, %v3704_v52  ;;  %v773_v27 = vmul.f32 %v2963_v53, %v3705_v40  ;;  %v1063_v23 = vmul.f32 %v2983_v39, %v3706_v30  ;;  %v3709_v52 = vld [vmem:[#allocation26_spill] sm:$0xff] }
 0x338   : > { %v1092_v50 = vadd.f32 %v1060_v47, %v801_v58 }
 0x339   : > { %v1093_v24 = vadd.f32 %v1061_v31, %v802_v42 }
 0x3a5   : > { %v1190_v6 = vpop.f32.mrf.mxu1 }
 0x3a6   : > { %v1285_v11 = vmul.f32 2.0, %v1190_v6  ;;  %v803_v6 = vadd.f32 %v771_v33, %v2896_v51 }
 0x3a7   : > { %v1192_v63 = vpop.f32.mrf.mxu1 }
 0x3a8   : > { %v1317_v17 = vsub.f32 %v1285_v11, %v3695_v0  ;;  %v1286_v18 = vmul.f32 2.0, %v1192_v63  ;;  %v3707_v63 = vld [vmem:[#allocation23_spill] sm:$0xff]  ;;  %v1094_v58 = vadd.f32 %v1062_v41, %v803_v6  ;;  %v805_v41 = vadd.f32 %v773_v27, %v2904_v44 }
 0x3a9   : > { %v1196_v45 = vpop.f32.mrf.mxu1 }
 0x3aa   : > { %v1351_v60 = vmul.f32 %v3022_v15, %v1317_v17  ;;  %v1318_v49 = vsub.f32 %v1286_v18, %v3697_v3  ;;  %v1287_v0 = vmul.f32 2.0, %v1196_v45  ;;  %v774_v3 = vmul.f32 %v2963_v53, %v3707_v63  ;;  %v3708_v18 = vld [vmem:[#allocation64_spill] sm:$0xff]  ;;  %v3710_v45 = vld [vmem:[#allocation63_spill] sm:$0xff] }
 0x3ab   : > { %v1198_v5 = vpop.f32.mrf.mxu1  ;;  %v804_v17 = vadd.f32 %v772_v21, %v2898_v1  ;;  %v1064_v31 = vmul.f32 %v2983_v39, %v3708_v18  ;;  %v775_v1 = vmul.f32 %v2963_v53, %v3709_v52 }
 0x3ac   : > { %v1383_v11 = vadd.f32 %v1351_v60, %v1092_v50  ;;  %v1352_v54 = vmul.f32 %v3022_v15, %v1318_v49  ;;  %v1319_v47 = vsub.f32 %v1287_v0, %v3700_v13  ;;  %v1288_v14 = vmul.f32 2.0, %v1198_v5 }
 0x3ad   : > { %v1202_v51 = vpop.f32.mrf.mxu1  ;;  %v1095_v21 = vadd.f32 %v1063_v23, %v804_v17  ;;  %v1065_v50 = vmul.f32 %v2983_v39, %v3710_v45  ;;  %v1096_v5 = vadd.f32 %v1064_v31, %v805_v41  ;;  %v806_v23 = vadd.f32 %v774_v3, %v2906_v4 }
 0x3ae   : > { %1415 = vst [vmem:[%s3054_s25] sm:$0xff] %v1383_v11  ;;  %v1384_v33 = vadd.f32 %v1352_v54, %v1093_v24  ;;  %v1353_v13 = vmul.f32 %v3022_v15, %v1319_v47  ;;  %v1320_v29 = vsub.f32 %v1288_v14, %v3703_v20  ;;  %v1289_v42 = vmul.f32 2.0, %v1202_v51  ;;  %v3711_v20 = vld [vmem:[#allocation25_spill] sm:$0xff]  ;;  %v3712_v11 = vld [vmem:[#allocation66_spill] sm:$0xff] }
 0x3af   : > { %v1204_v60 = vpop.f32.mrf.mxu1  ;;  %v776_v30 = vmul.f32 %v2963_v53, %v3711_v20  ;;  %v1066_v44 = vmul.f32 %v2983_v39, %v3712_v11  ;;  %v1097_v18 = vadd.f32 %v1065_v50, %v806_v23  ;;  %v807_v31 = vadd.f32 %v775_v1, %v2914_v48  ;;  %v3714_v51 = vld [vmem:[#allocation65_spill] sm:$0xff]  ;;  %v3716_v50 = vld [vmem:[#allocation68_spill] sm:$0xff]  ;;  %v3718_v11 = vld [vmem:[#allocation67_spill] sm:$0xff] }
 0x3b0   : > { %1416 = vst [vmem:[%s3054_s25 + $0x8] sm:$0xff] %v1384_v33  ;;  %v1385_v49 = vadd.f32 %v1353_v13, %v1094_v58  ;;  %v1354_v0 = vmul.f32 %v3022_v15, %v1320_v29  ;;  %v1321_v24 = vsub.f32 %v1289_v42, %v3705_v40  ;;  %v1290_v6 = vmul.f32 2.0, %v1204_v60  ;;  %v3713_v40 = vld [vmem:[#allocation28_spill] sm:$0xff] }
 0x3b1   : > { %v1208_v27 = vpop.f32.mrf.mxu1  ;;  %v777_v17 = vmul.f32 %v2963_v53, %v3713_v40  ;;  %v1067_v4 = vmul.f32 %v2983_v39, %v3714_v51  ;;  %v1098_v41 = vadd.f32 %v1066_v44, %v807_v31  ;;  %v808_v45 = vadd.f32 %v776_v30, %v2916_v61  ;;  %v3720_v31 = vld [vmem:[#allocation70_spill] sm:$0xff] }
 0x3b2   : > { %1417 = vst [vmem:[%s3054_s25 + $0x10] sm:$0xff] %v1385_v49  ;;  %v1386_v54 = vadd.f32 %v1354_v0, %v1095_v21  ;;  %v1355_v47 = vmul.f32 %v3022_v15, %v1321_v24  ;;  %v1322_v14 = vsub.f32 %v1290_v6, %v3707_v63  ;;  %v1291_v58 = vmul.f32 2.0, %v1208_v27  ;;  %v3715_v63 = vld [vmem:[#allocation27_spill] sm:$0xff] }
 0x3b3   : > { %v1210_v3 = vpop.f32.mrf.mxu1  ;;  %v778_v21 = vmul.f32 %v2963_v53, %v3715_v63  ;;  %v1068_v48 = vmul.f32 %v2983_v39, %v3716_v50  ;;  %v809_v23 = vadd.f32 %v777_v17, %v2922_v34  ;;  %v1069_v61 = vmul.f32 %v2983_v39, %v3718_v11 }
 0x3b4   : > { %1418 = vst [vmem:[%s3054_s25 + $0x18] sm:$0xff] %v1386_v54  ;;  %v1387_v33 = vadd.f32 %v1355_v47, %v1096_v5  ;;  %v1356_v13 = vmul.f32 %v3022_v15, %v1322_v14  ;;  %v1323_v29 = vsub.f32 %v1291_v58, %v3709_v52  ;;  %v1292_v42 = vmul.f32 2.0, %v1210_v3  ;;  %v3717_v52 = vld [vmem:[#allocation30_spill] sm:$0xff] }
 0x3b5   : > { %v1214_v1 = vpop.f32.mrf.mxu1  ;;  %v779_v6 = vmul.f32 %v2963_v53, %v3717_v52  ;;  %v1099_v5 = vadd.f32 %v1067_v4, %v808_v45  ;;  %v1100_v58 = vadd.f32 %v1068_v48, %v809_v23  ;;  %v1070_v34 = vmul.f32 %v2983_v39, %v3720_v31 }
 0x3b6   : > { %1419 = vst [vmem:[%s3054_s25 + $0x20] sm:$0xff] %v1387_v33  ;;  %v1388_v60 = vadd.f32 %v1356_v13, %v1097_v18  ;;  %v1357_v49 = vmul.f32 %v3022_v15, %v1323_v29  ;;  %v1324_v0 = vsub.f32 %v1292_v42, %v3711_v20  ;;  %v1293_v24 = vmul.f32 2.0, %v1214_v1  ;;  %v3719_v20 = vld [vmem:[#allocation29_spill] sm:$0xff] }
 0x3b7   : > { %v1216_v30 = vpop.f32.mrf.mxu1  ;;  %v780_v14 = vmul.f32 %v2963_v53, %v3719_v20  ;;  %v810_v18 = vadd.f32 %v778_v21, %v2924_v46  ;;  %v811_v42 = vadd.f32 %v779_v6, %v2926_v9 }
 0x3b8   : > { %1420 = vst [vmem:[%s3054_s25 + $0x28] sm:$0xff] %v1388_v60  ;;  %v1389_v44 = vadd.f32 %v1357_v49, %v1098_v41  ;;  %v1358_v27 = vmul.f32 %v3022_v15, %v1324_v0  ;;  %v1325_v54 = vsub.f32 %v1293_v24, %v3713_v40  ;;  %v1294_v47 = vmul.f32 2.0, %v1216_v30  ;;  %v3721_v40 = vld [vmem:[#allocation32_spill] sm:$0xff]  ;;  %v3722_v41 = vld [vmem:[#allocation69_spill] sm:$0xff] }
 0x3b9   : > { %v1220_v17 = vpop.f32.mrf.mxu1  ;;  %v781_v13 = vmul.f32 %v2963_v53, %v3721_v40  ;;  %v1101_v29 = vadd.f32 %v1069_v61, %v810_v18  ;;  %v1071_v46 = vmul.f32 %v2983_v39, %v3722_v41  ;;  %v1102_v49 = vadd.f32 %v1070_v34, %v811_v42  ;;  %v3724_v24 = vld [vmem:[#allocation72_spill] sm:$0xff] }
 0x3ba   : > { %1421 = vst [vmem:[%s3054_s25 + $0x30] sm:$0xff] %v1389_v44  ;;  %v1390_v51 = vadd.f32 %v1358_v27, %v1099_v5  ;;  %v1359_v4 = vmul.f32 %v3022_v15, %v1325_v54  ;;  %v1326_v3 = vsub.f32 %v1294_v47, %v3715_v63  ;;  %v1295_v33 = vmul.f32 2.0, %v1220_v17  ;;  %v3723_v63 = vld [vmem:[#allocation31_spill] sm:$0xff] }
 0x3bb   : > { %v1222_v21 = vpop.f32.mrf.mxu1  ;;  %v782_v60 = vmul.f32 %v2963_v53, %v3723_v63  ;;  %v812_v0 = vadd.f32 %v780_v14, %v2928_v32  ;;  %v1072_v9 = vmul.f32 %v2983_v39, %v3724_v24  ;;  %v813_v27 = vadd.f32 %v781_v13, %v2930_v10  ;;  %v3726_v54 = vld [vmem:[#allocation71_spill] sm:$0xff] }
 0x3bc   : > { %1422 = vst [vmem:[%s3054_s25 + $0x38] sm:$0xff] %v1390_v51  ;;  %v1391_v45 = vadd.f32 %v1359_v4, %v1100_v58  ;;  %v1360_v50 = vmul.f32 %v3022_v15, %v1326_v3  ;;  %v1327_v48 = vsub.f32 %v1295_v33, %v3717_v52  ;;  %v1296_v1 = vmul.f32 2.0, %v1222_v21  ;;  %v3725_v52 = vld [vmem:[#allocation34_spill] sm:$0xff] }
 0x3bd   : > { %v1226_v6 = vpop.f32.mrf.mxu1  ;;  %v783_v30 = vmul.f32 %v2963_v53, %v3725_v52  ;;  %v1103_v44 = vadd.f32 %v1071_v46, %v812_v0  ;;  %v1073_v32 = vmul.f32 %v2983_v39, %v3726_v54  ;;  %v1104_v17 = vadd.f32 %v1072_v9, %v813_v27  ;;  %v3728_v4 = vld [vmem:[#allocation74_spill] sm:$0xff] }
 0x3be   : > { %1423 = vst [vmem:[%s3054_s25 + $0x40] sm:$0xff] %v1391_v45  ;;  %v1392_v5 = vadd.f32 %v1360_v50, %v1101_v29  ;;  %v1361_v23 = vmul.f32 %v3022_v15, %v1327_v48  ;;  %v1328_v11 = vsub.f32 %v1296_v1, %v3719_v20  ;;  %v1297_v61 = vmul.f32 2.0, %v1226_v6  ;;  %v3727_v20 = vld [vmem:[#allocation33_spill] sm:$0xff]  ;;  %v3732_v6 = vld [vmem:[#allocation76_spill] sm:$0xff] }
 0x3bf   : > { %v1228_v47 = vpop.f32.mrf.mxu1  ;;  %v784_v34 = vmul.f32 %v2963_v53, %v3727_v20  ;;  %v814_v51 = vadd.f32 %v782_v60, %v2932_v26  ;;  %v1074_v10 = vmul.f32 %v2983_v39, %v3728_v4  ;;  %v815_v21 = vadd.f32 %v783_v30, %v2938_v12  ;;  %v3730_v45 = vld [vmem:[#allocation73_spill] sm:$0xff]  ;;  %v3736_v4 = vld [vmem:[#allocation78_spill] sm:$0xff] }
 0x3c0   : > { %1424 = vst [vmem:[%s3054_s25 + $0x48] sm:$0xff] %v1392_v5  ;;  %v1393_v14 = vadd.f32 %v1361_v23, %v1102_v49  ;;  %v1362_v58 = vmul.f32 %v3022_v15, %v1328_v11  ;;  %v1329_v18 = vsub.f32 %v1297_v61, %v3721_v40  ;;  %v1298_v31 = vmul.f32 2.0, %v1228_v47  ;;  %v3729_v40 = vld [vmem:[#allocation36_spill] sm:$0xff] }
 0x3c1   : > { %v1232_v3 = vpop.f32.mrf.mxu1  ;;  %v785_v41 = vmul.f32 %v2963_v53, %v3729_v40  ;;  %v1105_v46 = vadd.f32 %v1073_v32, %v814_v51  ;;  %v1075_v26 = vmul.f32 %v2983_v39, %v3730_v45  ;;  %v1106_v24 = vadd.f32 %v1074_v10, %v815_v21  ;;  %v3734_v32 = vld [vmem:[#allocation75_spill] sm:$0xff]  ;;  %v3738_v21 = vld [vmem:[#allocation77_spill] sm:$0xff] }
 0x3c2   : > { %1425 = vst [vmem:[%s3054_s25 + $0x50] sm:$0xff] %v1393_v14  ;;  %v1394_v33 = vadd.f32 %v1362_v58, %v1103_v44  ;;  %v1363_v13 = vmul.f32 %v3022_v15, %v1329_v18  ;;  %v1330_v29 = vsub.f32 %v1298_v31, %v3723_v63  ;;  %v1299_v42 = vmul.f32 2.0, %v1232_v3  ;;  %v3731_v63 = vld [vmem:[#allocation35_spill] sm:$0xff] }
 0x3c3   : > { %v1234_v50 = vpop.f32.mrf.mxu1  ;;  %v786_v0 = vmul.f32 %v2963_v53, %v3731_v63  ;;  %v816_v9 = vadd.f32 %v784_v34, %v2940_v28  ;;  %v1076_v12 = vmul.f32 %v2983_v39, %v3732_v6  ;;  %v817_v54 = vadd.f32 %v785_v41, %v2948_v43 }
 0x3c4   : > { %1426 = vst [vmem:[%s3054_s25 + $0x58] sm:$0xff] %v1394_v33  ;;  %v1395_v48 = vadd.f32 %v1363_v13, %v1104_v17  ;;  %v1364_v1 = vmul.f32 %v3022_v15, %v1330_v29  ;;  %v1331_v60 = vsub.f32 %v1299_v42, %v3725_v52  ;;  %v1300_v49 = vmul.f32 2.0, %v1234_v50  ;;  %v3733_v52 = vld [vmem:[#allocation38_spill] sm:$0xff]  ;;  %v3737_v42 = vld [vmem:[#allocation40_spill] sm:$0xff] }
 0x3c5   : > { %v1238_v5 = vpop.f32.mrf.mxu1  ;;  %v787_v44 = vmul.f32 %v2963_v53, %v3733_v52  ;;  %v1107_v27 = vadd.f32 %v1075_v26, %v816_v9  ;;  %v1077_v28 = vmul.f32 %v2983_v39, %v3734_v32  ;;  %v1108_v17 = vadd.f32 %v1076_v12, %v817_v54 }
 0x3c6   : > { %1427 = vst [vmem:[%s3054_s25 + $0x60] sm:$0xff] %v1395_v48  ;;  %v1396_v23 = vadd.f32 %v1364_v1, %v1105_v46  ;;  %v1365_v11 = vmul.f32 %v3022_v15, %v1331_v60  ;;  %v1332_v61 = vsub.f32 %v1300_v49, %v3727_v20  ;;  %v1301_v30 = vmul.f32 2.0, %v1238_v5  ;;  %v3735_v20 = vld [vmem:[#allocation37_spill] sm:$0xff]  ;;  %v3739_v60 = vld [vmem:[#allocation39_spill] sm:$0xff] }
 0x3c7   : > { %v1240_v47 = vpop.f32.mrf.mxu1  ;;  %v788_v34 = vmul.f32 %v2963_v53, %v3735_v20  ;;  %v818_v51 = vadd.f32 %v786_v0, %v2950_v37  ;;  %v1078_v43 = vmul.f32 %v2983_v39, %v3736_v4  ;;  %v819_v46 = vadd.f32 %v787_v44, %v2965_v55  ;;  %v3742_v44 = vld [vmem:[#allocation79_spill] sm:$0xff] }
 0x3c8   : > { %1428 = vst [vmem:[%s3054_s25 + $0x68] sm:$0xff] %v1396_v23  ;;  %v1397_v14 = vadd.f32 %v1365_v11, %v1106_v24  ;;  %v1366_v58 = vmul.f32 %v3022_v15, %v1332_v61  ;;  %v1333_v18 = vsub.f32 %v1301_v30, %v3729_v40  ;;  %v1302_v31 = vmul.f32 2.0, %v1240_v47  ;;  %v3740_v24 = vld [vmem:[#allocation80_spill] sm:$0xff]  ;;  %v3741_v11 = vld [vmem:[#allocation53_spill] sm:$0xff] }
 0x3c9   : > { %v1244_v10 = vpop.f32.mrf.mxu1  ;;  %v789_v40 = vmul.f32 %v2963_v53, %v3737_v42  ;;  %v1109_v41 = vadd.f32 %v1077_v28, %v818_v51  ;;  %v1079_v37 = vmul.f32 %v2983_v39, %v3738_v21  ;;  %v790_v49 = vmul.f32 %v2963_v53, %v3739_v60 }
 0x3ca   : > { %1429 = vst [vmem:[%s3054_s25 + $0x70] sm:$0xff] %v1397_v14  ;;  %v1398_v3 = vadd.f32 %v1366_v58, %v1107_v27  ;;  %v1367_v33 = vmul.f32 %v3022_v15, %v1333_v18  ;;  %v1334_v13 = vsub.f32 %v1302_v31, %v3731_v63  ;;  %v1303_v29 = vmul.f32 2.0, %v1244_v10  ;;  %v3743_v14 = vld [vmem:[#allocation41_spill] sm:$0xff]  ;;  %v3745_v10 = vld [vmem:[#allocation55_spill] sm:$0xff] }
 0x3cb   : > { %v1246_v45 = vpop.f32.mrf.mxu1  ;;  %v1110_v63 = vadd.f32 %v1078_v43, %v819_v46  ;;  %v820_v0 = vadd.f32 %v788_v34, %v2968_v25  ;;  %v1080_v55 = vmul.f32 %v2983_v39, %v3740_v24  ;;  %v791_v61 = vmul.f32 %v2963_v53, %v3741_v11  ;;  %v3749_v24 = vld [vmem:[#allocation48_spill] sm:$0xff] }
 0x3cc   : > { %1430 = vst [vmem:[%s3054_s25 + $0x78] sm:$0xff] %v1398_v3  ;;  %v1399_v26 = vadd.f32 %v1367_v33, %v1108_v17  ;;  %v1368_v50 = vmul.f32 %v3022_v15, %v1334_v13  ;;  %v1335_v48 = vsub.f32 %v1303_v29, %v3733_v52  ;;  %v1304_v1 = vmul.f32 2.0, %v1246_v45  ;;  %v3746_v29 = vld [vmem:[#allocation81_spill] sm:$0xff] }
 0x3cd   : > { %v1250_v9 = vpop.f32.mrf.mxu1  ;;  %v1111_v30 = vadd.f32 %v1079_v37, %v820_v0  ;;  %v821_v52 = vadd.f32 %v789_v40, %v2975_v62  ;;  %v1081_v25 = vmul.f32 %v2983_v39, %v3742_v44  ;;  %v792_v58 = vmul.f32 %v2963_v53, %v3743_v14  ;;  %v3747_v37 = vld [vmem:[#allocation54_spill] sm:$0xff] }
 0x3ce   : > { %1431 = vst [vmem:[%s3054_s25 + $0x80] sm:$0xff] %v1399_v26  ;;  %v1400_v6 = vadd.f32 %v1368_v50, %v1109_v41  ;;  %v1369_v12 = vmul.f32 %v3022_v15, %v1335_v48  ;;  %v1336_v5 = vsub.f32 %v1304_v1, %v3735_v20  ;;  %v1305_v23 = vmul.f32 2.0, %v1250_v9  ;;  %v3744_v20 = vld [vmem:[#allocation82_spill] sm:$0xff]  ;;  %v3748_v48 = vld [vmem:[#allocation84_spill] sm:$0xff] }
 0x3cf   : > { %v1252_v27 = vpop.f32.mrf.mxu1  ;;  %v1112_v18 = vadd.f32 %v1080_v55, %v821_v52  ;;  %v822_v31 = vadd.f32 %v790_v49, %v2978_v35  ;;  %v1082_v62 = vmul.f32 %v2983_v39, %v3744_v20  ;;  %v793_v3 = vmul.f32 %v2963_v53, %v3745_v10  ;;  %v3751_v52 = vld [vmem:[#allocation56_spill] sm:$0xff] }
 0x3d0   : > { %1432 = vst [vmem:[%s3054_s25 + $0x88] sm:$0xff] %v1400_v6  ;;  %v1401_v54 = vadd.f32 %v1369_v12, %v1110_v63  ;;  %v1370_v32 = vmul.f32 %v3022_v15, %v1336_v5  ;;  %v1337_v28 = vsub.f32 %v1305_v23, %v3737_v42  ;;  %v1306_v47 = vmul.f32 2.0, %v1252_v27  ;;  %v3750_v12 = vld [vmem:[#allocation83_spill] sm:$0xff] }
 0x3d1   : > { %v1256_v34 = vpop.f32.mrf.mxu1  ;;  %v1113_v33 = vadd.f32 %v1081_v25, %v822_v31  ;;  %v823_v13 = vadd.f32 %v791_v61, %v2986_v36  ;;  %v1083_v35 = vmul.f32 %v2983_v39, %v3746_v29  ;;  %v794_v45 = vmul.f32 %v2963_v53, %v3747_v37 }
 0x3d2   : > { %1433 = vst [vmem:[%s3054_s25 + $0x90] sm:$0xff] %v1401_v54  ;;  %v1402_v17 = vadd.f32 %v1370_v32, %v1111_v30  ;;  %v1371_v51 = vmul.f32 %v3022_v15, %v1337_v28  ;;  %v1338_v4 = vsub.f32 %v1306_v47, %v3739_v60  ;;  %v1307_v43 = vmul.f32 2.0, %v1256_v34  ;;  %v3752_v54 = vld [vmem:[#allocation86_spill] sm:$0xff]  ;;  %v3754_v34 = vld [vmem:[#allocation85_spill] sm:$0xff] }
 0x3d3   : > { %v1258_v42 = vpop.f32.mrf.mxu1  ;;  %v1114_v26 = vadd.f32 %v1082_v62, %v823_v13  ;;  %v824_v50 = vadd.f32 %v792_v58, %v2989_v22  ;;  %v1084_v36 = vmul.f32 %v2983_v39, %v3748_v48  ;;  %v795_v55 = vmul.f32 %v2963_v53, %v3749_v24  ;;  %v3758_v48 = vld [vmem:[#allocation87_spill] sm:$0xff] }
 0x3d4   : > { %1434 = vst [vmem:[%s3054_s25 + $0x98] sm:$0xff] %v1402_v17  ;;  %v1403_v40 = vadd.f32 %v1371_v51, %v1112_v18  ;;  %v1372_v41 = vmul.f32 %v3022_v15, %v1338_v4  ;;  %v1339_v46 = vsub.f32 %v1307_v43, %v3741_v11  ;;  %v1308_v21 = vmul.f32 2.0, %v1258_v42  ;;  %v3753_v18 = vld [vmem:[#allocation58_spill] sm:$0xff] }
 0x3d5   : > { %v1262_v1 = vpop.f32.mrf.mxu1  ;;  %v1115_v9 = vadd.f32 %v1083_v35, %v824_v50  ;;  %v825_v6 = vadd.f32 %v793_v3, %v2996_v38  ;;  %v1085_v22 = vmul.f32 %v2983_v39, %v3750_v12  ;;  %v796_v44 = vmul.f32 %v2963_v53, %v3751_v52  ;;  %v3755_v3 = vld [vmem:[#allocation57_spill] sm:$0xff]  ;;  %v3756_v35 = vld [vmem:[#allocation88_spill] sm:$0xff] }
 0x3d6   : > { %1435 = vst [vmem:[%s3054_s25 + $0xa0] sm:$0xff] %v1403_v40  ;;  %v1404_v60 = vadd.f32 %v1372_v41, %v1113_v33  ;;  %v1373_v49 = vmul.f32 %v3022_v15, %v1339_v46  ;;  %v1340_v63 = vsub.f32 %v1308_v21, %v3743_v14  ;;  %v1309_v0 = vmul.f32 2.0, %v1262_v1 }
 0x3d7   : > { %v1264_v5 = vpop.f32.mrf.mxu1  ;;  %v1116_v25 = vadd.f32 %v1084_v36, %v825_v6  ;;  %v826_v27 = vadd.f32 %v794_v45, %v2999_v57  ;;  %v1086_v38 = vmul.f32 %v2983_v39, %v3752_v54  ;;  %v797_v31 = vmul.f32 %v2963_v53, %v3753_v18  ;;  %v3760_v6 = vld [vmem:[#allocation90_spill] sm:$0xff] }
 0x3d8   : > { %1436 = vst [vmem:[%s3054_s25 + $0xa8] sm:$0xff] %v1404_v60  ;;  %v1405_v23 = vadd.f32 %v1373_v49, %v1114_v26  ;;  %v1374_v11 = vmul.f32 %v3022_v15, %v1340_v63  ;;  %v1341_v61 = vsub.f32 %v1309_v0, %v3745_v10  ;;  %v1310_v30 = vmul.f32 2.0, %v1264_v5  ;;  %v3759_v0 = vld [vmem:[#allocation59_spill] sm:$0xff] }
 0x3d9   : > { %v1268_v32 = vpop.f32.mrf.mxu1  ;;  %v1117_v20 = vadd.f32 %v1085_v22, %v826_v27  ;;  %v827_v62 = vadd.f32 %v795_v55, %v3002_v2  ;;  %v1087_v57 = vmul.f32 %v2983_v39, %v3754_v34  ;;  %v798_v33 = vmul.f32 %v2963_v53, %v3755_v3 }
 0x3da   : > { %1437 = vst [vmem:[%s3054_s25 + $0xb0] sm:$0xff] %v1405_v23  ;;  %v1406_v28 = vadd.f32 %v1374_v11, %v1115_v9  ;;  %v1375_v47 = vmul.f32 %v3022_v15, %v1341_v61  ;;  %v1342_v14 = vsub.f32 %v1310_v30, %v3747_v37  ;;  %v1311_v58 = vmul.f32 2.0, %v1268_v32  ;;  %v3757_v37 = vld [vmem:[#allocation52_spill] sm:$0xff]  ;;  %v3761_v30 = vld [vmem:[#allocation89_spill] sm:$0xff] }
 0x3db   : > { %v1270_v17 = vpop.f32.mrf.mxu1  ;;  %v1118_v13 = vadd.f32 %v1086_v38, %v827_v62  ;;  %v828_v29 = vadd.f32 %v796_v44, %v3007_v7  ;;  %v1088_v2 = vmul.f32 %v2983_v39, %v3756_v35  ;;  %v799_v45 = vmul.f32 %v2963_v53, %v3757_v37 }
 0x3dc   : > { %1438 = vst [vmem:[%s3054_s25 + $0xb8] sm:$0xff] %v1406_v28  ;;  %v1407_v51 = vadd.f32 %v1375_v47, %v1116_v25  ;;  %v1376_v4 = vmul.f32 %v3022_v15, %v1342_v14  ;;  %v1343_v43 = vsub.f32 %v1311_v58, %v3749_v24  ;;  %v1312_v10 = vmul.f32 2.0, %v1270_v17 }
 0x3dd   : > { %v1274_v42 = vpop.f32.mrf.mxu1  ;;  %v1119_v26 = vadd.f32 %v1087_v57, %v828_v29  ;;  %v829_v50 = vadd.f32 %v797_v31, %v3010_v8  ;;  %v1089_v7 = vmul.f32 %v2983_v39, %v3758_v48  ;;  %v800_v24 = vmul.f32 %v2963_v53, %v3759_v0 }
 0x3de   : > { %1439 = vst [vmem:[%s3054_s25 + $0xc0] sm:$0xff] %v1407_v51  ;;  %v1408_v40 = vadd.f32 %v1376_v4, %v1117_v20  ;;  %v1377_v41 = vmul.f32 %v3022_v15, %v1343_v43  ;;  %v1344_v46 = vsub.f32 %v1312_v10, %v3751_v52  ;;  %v1313_v21 = vmul.f32 2.0, %v1274_v42 }
 0x3df   : > { %v1276_v36 = vpop.f32.mrf.mxu1  ;;  %v1120_v55 = vadd.f32 %v1088_v2, %v829_v50  ;;  %v830_v9 = vadd.f32 %v798_v33, %v3015_v56  ;;  %v1090_v8 = vmul.f32 %v2983_v39, %v3760_v6  ;;  %v541_v61 = vadd.f32 %v3031_v19, %v2869_v59 }
 0x3e0   : > { %1440 = vst [vmem:[%s3054_s25 + $0xc8] sm:$0xff] %v1408_v40  ;;  %v1409_v1 = vadd.f32 %v1377_v41, %v1118_v13  ;;  %v1378_v60 = vmul.f32 %v3022_v15, %v1344_v46  ;;  %v1345_v49 = vsub.f32 %v1313_v21, %v3753_v18  ;;  %v1314_v63 = vmul.f32 2.0, %v1276_v36 }
 0x3e1   : > { %v1280_v12 = vpop.f32.mrf.mxu1  ;;  %v1121_v53 = vadd.f32 %v1089_v7, %v830_v9  ;;  %v831_v56 = vadd.f32 %v799_v45, %v3025_v16  ;;  %v1091_v52 = vmul.f32 %v2983_v39, %v3761_v30  ;;  %v832_v32 = vadd.f32 %v800_v24, %v541_v61 }
 0x3e2   : > { %1441 = vst [vmem:[%s3054_s25 + $0xd0] sm:$0xff] %v1409_v1  ;;  %v1410_v22 = vadd.f32 %v1378_v60, %v1119_v26  ;;  %v1379_v5 = vmul.f32 %v3022_v15, %v1345_v49  ;;  %v1346_v23 = vsub.f32 %v1314_v63, %v3755_v3  ;;  %v1315_v11 = vmul.f32 2.0, %v1280_v12 }
 0x3e3   : > { %v1282_v44 = vpop.f32.mrf.mxu1  ;;  %v1122_v59 = vadd.f32 %v1090_v8, %v831_v56  ;;  %v1123_v28 = vadd.f32 %v1091_v52, %v832_v32 }
 0x3e4   : > { %1442 = vst [vmem:[%s3054_s25 + $0xd8] sm:$0xff] %v1410_v22  ;;  %v1411_v25 = vadd.f32 %v1379_v5, %v1120_v55  ;;  %v1380_v27 = vmul.f32 %v3022_v15, %v1346_v23  ;;  %v1347_v54 = vsub.f32 %v1315_v11, %v3757_v37  ;;  %v1316_v38 = vmul.f32 2.0, %v1282_v44 }
 0x3e6   : > { %1443 = vst [vmem:[%s3054_s25 + $0xe0] sm:$0xff] %v1411_v25  ;;  %v1412_v19 = vadd.f32 %v1380_v27, %v1121_v53  ;;  %v1381_v16 = vmul.f32 %v3022_v15, %v1347_v54  ;;  %v1348_v39 = vsub.f32 %v1316_v38, %v3759_v0 }
 0x3e8   : > { %1444 = vst [vmem:[%s3054_s25 + $0xe8] sm:$0xff] %v1412_v19  ;;  %v1413_v47 = vadd.f32 %v1381_v16, %v1122_v59  ;;  %v1382_v14 = vmul.f32 %v3022_v15, %v1348_v39 }
 0x3ea   : > { %1445 = vst [vmem:[%s3054_s25 + $0xf0] sm:$0xff] %v1413_v47  ;;  %v1414_v58 = vadd.f32 %v1382_v14, %v1123_v28 }
 0x3ec   : > { %1446 = vst [vmem:[%s3054_s25 + $0xf8] sm:$0xff] %v1414_v58 }
 0x3ed   : > { %1714 = shalt.err (!%p1711_p0)
}
 0x3ee   : > { %s1715_s24 = scalar_lea.hbm %s3285_s10, 4096  ;;  %s1719_s20 = scalar_lea.hbm %s3335_s3, 8192 }
 0x3ef   : > { %p1716_p5 = scmp.ne.s32.totalorder %s3285_s10, %s1715_s24  ;;  %p1720_p6 = scmp.lt.s32.totalorder %s3285_s10, %s3335_s3 }
 0x3f0   : > { %p1721_p7 = scmp.lt.s32.totalorder %s1719_s20, %s1715_s24 }
 0x3f1   : > { %p1717_p2 = pnand %p1716_p5, %p3762_p3 }
 0x3f2   : > { %p1722_p4 = por %p1721_p7, %p1720_p6 }
 0x3f3   : > { %p1718_p1 = pneg %p1717_p2 }
 0x3f5   : > { %p1723_p8 = pnand %p1722_p4, %p1718_p1 }
 0x3f7   : > { %1726 = shalt.err (!%p1723_p8)
}
 0x3f8   : > { %s1779_s14 = smov 256   ;;  %s1780_s23 = smov 16  }
 0x3f9   : > { %1579 = dma.vmem_to_hbm [thread:$0]  (%p3762_p3), %s3287_s29, 4096, %s3285_s10, %s1448_s0, %s1779_s14, %s1779_s14, %s1780_s23  }
 0x3fa PF: > { %s1477_s25 = sand.u32 1, %s1759_s15   ;;  %p3763_p11 = scmp.ne.s32.totalorder %s3514_s21, 0 }
 0x3fb   : > { %p3764_p9 = scmp.ge.s32.totalorder %s1771_s18, 2  ;;  %s1478_s28 = scalar_lea.sflag [#allocation6], %s1477_s25 }
 0x3fd   : > { %p1590_p10 = pnand %p3764_p9, %p3763_p11 }
 0x3ff   : > { %p1591_p12 = pneg %p1590_p10 }
 0x401   : > { %1754 = dma.done.wait (%p1591_p12), %s1478_s28, 4096  }
 0x402   : > { %1756 = vsyncadd (%p1591_p12), %s1478_s28, 4294963200  ;;  %p21_p13 = scmp.ge.s32.totalorder %s1858_s26, 4   ;;  %s3765_s15 = smov %s1763_s16 }
 0x403   : > { %s3766_s16 = smov %s1767_s17  ;;  %s3767_s17 = smov %s1878_s7 }
 0x404   : > { %s3768_s18 = smov %s1858_s26  ;;  %23 = sbr.rel (!%p21_p13) target bundleno = 11 (0xb), region = 78 }
 0x409   :  { %1483 = vsyncpa [#allocation5], 1 }
 0x40a   :  { %1485 = vsyncpa [#allocation5 + $0x1], 1 }
 0x40b   :  { %1486 = vsyncpa [#allocation8], 1 }
 0x40c   :  { %1488 = vsyncpa [#allocation8 + $0x1], 1 }
 0x40d   :  { %1489 = vsyncpa [#allocation6], 1 }
 0x40e   :  { %1491 = vsyncpa [#allocation6 + $0x1], 1 }

</bundles_post_ra>
